<compile_context>
chip_gen: v7x
topology: tpu7x:2x2x1
jax: 0.10.0
libtpu: 0.0.40
codegen_flags: <defaults>
</compile_context>

<pallas_src>
import jax
import jax.numpy as jnp
from jax.experimental import pallas as pl
from jax.experimental.pallas import tpu as pltpu


def _round_up(x, m):
    return ((x + m - 1) // m) * m


def _mlp_kernel(x_ref,
                w1_ref, b1_ref,
                w2_ref, b2_ref,
                w3_ref, b3_ref,
                w4_ref, b4_ref,
                o_ref):
    # MXU operand dtype follows the weight dtype (f32 or bf16); accumulation,
    # bias add and ReLU stay in f32 (safe on all of v5e/v6e/v7x).
    cdt = w1_ref.dtype
    h = x_ref[...].astype(cdt)
    acc = None
    for w_ref, b_ref in ((w1_ref, b1_ref), (w2_ref, b2_ref),
                         (w3_ref, b3_ref), (w4_ref, b4_ref)):
        acc = jnp.dot(h, w_ref[...], preferred_element_type=jnp.float32)
        acc = jnp.maximum(acc + b_ref[...].astype(jnp.float32), 0.0)
        h = acc.astype(cdt)
    o_ref[...] = acc.astype(o_ref.dtype)


def siamese_trunk(x, params, *, batch_tile=256, weight_dtype=jnp.float32):
    """Applies the shared MLP trunk to x of shape (B, input_size)."""
    (w1, b1), (w2, b2), (w3, b3), (w4, b4) = params
    B, d_in = x.shape
    d_out = w4.shape[1]

    # Effective batch tile: big enough to fill the MXU M dimension for large
    # batches, but never larger than the (8-rounded) batch for tiny inputs.
    tb = min(batch_tile, _round_up(B, 8))
    B_pad = _round_up(B, tb)
    x_p = x if B_pad == B else jnp.pad(x, ((0, B_pad - B), (0, 0)))

    # bf16 weights halve weight HBM traffic / VMEM and ~double MXU rate on
    # v6e/v7x; biases stay f32 so the epilogue is a plain f32 VPU op.
    ws = [w.astype(weight_dtype) for w in (w1, w2, w3, w4)]
    bs = [b.astype(jnp.float32) for b in (b1, b2, b3, b4)]

    def full_spec(arr):
        # Constant block index -> fetched once, resident across all batch tiles.
        return pl.BlockSpec(arr.shape, lambda i: (0, 0))

    flops = 2 * B_pad * (d_in * 1024 + 1024 * 1024 + 1024 * 512 + 512 * d_out)
    bytes_accessed = (sum(int(w.size) * w.dtype.itemsize for w in ws)
                      + sum(int(b.size) * b.dtype.itemsize for b in bs)
                      + int(x_p.size) * 4 + B_pad * d_out * 4)

    grid = (B_pad // tb,)
    kernel = pl.pallas_call(
        _mlp_kernel,
        out_shape=jax.ShapeDtypeStruct((B_pad, d_out), jnp.float32),
        grid_spec=pltpu.PrefetchScalarGridSpec(
            num_scalar_prefetch=0,
            grid=grid,
            in_specs=[
                pl.BlockSpec((tb, d_in), lambda i: (i, 0)),
                full_spec(ws[0]), full_spec(bs[0]),
                full_spec(ws[1]), full_spec(bs[1]),
                full_spec(ws[2]), full_spec(bs[2]),
                full_spec(ws[3]), full_spec(bs[3]),
            ],
            out_specs=pl.BlockSpec((tb, d_out), lambda i: (i, 0)),
        ),
        compiler_params=pltpu.CompilerParams(
            dimension_semantics=("parallel",),
            vmem_limit_bytes=48 * 1024 * 1024,
        ),
        cost_estimate=pl.CostEstimate(
            flops=flops, transcendentals=0, bytes_accessed=bytes_accessed),
    )
    out = kernel(x_p, ws[0], bs[0], ws[1], bs[1], ws[2], bs[2], ws[3], bs[3])
    return out[:B] if B_pad != B else out


def siamese_net(x1, x2, params, *, batch_tile=256, weight_dtype=jnp.float32):
    """Mirrors SiameseNet.forward: returns z1 if x2 is None, else (z1, z2).

    The two-input path is fused into a single pallas_call (concat along batch)
    so the ~6.5 MB of weights is streamed from HBM exactly once.
    """
    if x2 is None:
        return siamese_trunk(x1, params, batch_tile=batch_tile,
                             weight_dtype=weight_dtype)
    n1 = x1.shape[0]
    z = siamese_trunk(jnp.concatenate([x1, x2], axis=0), params,
                      batch_tile=batch_tile, weight_dtype=weight_dtype)
    return z[:n1], z[n1:]


def init_params(key, input_size, output_size):
    """Deterministic init matching nn.Linear shapes (stored as (in, out))."""
    dims = [(input_size, 1024), (1024, 1024), (1024, 512), (512, output_size)]
    params = []
    for din, dout in dims:
        kw, kb, key = jax.random.split(key, 3)
        bound = 1.0 / jnp.sqrt(jnp.float32(din))
        w = jax.random.uniform(kw, (din, dout), jnp.float32, -bound, bound)
        b = jax.random.uniform(kb, (1, dout), jnp.float32, -bound, bound)
        params.append((w, b))
    return params


def reference_trunk(x, params, compute_dtype=jnp.float32):
    h = x
    for (w, b) in params:
        acc = jnp.dot(h.astype(compute_dtype), w.astype(compute_dtype),
                      preferred_element_type=jnp.float32)
        h = jnp.maximum(acc + b.astype(jnp.float32), 0.0)
    return h


if __name__ == "__main__":
    key = jax.random.PRNGKey(0)
    input_size, output_size, batch = 32, 32, 8

    kp, k1, k2 = jax.random.split(key, 3)
    params = init_params(kp, input_size, output_size)
    x1 = jax.random.normal(k1, (batch, input_size), jnp.float32)
    x2 = jax.random.normal(k2, (batch, input_size), jnp.float32)

    # Fused siamese path (single pallas_call over concat(x1, x2)), f32 weights.
    z1, z2 = siamese_net(x1, x2, params)
    jax.block_until_ready((z1, z2))

    # Single-input path.
    z_single = siamese_net(x1, None, params)
    jax.block_until_ready(z_single)

    # Correctness vs. plain-JAX reference (f32).
    ref1 = reference_trunk(x1, params)
    ref2 = reference_trunk(x2, params)
    assert jnp.allclose(z1, ref1, atol=1e-4, rtol=1e-4)
    assert jnp.allclose(z2, ref2, atol=1e-4, rtol=1e-4)
    assert jnp.allclose(z_single, ref1, atol=1e-4, rtol=1e-4)

    # bf16-weight fast path (bf16-native MXU on v6e/v7x), checked against a
    # reference that applies the same bf16 casts.
    z1b, z2b = siamese_net(x1, x2, params, weight_dtype=jnp.bfloat16)
    jax.block_until_ready((z1b, z2b))
    ref1b = reference_trunk(x1, params, compute_dtype=jnp.bfloat16)
    ref2b = reference_trunk(x2, params, compute_dtype=jnp.bfloat16)
    assert jnp.allclose(z1b, ref1b, atol=2e-2, rtol=2e-2)
    assert jnp.allclose(z2b, ref2b, atol=2e-2, rtol=2e-2)

    print("KERNEL_OK")
</pallas_src>

<mosaic_0001>
module attributes {stable_mosaic.version = 11 : i64} {
  func.func @_mlp_kernel(%arg0: i32, %arg1: memref<16x32xf32, #tpu.memory_space<vmem>>, %arg2: memref<32x1024xf32, #tpu.memory_space<vmem>>, %arg3: memref<1x1024xf32, #tpu.memory_space<vmem>>, %arg4: memref<1024x1024xf32, #tpu.memory_space<vmem>>, %arg5: memref<1x1024xf32, #tpu.memory_space<vmem>>, %arg6: memref<1024x512xf32, #tpu.memory_space<vmem>>, %arg7: memref<1x512xf32, #tpu.memory_space<vmem>>, %arg8: memref<512x32xf32, #tpu.memory_space<vmem>>, %arg9: memref<1x32xf32, #tpu.memory_space<vmem>>, %arg10: memref<16x32xf32, #tpu.memory_space<vmem>>) attributes {dimension_semantics = [#tpu.dimension_semantics<parallel>], iteration_bounds = array<i64: 1>, scalar_prefetch = 0 : i64, scratch_operands = 0 : i64, tpu.core_type = #tpu.core_type<tc>, window_params = [{transform_indices = @transform_0, window_bounds = array<i64: 16, 32>}, {pipeline_mode = #tpu.pipeline_mode<synchronous>, transform_indices = @transform_1, window_bounds = array<i64: 32, 1024>}, {pipeline_mode = #tpu.pipeline_mode<synchronous>, transform_indices = @transform_2, window_bounds = array<i64: 1, 1024>}, {pipeline_mode = #tpu.pipeline_mode<synchronous>, transform_indices = @transform_3, window_bounds = array<i64: 1024, 1024>}, {pipeline_mode = #tpu.pipeline_mode<synchronous>, transform_indices = @transform_4, window_bounds = array<i64: 1, 1024>}, {pipeline_mode = #tpu.pipeline_mode<synchronous>, transform_indices = @transform_5, window_bounds = array<i64: 1024, 512>}, {pipeline_mode = #tpu.pipeline_mode<synchronous>, transform_indices = @transform_6, window_bounds = array<i64: 1, 512>}, {pipeline_mode = #tpu.pipeline_mode<synchronous>, transform_indices = @transform_7, window_bounds = array<i64: 512, 32>}, {pipeline_mode = #tpu.pipeline_mode<synchronous>, transform_indices = @transform_8, window_bounds = array<i64: 1, 32>}, {transform_indices = @transform_9, window_bounds = array<i64: 16, 32>}]} {
    %c0 = arith.constant 0 : index
    %c0_0 = arith.constant 0 : index
    %0 = vector.load %arg1[%c0, %c0_0] : memref<16x32xf32, #tpu.memory_space<vmem>>, vector<16x32xf32>
    %c0_1 = arith.constant 0 : index
    %c0_2 = arith.constant 0 : index
    %1 = vector.load %arg2[%c0_1, %c0_2] : memref<32x1024xf32, #tpu.memory_space<vmem>>, vector<32x1024xf32>
    %cst = arith.constant dense<0.000000e+00> : vector<16x1024xf32>
    %2 = tpu.matmul %0, %1, %cst {dimension_numbers = #tpu.dot_dimension_numbers<[1], [0], [0], [1], [0, 0, 1, 1], [], []>} : vector<16x32xf32>, vector<32x1024xf32>, vector<16x1024xf32> -> vector<16x1024xf32>
    %c0_3 = arith.constant 0 : index
    %c0_4 = arith.constant 0 : index
    %3 = vector.load %arg3[%c0_3, %c0_4] : memref<1x1024xf32, #tpu.memory_space<vmem>>, vector<1x1024xf32>
    %4 = vector.broadcast %3 : vector<1x1024xf32> to vector<16x1024xf32>
    %5 = arith.addf %2, %4 : vector<16x1024xf32>
    %cst_5 = arith.constant 0.000000e+00 : f32
    %6 = vector.broadcast %cst_5 : f32 to vector<16x1024xf32>
    %7 = arith.maximumf %5, %6 : vector<16x1024xf32>
    %c0_6 = arith.constant 0 : index
    %c0_7 = arith.constant 0 : index
    %8 = vector.load %arg4[%c0_6, %c0_7] : memref<1024x1024xf32, #tpu.memory_space<vmem>>, vector<1024x1024xf32>
    %cst_8 = arith.constant dense<0.000000e+00> : vector<16x1024xf32>
    %9 = tpu.matmul %7, %8, %cst_8 {dimension_numbers = #tpu.dot_dimension_numbers<[1], [0], [0], [1], [0, 0, 1, 1], [], []>} : vector<16x1024xf32>, vector<1024x1024xf32>, vector<16x1024xf32> -> vector<16x1024xf32>
    %c0_9 = arith.constant 0 : index
    %c0_10 = arith.constant 0 : index
    %10 = vector.load %arg5[%c0_9, %c0_10] : memref<1x1024xf32, #tpu.memory_space<vmem>>, vector<1x1024xf32>
    %11 = vector.broadcast %10 : vector<1x1024xf32> to vector<16x1024xf32>
    %12 = arith.addf %9, %11 : vector<16x1024xf32>
    %cst_11 = arith.constant 0.000000e+00 : f32
    %13 = vector.broadcast %cst_11 : f32 to vector<16x1024xf32>
    %14 = arith.maximumf %12, %13 : vector<16x1024xf32>
    %c0_12 = arith.constant 0 : index
    %c0_13 = arith.constant 0 : index
    %15 = vector.load %arg6[%c0_12, %c0_13] : memref<1024x512xf32, #tpu.memory_space<vmem>>, vector<1024x512xf32>
    %cst_14 = arith.constant dense<0.000000e+00> : vector<16x512xf32>
    %16 = tpu.matmul %14, %15, %cst_14 {dimension_numbers = #tpu.dot_dimension_numbers<[1], [0], [0], [1], [0, 0, 1, 1], [], []>} : vector<16x1024xf32>, vector<1024x512xf32>, vector<16x512xf32> -> vector<16x512xf32>
    %c0_15 = arith.constant 0 : index
    %c0_16 = arith.constant 0 : index
    %17 = vector.load %arg7[%c0_15, %c0_16] : memref<1x512xf32, #tpu.memory_space<vmem>>, vector<1x512xf32>
    %18 = vector.broadcast %17 : vector<1x512xf32> to vector<16x512xf32>
    %19 = arith.addf %16, %18 : vector<16x512xf32>
    %cst_17 = arith.constant 0.000000e+00 : f32
    %20 = vector.broadcast %cst_17 : f32 to vector<16x512xf32>
    %21 = arith.maximumf %19, %20 : vector<16x512xf32>
    %c0_18 = arith.constant 0 : index
    %c0_19 = arith.constant 0 : index
    %22 = vector.load %arg8[%c0_18, %c0_19] : memref<512x32xf32, #tpu.memory_space<vmem>>, vector<512x32xf32>
    %cst_20 = arith.constant dense<0.000000e+00> : vector<16x32xf32>
    %23 = tpu.matmul %21, %22, %cst_20 {dimension_numbers = #tpu.dot_dimension_numbers<[1], [0], [0], [1], [0, 0, 1, 1], [], []>} : vector<16x512xf32>, vector<512x32xf32>, vector<16x32xf32> -> vector<16x32xf32>
    %c0_21 = arith.constant 0 : index
    %c0_22 = arith.constant 0 : index
    %24 = vector.load %arg9[%c0_21, %c0_22] : memref<1x32xf32, #tpu.memory_space<vmem>>, vector<1x32xf32>
    %25 = vector.broadcast %24 : vector<1x32xf32> to vector<16x32xf32>
    %26 = arith.addf %23, %25 : vector<16x32xf32>
    %cst_23 = arith.constant 0.000000e+00 : f32
    %27 = vector.broadcast %cst_23 : f32 to vector<16x32xf32>
    %28 = arith.maximumf %26, %27 : vector<16x32xf32>
    %c0_24 = arith.constant 0 : index
    %c0_25 = arith.constant 0 : index
    %29 = vector.load %arg10[%c0_24, %c0_25] : memref<16x32xf32, #tpu.memory_space<vmem>>, vector<16x32xf32>
    tpu.vector_store %arg10[%c0_24, %c0_25], %28 {strides = array<i32>} : memref<16x32xf32, #tpu.memory_space<vmem>>, vector<16x32xf32>,
    return
  }
  func.func @transform_0(%arg0: i32) -> (i32, i32) {
    %c0_i32 = arith.constant 0 : i32
    %c0_i32_0 = arith.constant 0 : i32
    return %arg0, %c0_i32 : i32, i32
  }
  func.func @transform_1(%arg0: i32) -> (i32, i32) {
    %c0_i32 = arith.constant 0 : i32
    %c0_i32_0 = arith.constant 0 : i32
    %c0_i32_1 = arith.constant 0 : i32
    return %c0_i32, %c0_i32_0 : i32, i32
  }
  func.func @transform_2(%arg0: i32) -> (i32, i32) {
    %c0_i32 = arith.constant 0 : i32
    %c0_i32_0 = arith.constant 0 : i32
    %c0_i32_1 = arith.constant 0 : i32
    return %c0_i32, %c0_i32_0 : i32, i32
  }
  func.func @transform_3(%arg0: i32) -> (i32, i32) {
    %c0_i32 = arith.constant 0 : i32
    %c0_i32_0 = arith.constant 0 : i32
    %c0_i32_1 = arith.constant 0 : i32
    return %c0_i32, %c0_i32_0 : i32, i32
  }
  func.func @transform_4(%arg0: i32) -> (i32, i32) {
    %c0_i32 = arith.constant 0 : i32
    %c0_i32_0 = arith.constant 0 : i32
    %c0_i32_1 = arith.constant 0 : i32
    return %c0_i32, %c0_i32_0 : i32, i32
  }
  func.func @transform_5(%arg0: i32) -> (i32, i32) {
    %c0_i32 = arith.constant 0 : i32
    %c0_i32_0 = arith.constant 0 : i32
    %c0_i32_1 = arith.constant 0 : i32
    return %c0_i32, %c0_i32_0 : i32, i32
  }
  func.func @transform_6(%arg0: i32) -> (i32, i32) {
    %c0_i32 = arith.constant 0 : i32
    %c0_i32_0 = arith.constant 0 : i32
    %c0_i32_1 = arith.constant 0 : i32
    return %c0_i32, %c0_i32_0 : i32, i32
  }
  func.func @transform_7(%arg0: i32) -> (i32, i32) {
    %c0_i32 = arith.constant 0 : i32
    %c0_i32_0 = arith.constant 0 : i32
    %c0_i32_1 = arith.constant 0 : i32
    return %c0_i32, %c0_i32_0 : i32, i32
  }
  func.func @transform_8(%arg0: i32) -> (i32, i32) {
    %c0_i32 = arith.constant 0 : i32
    %c0_i32_0 = arith.constant 0 : i32
    %c0_i32_1 = arith.constant 0 : i32
    return %c0_i32, %c0_i32_0 : i32, i32
  }
  func.func @transform_9(%arg0: i32) -> (i32, i32) {
    %c0_i32 = arith.constant 0 : i32
    %c0_i32_0 = arith.constant 0 : i32
    return %arg0, %c0_i32 : i32, i32
  }
}

</mosaic_0001>

<bundles_post_ra>
// kernel: tpu_custom_call.1
= control target key start
LH: loop header
LB: loop body
LE: loop exit
PB: predicated region body
PF: predicated region fallthrough
CT: control target
= control target key end

     0   :  { %14 = vsyncpa [#allocation3], 0  ;;  %s6958_s0 = inlined_call_operand.hbm [shape: f32[16,32], index: 0, kind: input, shape index: {}]   ;;  %s6959_s1 = inlined_call_operand.hbm [shape: f32[32,1024], index: 1, kind: input, shape index: {}]   ;;  %s6960_s2 = inlined_call_operand.hbm [shape: f32[1,1024], index: 2, kind: input, shape index: {}]   ;;  %s6961_s3 = inlined_call_operand.hbm [shape: f32[1024,1024], index: 3, kind: input, shape index: {}]   ;;  %s6962_s4 = inlined_call_operand.hbm [shape: f32[1,1024], index: 4, kind: input, shape index: {}]   ;;  %s6963_s5 = inlined_call_operand.hbm [shape: f32[1024,512], index: 5, kind: input, shape index: {}]   ;;  %s6964_s6 = inlined_call_operand.hbm [shape: f32[1,512], index: 6, kind: input, shape index: {}]   ;;  %s6965_s7 = inlined_call_operand.vmem [shape: f32[512,32], index: 7, kind: input, shape index: {}]   ;;  %s6966_s8 = inlined_call_operand.hbm [shape: f32[1,32], index: 8, kind: input, shape index: {}]   ;;  %s6967_s9 = inlined_call_operand.hbm [shape: f32[16,32], index: 9, kind: output, shape index: {}]  }
   0x1   :  { %15 = vsyncpa [#allocation6], 0 }
   0x2   :  { %16 = vsyncpa [#allocation9], 0 }
   0x3   :  { %17 = vsyncpa [#allocation12], 0 }
   0x4   :  { %18 = vsyncpa [#allocation15], 0 }
   0x5   :  { %19 = vsyncpa [#allocation4], 0  ;;  %s6301_s30 = smov [#allocation5]   ;;  %s6091_s13 = scalar_lea.hbm %s6959_s1, 4096 }
   0x6   :  { %s37_s10 = sshll.u32 %s6301_s30, 4  ;;  %p6092_p0 = scmp.ne.s32.totalorder %s6959_s1, %s6091_s13  ;;  %s38_s10 = int_to_ptr.vmem [resolvable:$true] %s37_s10 }
   0x7   :  { %p6095_p1 = scmp.lt.u32.totalorder %s6091_s13, %s6959_s1 }
   0x9   :  { %p6097_p2 = pnand %p6095_p1, %p6092_p0 }
   0xb   :  { %6100 = shalt.err (!%p6097_p2)
}
   0xc   :  { %s6101_s18 = scalar_lea.vmem %s38_s10, 4096  ;;  %p6106_p4 = scmp.lt.s32.totalorder %s38_s10, %s38_s10 }
   0xd   :  { %p6102_p3 = scmp.ne.s32.totalorder %s38_s10, %s6101_s18  ;;  %p6107_p5 = scmp.lt.s32.totalorder %s6101_s18, %s6101_s18 }
   0xf   :  { %p6108_p6 = por %p6107_p5, %p6106_p4 }
  0x11   :  { %p6109_p7 = pnand %p6108_p6, %p6102_p3 }
  0x13   :  { %6112 = shalt.err (!%p6109_p7)
}
  0x14   :  { %s6302_s19 = smov 1024   ;;  %s6303_s20 = smov 64  }
  0x15   :  { %43 = dma.hbm_to_vmem [thread:$0]  %s6959_s1, 4096, %s38_s10, [#allocation6], %s6302_s19, %s6302_s19, %s6303_s20  }
  0x16   :  { %s6304_s23 = smov [#allocation8]   ;;  %s6305_s25 = smov [#allocation11]  }
  0x17   :  { %s59_s24 = sshll.u32 %s6304_s23, 4  ;;  %s81_s26 = sshll.u32 %s6305_s25, 4  ;;  %s60_s24 = int_to_ptr.vmem [resolvable:$true] %s59_s24  ;;  %s82_s26 = int_to_ptr.vmem [resolvable:$true] %s81_s26 }
  0x18   :  { %s6113_s29 = scalar_lea.hbm %s6961_s3, 131072 }
  0x19   :  { %p6114_p8 = scmp.ne.s32.totalorder %s6961_s3, %s6113_s29  ;;  %p6117_p9 = scmp.lt.u32.totalorder %s6113_s29, %s6961_s3 }
  0x1b   :  { %p6119_p10 = pnand %p6117_p9, %p6114_p8 }
  0x1d   :  { %6122 = shalt.err (!%p6119_p10)
}
  0x1e   :  { %s6123_s1 = scalar_lea.vmem %s60_s24, 131072  ;;  %p6128_p12 = scmp.lt.s32.totalorder %s60_s24, %s60_s24 }
  0x1f   :  { %p6124_p11 = scmp.ne.s32.totalorder %s60_s24, %s6123_s1  ;;  %p6129_p13 = scmp.lt.s32.totalorder %s6123_s1, %s6123_s1 }
  0x21   :  { %p6130_p0 = por %p6129_p13, %p6128_p12 }
  0x23   :  { %p6131_p1 = pnand %p6130_p0, %p6124_p11 }
  0x25   :  { %6134 = shalt.err (!%p6131_p1)
}
  0x26   :  { %65 = dma.hbm_to_vmem [thread:$0]  %s6961_s3, 131072, %s60_s24, [#allocation9], %s6302_s19, %s6302_s19, %s6303_s20  }
  0x27   :  { %s6135_s17 = scalar_lea.hbm %s6963_s5, 65536 }
  0x28   :  { %p6136_p2 = scmp.ne.s32.totalorder %s6963_s5, %s6135_s17  ;;  %p6139_p3 = scmp.lt.u32.totalorder %s6135_s17, %s6963_s5 }
  0x2a   :  { %p6141_p4 = pnand %p6139_p3, %p6136_p2 }
  0x2c   :  { %6144 = shalt.err (!%p6141_p4)
}
  0x2d   :  { %s6145_s25 = scalar_lea.vmem %s82_s26, 65536  ;;  %p6150_p6 = scmp.lt.s32.totalorder %s82_s26, %s82_s26 }
  0x2e   :  { %p6146_p5 = scmp.ne.s32.totalorder %s82_s26, %s6145_s25  ;;  %p6151_p7 = scmp.lt.s32.totalorder %s6145_s25, %s6145_s25 }
  0x30   :  { %p6152_p8 = por %p6151_p7, %p6150_p6 }
  0x32   :  { %p6153_p9 = pnand %p6152_p8, %p6146_p5 }
  0x34   :  { %6156 = shalt.err (!%p6153_p9)
}
  0x35   :  { %s6306_s3 = smov 512   ;;  %s6307_s19 = smov 32  }
  0x36   :  { %87 = dma.hbm_to_vmem [thread:$0]  %s6963_s5, 65536, %s82_s26, [#allocation12], %s6306_s3, %s6306_s3, %s6307_s19  }
  0x37   :  { %s6308_s27 = smov [#allocation2]   ;;  %s6157_s11 = scalar_lea.hbm %s6958_s0, 256 }
  0x38   :  { %s25_s28 = sshll.u32 %s6308_s27, 4  ;;  %p6158_p10 = scmp.ne.s32.totalorder %s6958_s0, %s6157_s11  ;;  %s26_s28 = int_to_ptr.vmem [resolvable:$true] %s25_s28 }
  0x39   :  { %p6161_p11 = scmp.lt.u32.totalorder %s6157_s11, %s6958_s0 }
  0x3b   :  { %p6163_p12 = pnand %p6161_p11, %p6158_p10 }
  0x3d   :  { %6166 = shalt.err (!%p6163_p12)
}
  0x3e   :  { %s6167_s14 = scalar_lea.vmem %s26_s28, 256  ;;  %p6172_p0 = scmp.lt.s32.totalorder %s26_s28, %s26_s28 }
  0x3f   :  { %p6168_p13 = scmp.ne.s32.totalorder %s26_s28, %s6167_s14  ;;  %p6173_p1 = scmp.lt.s32.totalorder %s6167_s14, %s6167_s14 }
  0x41   :  { %p6174_p2 = por %p6173_p1, %p6172_p0 }
  0x43   :  { %p6175_p3 = pnand %p6174_p2, %p6168_p13 }
  0x45   :  { %6178 = shalt.err (!%p6175_p3)
}
  0x46   :  { %s6309_s5 = smov 128   ;;  %s6310_s26 = smov 8  }
  0x47   :  { %31 = dma.hbm_to_vmem [thread:$0]  %s6958_s0, 256, %s26_s28, [#allocation3], %s6309_s5, %s6309_s5, %s6310_s26  }
  0x48   :  { %s6311_s17 = smov [#allocation7]   ;;  %s6312_s21 = smov [#allocation10]  }
  0x49   :  { %s50_s18 = sshll.u32 %s6311_s17, 4  ;;  %s72_s22 = sshll.u32 %s6312_s21, 4  ;;  %s51_s18 = int_to_ptr.vmem [resolvable:$true] %s50_s18  ;;  %s73_s22 = int_to_ptr.vmem [resolvable:$true] %s72_s22 }
  0x4a   :  { %s6179_s3 = scalar_lea.hbm %s6960_s2, 128 }
  0x4b   :  { %p6180_p4 = scmp.ne.s32.totalorder %s6960_s2, %s6179_s3  ;;  %p6183_p5 = scmp.lt.u32.totalorder %s6179_s3, %s6960_s2 }
  0x4d   :  { %p6185_p6 = pnand %p6183_p5, %p6180_p4 }
  0x4f   :  { %6188 = shalt.err (!%p6185_p6)
}
  0x50   :  { %s6189_s0 = scalar_lea.vmem %s51_s18, 128  ;;  %p6194_p8 = scmp.lt.s32.totalorder %s51_s18, %s51_s18 }
  0x51   :  { %p6190_p7 = scmp.ne.s32.totalorder %s51_s18, %s6189_s0  ;;  %p6195_p9 = scmp.lt.s32.totalorder %s6189_s0, %s6189_s0 }
  0x53   :  { %p6196_p10 = por %p6195_p9, %p6194_p8 }
  0x55   :  { %p6197_p11 = pnand %p6196_p10, %p6190_p7 }
  0x57   :  { %6200 = shalt.err (!%p6197_p11)
}
  0x58   :  { %53 = dma.hbm_to_vmem [thread:$0]  %s6960_s2, 128, %s51_s18, [#allocation6]  }
  0x59   :  { %s6201_s12 = scalar_lea.hbm %s6962_s4, 128 }
  0x5a   :  { %p6202_p12 = scmp.ne.s32.totalorder %s6962_s4, %s6201_s12  ;;  %p6205_p13 = scmp.lt.u32.totalorder %s6201_s12, %s6962_s4 }
  0x5c   :  { %p6207_p0 = pnand %p6205_p13, %p6202_p12 }
  0x5e   :  { %6210 = shalt.err (!%p6207_p0)
}
  0x5f   :  { %s6211_s15 = scalar_lea.vmem %s73_s22, 128  ;;  %p6216_p2 = scmp.lt.s32.totalorder %s73_s22, %s73_s22 }
  0x60   :  { %p6212_p1 = scmp.ne.s32.totalorder %s73_s22, %s6211_s15  ;;  %p6217_p3 = scmp.lt.s32.totalorder %s6211_s15, %s6211_s15 }
  0x62   :  { %p6218_p4 = por %p6217_p3, %p6216_p2 }
  0x64   :  { %p6219_p5 = pnand %p6218_p4, %p6212_p1 }
  0x66   :  { %6222 = shalt.err (!%p6219_p5)
}
  0x67   :  { %75 = dma.hbm_to_vmem [thread:$0]  %s6962_s4, 128, %s73_s22, [#allocation9]  }
  0x68   :  { %s6313_s17 = smov [#allocation13]   ;;  %s6314_s21 = smov [#allocation14]  }
  0x69   :  { %s94_s18 = sshll.u32 %s6313_s17, 4  ;;  %s106_s23 = sshll.u32 %s6314_s21, 4  ;;  %s95_s18 = int_to_ptr.vmem [resolvable:$true] %s94_s18  ;;  %s107_s23 = int_to_ptr.vmem [resolvable:$true] %s106_s23 }
  0x6a   :  { %s6223_s19 = scalar_lea.hbm %s6964_s6, 64 }
  0x6b   :  { %p6224_p6 = scmp.ne.s32.totalorder %s6964_s6, %s6223_s19  ;;  %p6227_p7 = scmp.lt.u32.totalorder %s6223_s19, %s6964_s6 }
  0x6d   :  { %p6229_p8 = pnand %p6227_p7, %p6224_p6 }
  0x6f   :  { %6232 = shalt.err (!%p6229_p8)
}
  0x70   :  { %s6233_s4 = scalar_lea.vmem %s95_s18, 64  ;;  %p6238_p10 = scmp.lt.s32.totalorder %s95_s18, %s95_s18 }
  0x71   :  { %p6234_p9 = scmp.ne.s32.totalorder %s95_s18, %s6233_s4  ;;  %p6239_p11 = scmp.lt.s32.totalorder %s6233_s4, %s6233_s4 }
  0x73   :  { %p6240_p12 = por %p6239_p11, %p6238_p10 }
  0x75   :  { %p6241_p13 = pnand %p6240_p12, %p6234_p9 }
  0x77   :  { %6244 = shalt.err (!%p6241_p13)
}
  0x78   :  { %97 = dma.hbm_to_vmem [thread:$0]  %s6964_s6, 64, %s95_s18, [#allocation12]  }
  0x79   :  { %s6245_s11 = scalar_lea.hbm %s6966_s8, 16 }
  0x7a   :  { %p6246_p0 = scmp.ne.s32.totalorder %s6966_s8, %s6245_s11  ;;  %p6249_p1 = scmp.lt.u32.totalorder %s6245_s11, %s6966_s8 }
  0x7c   :  { %p6251_p2 = pnand %p6249_p1, %p6246_p0 }
  0x7e   :  { %6254 = shalt.err (!%p6251_p2)
}
  0x7f   :  { %s6255_s14 = scalar_lea.vmem %s107_s23, 16  ;;  %s6259_s15 = scalar_lea.vmem %s107_s23, 32 }
  0x80   :  { %p6256_p3 = scmp.ne.s32.totalorder %s107_s23, %s6255_s14  ;;  %p6260_p4 = scmp.lt.s32.totalorder %s107_s23, %s107_s23 }
  0x81   :  { %p6261_p5 = scmp.lt.s32.totalorder %s6259_s15, %s6255_s14 }
  0x83   :  { %p6262_p6 = por %p6261_p5, %p6260_p4 }
  0x85   :  { %p6263_p7 = pnand %p6262_p6, %p6256_p3 }
  0x87   :  { %6266 = shalt.err (!%p6263_p7)
}
  0x88   :  { %109 = dma.hbm_to_vmem [thread:$0]  %s6966_s8, 16, %s107_s23, [#allocation15]  }
  0x89   :  { %6289 = dma.done.wait [#allocation3], 256  }
  0x8a   :  { %6290 = vsyncadd [#allocation3], 4294967040 }
  0x8b   :  { %6291 = dma.done.wait [#allocation6], 4224  }
  0x8c   :  { %6292 = vsyncadd [#allocation6], 4294963072 }
  0x8d   :  { %6293 = dma.done.wait [#allocation9], 131200  }
  0x8e   :  { %6294 = vsyncadd [#allocation9], 4294836096 }
  0x8f   :  { %6295 = dma.done.wait [#allocation12], 65600  }
  0x90   :  { %6296 = vsyncadd [#allocation12], 4294901696 }
  0x91   :  { %6297 = dma.done.wait [#allocation15], 16  }
  0x92   :  { %6298 = vsyncadd [#allocation15], 4294967280  ;;  %v6315_v0 = vmov 0.0   ;;  %v137_v1 = vld [vmem:[#allocation5 + $0x8] sm:$0xff]  ;;  %v136_v3 = vld [vmem:[#allocation5] sm:$0xff]  ;;  %vm210_vm0 = vcmask 261120  }
  0x93   :  { %281 = vmatprep.mubr.f32.mxu0 %v6315_v0  ;;  %358 = vmatprep.mubr.f32.mxu1 %v6315_v0  ;;  %v145_v2 = vld [vmem:[#allocation5 + $0x48] sm:$0xff]  ;;  %v144_v5 = vld [vmem:[#allocation5 + $0x40] sm:$0xff]  ;;  %v139_v12 = vld [vmem:[#allocation5 + $0x18] sm:$0xff] }
  0x94   :  { %v4344_v4 = vpack.c.bf16 %v145_v2, %v137_v1  ;;  %v153_v6 = vld [vmem:[#allocation5 + $0x88] sm:$0xff]  ;;  %v4346_v8 = vpack.c.bf16 %v144_v5, %v136_v3  ;;  %v152_v10 = vld [vmem:[#allocation5 + $0x80] sm:$0xff]  ;;  %v147_v13 = vld [vmem:[#allocation5 + $0x58] sm:$0xff] }
  0x95   :  { %v161_v7 = vld [vmem:[#allocation5 + $0xc8] sm:$0xff]  ;;  %v160_v11 = vld [vmem:[#allocation5 + $0xc0] sm:$0xff]  ;;  %v138_v14 = vld [vmem:[#allocation5 + $0x10] sm:$0xff]  ;;  %v4352_v16 = vpack.c.bf16 %v147_v13, %v139_v12 }
  0x96   :  { %v4348_v9 = vpack.c.bf16 %v161_v7, %v153_v6  ;;  %4345 = vmatprep.subr.bf16.mxu0 %v4344_v4  ;;  %v4350_v15 = vpack.c.bf16 %v160_v11, %v152_v10  ;;  %v146_v17 = vld [vmem:[#allocation5 + $0x50] sm:$0xff]  ;;  %v155_v18 = vld [vmem:[#allocation5 + $0x98] sm:$0xff]  ;;  %v141_v24 = vld [vmem:[#allocation5 + $0x28] sm:$0xff] }
  0x97   :  { %4347 = vmatpush1.bf16.msra.mxu0 %v4346_v8  ;;  %v4354_v19 = vpack.c.bf16 %v146_v17, %v138_v14  ;;  %v163_v20 = vld [vmem:[#allocation5 + $0xd8] sm:$0xff]  ;;  %v154_v21 = vld [vmem:[#allocation5 + $0x90] sm:$0xff]  ;;  %4353 = vmatprep.subr.bf16.mxu1 %v4352_v16  ;;  %v149_v25 = vld [vmem:[#allocation5 + $0x68] sm:$0xff] }
  0x98   :  { %4349 = vmatprep.subr.bf16.mxu0 %v4348_v9  ;;  %v162_v22 = vld [vmem:[#allocation5 + $0xd0] sm:$0xff]  ;;  %v4356_v23 = vpack.c.bf16 %v163_v20, %v155_v18  ;;  %v140_v26 = vld [vmem:[#allocation5 + $0x20] sm:$0xff]  ;;  %v4360_v28 = vpack.c.bf16 %v149_v25, %v141_v24  ;;  %v157_v30 = vld [vmem:[#allocation5 + $0xa8] sm:$0xff] }
  0x99   :  { %4355 = vmatpush1.bf16.msra.mxu1 %v4354_v19  ;;  %v4358_v27 = vpack.c.bf16 %v162_v22, %v154_v21  ;;  %v148_v29 = vld [vmem:[#allocation5 + $0x60] sm:$0xff]  ;;  %v165_v31 = vld [vmem:[#allocation5 + $0xe8] sm:$0xff]  ;;  %v6468_v32 = vld [vmem:[#allocation2] sm:$0xff] }
  0x9a   :  { %4357 = vmatprep.subr.bf16.mxu1 %v4356_v23  ;;  %v4362_v33 = vpack.c.bf16 %v148_v29, %v140_v26  ;;  %v143_v34 = vld [vmem:[#allocation5 + $0x38] sm:$0xff]  ;;  %v4364_v35 = vpack.c.bf16 %v165_v31, %v157_v30  ;;  %v156_v36 = vld [vmem:[#allocation5 + $0xa0] sm:$0xff]  ;;  %v142_v40 = vld [vmem:[#allocation5 + $0x30] sm:$0xff] }
  0x9b   :  { %4351 = vmatpush1.bf16.msra.mxu0 %v4350_v15  ;;  %v164_v37 = vld [vmem:[#allocation5 + $0xe0] sm:$0xff]  ;;  %v151_v38 = vld [vmem:[#allocation5 + $0x78] sm:$0xff]  ;;  %v150_v41 = vld [vmem:[#allocation5 + $0x70] sm:$0xff] }
  0x9c   :  { %4361 = vmatprep.subr.bf16.mxu0 %v4360_v28  ;;  %v4368_v39 = vpack.c.bf16 %v151_v38, %v143_v34  ;;  %v159_v42 = vld [vmem:[#allocation5 + $0xb8] sm:$0xff]  ;;  %v542_v44 = vld [vmem:[#allocation8 + $0x8] sm:$0xff]  ;;  %v4366_v47 = vpack.c.bf16 %v164_v37, %v156_v36  ;;  %v4370_v48 = vpack.c.bf16 %v150_v41, %v142_v40  ;;  %v541_v51 = vld [vmem:[#allocation8] sm:$0xff] }
  0x9d   :  { %4359 = vmatpush1.bf16.msra.mxu1 %v4358_v27  ;;  %v167_v43 = vld [vmem:[#allocation5 + $0xf8] sm:$0xff]  ;;  %v550_v45 = vld [vmem:[#allocation8 + $0x48] sm:$0xff]  ;;  %v549_v52 = vld [vmem:[#allocation8 + $0x40] sm:$0xff] }
  0x9e   :  { %4259 = vmatmul.mubr.msk.f32.vlgmr.msra.gmra.mrb[0].mxu0 %vm210_vm0, %v6468_v32  ;;  %v6473_v46 = vld [vmem:[#allocation2 + $0x8] sm:$0xff]  ;;  %4369 = vmatprep.subr.bf16.mxu1 %v4368_v39  ;;  %v158_v49 = vld [vmem:[#allocation5 + $0xb0] sm:$0xff]  ;;  %v4376_v50 = vpack.c.bf16 %v550_v45, %v542_v44  ;;  %v4372_v53 = vpack.c.bf16 %v167_v43, %v159_v42  ;;  %v544_v57 = vld [vmem:[#allocation8 + $0x18] sm:$0xff]  ;;  %v4378_v59 = vpack.c.bf16 %v549_v52, %v541_v51 }
  0x9f   :  { %287 = vmatprep.mubr.f32.mxu0 %v6315_v0  ;;  %4363 = vmatpush1.bf16.msra.mxu0 %v4362_v33  ;;  %v166_v54 = vld [vmem:[#allocation5 + $0xf0] sm:$0xff]  ;;  %v552_v58 = vld [vmem:[#allocation8 + $0x58] sm:$0xff]  ;;  %v543_v61 = vld [vmem:[#allocation8 + $0x10] sm:$0xff] }
  0xa0   :  { %4365 = vmatprep.subr.bf16.mxu0 %v4364_v35  ;;  %4261 = vmatmul.mubr.msk.f32.vlgmr.msra.gmra.mrb[0].mxu1 %vm210_vm0, %v6468_v32  ;;  %v558_v55 = vld [vmem:[#allocation8 + $0x88] sm:$0xff]  ;;  %v4374_v60 = vpack.c.bf16 %v166_v54, %v158_v49  ;;  %v557_v63 = vld [vmem:[#allocation8 + $0x80] sm:$0xff]  ;;  %v4632_v2 = vpack.c.bf16 %v552_v58, %v544_v57  ;;  %v551_v3 = vld [vmem:[#allocation8 + $0x50] sm:$0xff] }
  0xa1   :  { %v566_v56 = vld [vmem:[#allocation8 + $0xc8] sm:$0xff]  ;;  %364 = vmatprep.mubr.f32.mxu1 %v6315_v0  ;;  %4371 = vmatpush1.bf16.msra.mxu1 %v4370_v48  ;;  %v565_v1 = vld [vmem:[#allocation8 + $0xc0] sm:$0xff]  ;;  %v560_v6 = vld [vmem:[#allocation8 + $0x98] sm:$0xff]  ;;  %v4634_v9 = vpack.c.bf16 %v551_v3, %v543_v61 }
  0xa2   :  { %4260 = vmatmul.mubr.msk.f32.gmra.mrb[2].mxu0 %vm210_vm0, %v6473_v46  ;;  %v4380_v62 = vpack.c.bf16 %v566_v56, %v558_v55  ;;  %4373 = vmatprep.subr.bf16.mxu1 %v4372_v53  ;;  %v574_v4 = vld [vmem:[#allocation8 + $0x108] sm:$0xff]  ;;  %v568_v7 = vld [vmem:[#allocation8 + $0xd8] sm:$0xff]  ;;  %v4382_v8 = vpack.c.bf16 %v565_v1, %v557_v63  ;;  %v559_v10 = vld [vmem:[#allocation8 + $0x90] sm:$0xff] }
  0xa3   :  { %4367 = vmatpush1.bf16.msra.mxu0 %v4366_v47  ;;  %435 = vmatprep.mubr.f32.mxu0 %v6315_v0  ;;  %v582_v5 = vld [vmem:[#allocation8 + $0x148] sm:$0xff]  ;;  %v573_v12 = vld [vmem:[#allocation8 + $0x100] sm:$0xff]  ;;  %v4636_v14 = vpack.c.bf16 %v568_v7, %v560_v6  ;;  %v567_v15 = vld [vmem:[#allocation8 + $0xd0] sm:$0xff] }
  0xa4   :  { %4377 = vmatprep.subr.bf16.mxu0 %v4376_v50  ;;  %4262 = vmatmul.mubr.msk.f32.gmra.mrb[2].mxu1 %vm210_vm0, %v6473_v46  ;;  %v4384_v11 = vpack.c.bf16 %v582_v5, %v574_v4  ;;  %v581_v13 = vld [vmem:[#allocation8 + $0x140] sm:$0xff]  ;;  %v590_v16 = vld [vmem:[#allocation8 + $0x188] sm:$0xff]  ;;  %v576_v18 = vld [vmem:[#allocation8 + $0x118] sm:$0xff]  ;;  %v4638_v21 = vpack.c.bf16 %v567_v15, %v559_v10 }
  0xa5   :  { %512 = vmatprep.mubr.f32.mxu1 %v6315_v0  ;;  %4375 = vmatpush1.bf16.msra.mxu1 %v4374_v60  ;;  %v598_v17 = vld [vmem:[#allocation8 + $0x1c8] sm:$0xff]  ;;  %v584_v19 = vld [vmem:[#allocation8 + $0x158] sm:$0xff]  ;;  %v4386_v20 = vpack.c.bf16 %v581_v13, %v573_v12  ;;  %v575_v22 = vld [vmem:[#allocation8 + $0x110] sm:$0xff] }
  0xa6   :  { %4263 = vmatmul.mubr.msk.f32.vlgmr.msra.gmra.mrb[4].mxu0 %vm210_vm0, %v6468_v32  ;;  %4633 = vmatprep.subr.bf16.mxu1 %v4632_v2  ;;  %v4388_v23 = vpack.c.bf16 %v598_v17, %v590_v16  ;;  %v589_v24 = vld [vmem:[#allocation8 + $0x180] sm:$0xff]  ;;  %v4640_v26 = vpack.c.bf16 %v584_v19, %v576_v18  ;;  %v583_v27 = vld [vmem:[#allocation8 + $0x150] sm:$0xff]  ;;  %v606_v28 = vld [vmem:[#allocation8 + $0x208] sm:$0xff] }
  0xa7   :  { %4379 = vmatpush1.bf16.msra.mxu0 %v4378_v59  ;;  %441 = vmatprep.mubr.f32.mxu0 %v6315_v0  ;;  %v597_v25 = vld [vmem:[#allocation8 + $0x1c0] sm:$0xff]  ;;  %v614_v29 = vld [vmem:[#allocation8 + $0x248] sm:$0xff]  ;;  %v592_v30 = vld [vmem:[#allocation8 + $0x198] sm:$0xff]  ;;  %v4642_v33 = vpack.c.bf16 %v583_v27, %v575_v22 }
  0xa8   :  { %4381 = vmatprep.subr.bf16.mxu0 %v4380_v62  ;;  %4265 = vmatmul.mubr.msk.f32.vlgmr.msra.gmra.mrb[4].mxu1 %vm210_vm0, %v6468_v32  ;;  %v600_v31 = vld [vmem:[#allocation8 + $0x1d8] sm:$0xff]  ;;  %v4390_v32 = vpack.c.bf16 %v597_v25, %v589_v24  ;;  %v591_v34 = vld [vmem:[#allocation8 + $0x190] sm:$0xff]  ;;  %v4392_v35 = vpack.c.bf16 %v614_v29, %v606_v28  ;;  %v605_v36 = vld [vmem:[#allocation8 + $0x200] sm:$0xff] }
  0xa9   :  { %4635 = vmatpush1.bf16.msra.mxu1 %v4634_v9  ;;  %518 = vmatprep.mubr.f32.mxu1 %v6315_v0  ;;  %v613_v37 = vld [vmem:[#allocation8 + $0x240] sm:$0xff]  ;;  %v4644_v38 = vpack.c.bf16 %v600_v31, %v592_v30  ;;  %v599_v39 = vld [vmem:[#allocation8 + $0x1d0] sm:$0xff]  ;;  %v622_v40 = vld [vmem:[#allocation8 + $0x288] sm:$0xff] }
  0xaa   :  { %4264 = vmatmul.mubr.msk.f32.gmra.mrb[6].mxu0 %vm210_vm0, %v6473_v46  ;;  %4637 = vmatprep.subr.bf16.mxu1 %v4636_v14  ;;  %v630_v41 = vld [vmem:[#allocation8 + $0x2c8] sm:$0xff]  ;;  %v608_v0 = vld [vmem:[#allocation8 + $0x218] sm:$0xff]  ;;  %v4394_v43 = vpack.c.bf16 %v613_v37, %v605_v36  ;;  %v4646_v44 = vpack.c.bf16 %v599_v39, %v591_v34  ;;  %v607_v45 = vld [vmem:[#allocation8 + $0x210] sm:$0xff] }
  0xab   :  { %4383 = vmatpush1.bf16.msra.mxu0 %v4382_v8  ;;  %v616_v42 = vld [vmem:[#allocation8 + $0x258] sm:$0xff]  ;;  %v621_v47 = vld [vmem:[#allocation8 + $0x280] sm:$0xff]  ;;  %v615_v50 = vld [vmem:[#allocation8 + $0x250] sm:$0xff] }
  0xac   :  { %4385 = vmatprep.subr.bf16.mxu0 %v4384_v11  ;;  %4266 = vmatmul.mubr.msk.f32.gmra.mrb[6].mxu1 %vm210_vm0, %v6473_v46  ;;  %v4396_v46 = vpack.c.bf16 %v630_v41, %v622_v40  ;;  %v629_v48 = vld [vmem:[#allocation8 + $0x2c0] sm:$0xff]  ;;  %v4648_v49 = vpack.c.bf16 %v616_v42, %v608_v0  ;;  %v638_v51 = vld [vmem:[#allocation8 + $0x308] sm:$0xff]  ;;  %v624_v53 = vld [vmem:[#allocation8 + $0x298] sm:$0xff]  ;;  %v4650_v56 = vpack.c.bf16 %v615_v50, %v607_v45 }
  0xad   :  { %4639 = vmatpush1.bf16.msra.mxu1 %v4638_v21  ;;  %v646_v52 = vld [vmem:[#allocation8 + $0x348] sm:$0xff]  ;;  %v632_v54 = vld [vmem:[#allocation8 + $0x2d8] sm:$0xff]  ;;  %v4398_v55 = vpack.c.bf16 %v629_v48, %v621_v47  ;;  %v623_v57 = vld [vmem:[#allocation8 + $0x290] sm:$0xff] }
  0xae   :  { %4641 = vmatprep.subr.bf16.mxu1 %v4640_v26  ;;  %v4400_v58 = vpack.c.bf16 %v646_v52, %v638_v51  ;;  %v637_v59 = vld [vmem:[#allocation8 + $0x300] sm:$0xff]  ;;  %v4652_v61 = vpack.c.bf16 %v632_v54, %v624_v53  ;;  %v631_v62 = vld [vmem:[#allocation8 + $0x2d0] sm:$0xff]  ;;  %v654_v63 = vld [vmem:[#allocation8 + $0x388] sm:$0xff] }
  0xaf   :  { %4387 = vmatpush1.bf16.msra.mxu0 %v4386_v20  ;;  %v645_v60 = vld [vmem:[#allocation8 + $0x340] sm:$0xff]  ;;  %v662_v1 = vld [vmem:[#allocation8 + $0x3c8] sm:$0xff]  ;;  %v640_v2 = vld [vmem:[#allocation8 + $0x318] sm:$0xff]  ;;  %v4654_v5 = vpack.c.bf16 %v631_v62, %v623_v57 }
  0xb0   :  { %4389 = vmatprep.subr.bf16.mxu0 %v4388_v23  ;;  %v648_v3 = vld [vmem:[#allocation8 + $0x358] sm:$0xff]  ;;  %v4402_v4 = vpack.c.bf16 %v645_v60, %v637_v59  ;;  %v639_v6 = vld [vmem:[#allocation8 + $0x310] sm:$0xff]  ;;  %v4404_v7 = vpack.c.bf16 %v662_v1, %v654_v63  ;;  %v653_v8 = vld [vmem:[#allocation8 + $0x380] sm:$0xff] }
  0xb1   :  { %4643 = vmatpush1.bf16.msra.mxu1 %v4642_v33  ;;  %v661_v9 = vld [vmem:[#allocation8 + $0x3c0] sm:$0xff]  ;;  %v4656_v10 = vpack.c.bf16 %v648_v3, %v640_v2  ;;  %v647_v11 = vld [vmem:[#allocation8 + $0x350] sm:$0xff]  ;;  %v670_v12 = vld [vmem:[#allocation8 + $0x408] sm:$0xff] }
  0xb2   :  { %4645 = vmatprep.subr.bf16.mxu1 %v4644_v38  ;;  %v678_v13 = vld [vmem:[#allocation8 + $0x448] sm:$0xff]  ;;  %v656_v14 = vld [vmem:[#allocation8 + $0x398] sm:$0xff]  ;;  %v4406_v16 = vpack.c.bf16 %v661_v9, %v653_v8  ;;  %v4658_v17 = vpack.c.bf16 %v647_v11, %v639_v6  ;;  %v655_v18 = vld [vmem:[#allocation8 + $0x390] sm:$0xff] }
  0xb3   :  { %4391 = vmatpush1.bf16.msra.mxu0 %v4390_v32  ;;  %v664_v15 = vld [vmem:[#allocation8 + $0x3d8] sm:$0xff]  ;;  %v4408_v19 = vpack.c.bf16 %v678_v13, %v670_v12  ;;  %v669_v20 = vld [vmem:[#allocation8 + $0x400] sm:$0xff]  ;;  %v663_v23 = vld [vmem:[#allocation8 + $0x3d0] sm:$0xff] }
  0xb4   :  { %4393 = vmatprep.subr.bf16.mxu0 %v4392_v35  ;;  %v677_v21 = vld [vmem:[#allocation8 + $0x440] sm:$0xff]  ;;  %v4660_v22 = vpack.c.bf16 %v664_v15, %v656_v14  ;;  %v686_v24 = vld [vmem:[#allocation8 + $0x488] sm:$0xff]  ;;  %v672_v26 = vld [vmem:[#allocation8 + $0x418] sm:$0xff]  ;;  %v4662_v29 = vpack.c.bf16 %v663_v23, %v655_v18 }
  0xb5   :  { %4647 = vmatpush1.bf16.msra.mxu1 %v4646_v44  ;;  %v694_v25 = vld [vmem:[#allocation8 + $0x4c8] sm:$0xff]  ;;  %v680_v27 = vld [vmem:[#allocation8 + $0x458] sm:$0xff]  ;;  %v4410_v28 = vpack.c.bf16 %v677_v21, %v669_v20  ;;  %v671_v30 = vld [vmem:[#allocation8 + $0x410] sm:$0xff] }
  0xb6   :  { %4649 = vmatprep.subr.bf16.mxu1 %v4648_v49  ;;  %v4412_v31 = vpack.c.bf16 %v694_v25, %v686_v24  ;;  %v685_v32 = vld [vmem:[#allocation8 + $0x480] sm:$0xff]  ;;  %v4664_v34 = vpack.c.bf16 %v680_v27, %v672_v26  ;;  %v679_v35 = vld [vmem:[#allocation8 + $0x450] sm:$0xff]  ;;  %v702_v36 = vld [vmem:[#allocation8 + $0x508] sm:$0xff] }
  0xb7   :  { %4395 = vmatpush1.bf16.msra.mxu0 %v4394_v43  ;;  %v693_v33 = vld [vmem:[#allocation8 + $0x4c0] sm:$0xff]  ;;  %v710_v37 = vld [vmem:[#allocation8 + $0x548] sm:$0xff]  ;;  %v688_v38 = vld [vmem:[#allocation8 + $0x498] sm:$0xff]  ;;  %v4666_v41 = vpack.c.bf16 %v679_v35, %v671_v30 }
  0xb8   :  { %4397 = vmatprep.subr.bf16.mxu0 %v4396_v46  ;;  %v696_v39 = vld [vmem:[#allocation8 + $0x4d8] sm:$0xff]  ;;  %v4414_v40 = vpack.c.bf16 %v693_v33, %v685_v32  ;;  %v687_v0 = vld [vmem:[#allocation8 + $0x490] sm:$0xff]  ;;  %v4416_v42 = vpack.c.bf16 %v710_v37, %v702_v36  ;;  %v701_v43 = vld [vmem:[#allocation8 + $0x500] sm:$0xff] }
  0xb9   :  { %4651 = vmatpush1.bf16.msra.mxu1 %v4650_v56  ;;  %v709_v44 = vld [vmem:[#allocation8 + $0x540] sm:$0xff]  ;;  %v4668_v45 = vpack.c.bf16 %v696_v39, %v688_v38  ;;  %v695_v46 = vld [vmem:[#allocation8 + $0x4d0] sm:$0xff]  ;;  %v718_v47 = vld [vmem:[#allocation8 + $0x588] sm:$0xff] }
  0xba   :  { %4653 = vmatprep.subr.bf16.mxu1 %v4652_v61  ;;  %v726_v48 = vld [vmem:[#allocation8 + $0x5c8] sm:$0xff]  ;;  %v704_v49 = vld [vmem:[#allocation8 + $0x518] sm:$0xff]  ;;  %v4418_v51 = vpack.c.bf16 %v709_v44, %v701_v43  ;;  %v4670_v52 = vpack.c.bf16 %v695_v46, %v687_v0  ;;  %v703_v53 = vld [vmem:[#allocation8 + $0x510] sm:$0xff] }
  0xbb   :  { %4399 = vmatpush1.bf16.msra.mxu0 %v4398_v55  ;;  %v712_v50 = vld [vmem:[#allocation8 + $0x558] sm:$0xff]  ;;  %v4420_v54 = vpack.c.bf16 %v726_v48, %v718_v47  ;;  %v717_v55 = vld [vmem:[#allocation8 + $0x580] sm:$0xff]  ;;  %v734_v59 = vld [vmem:[#allocation8 + $0x608] sm:$0xff] }
  0xbc   :  { %4401 = vmatprep.subr.bf16.mxu0 %v4400_v58  ;;  %v725_v56 = vld [vmem:[#allocation8 + $0x5c0] sm:$0xff]  ;;  %v4672_v57 = vpack.c.bf16 %v712_v50, %v704_v49  ;;  %v711_v58 = vld [vmem:[#allocation8 + $0x550] sm:$0xff]  ;;  %v742_v60 = vld [vmem:[#allocation8 + $0x648] sm:$0xff] }
  0xbd   :  { %4655 = vmatpush1.bf16.msra.mxu1 %v4654_v5  ;;  %v720_v61 = vld [vmem:[#allocation8 + $0x598] sm:$0xff]  ;;  %v4422_v63 = vpack.c.bf16 %v725_v56, %v717_v55  ;;  %v4674_v1 = vpack.c.bf16 %v711_v58, %v703_v53  ;;  %v719_v2 = vld [vmem:[#allocation8 + $0x590] sm:$0xff]  ;;  %v4424_v3 = vpack.c.bf16 %v742_v60, %v734_v59  ;;  %v741_v5 = vld [vmem:[#allocation8 + $0x640] sm:$0xff] }
  0xbe   :  { %4657 = vmatprep.subr.bf16.mxu1 %v4656_v10  ;;  %v728_v62 = vld [vmem:[#allocation8 + $0x5d8] sm:$0xff]  ;;  %v750_v8 = vld [vmem:[#allocation8 + $0x688] sm:$0xff]  ;;  %v735_v14 = vld [vmem:[#allocation8 + $0x610] sm:$0xff] }
  0xbf   :  { %4403 = vmatpush1.bf16.msra.mxu0 %v4402_v4  ;;  %v733_v4 = vld [vmem:[#allocation8 + $0x600] sm:$0xff]  ;;  %v4676_v6 = vpack.c.bf16 %v728_v62, %v720_v61  ;;  %v758_v9 = vld [vmem:[#allocation8 + $0x6c8] sm:$0xff]  ;;  %v736_v10 = vld [vmem:[#allocation8 + $0x618] sm:$0xff] }
  0xc0   :  { %4405 = vmatprep.subr.bf16.mxu0 %v4404_v7  ;;  %v727_v7 = vld [vmem:[#allocation8 + $0x5d0] sm:$0xff]  ;;  %v744_v11 = vld [vmem:[#allocation8 + $0x658] sm:$0xff]  ;;  %v4426_v12 = vpack.c.bf16 %v741_v5, %v733_v4  ;;  %v4428_v15 = vpack.c.bf16 %v758_v9, %v750_v8  ;;  %v766_v20 = vld [vmem:[#allocation8 + $0x708] sm:$0xff] }
  0xc1   :  { %4659 = vmatpush1.bf16.msra.mxu1 %v4658_v17  ;;  %v4678_v13 = vpack.c.bf16 %v727_v7, %v719_v2  ;;  %v757_v17 = vld [vmem:[#allocation8 + $0x6c0] sm:$0xff]  ;;  %v4680_v18 = vpack.c.bf16 %v744_v11, %v736_v10  ;;  %v774_v21 = vld [vmem:[#allocation8 + $0x748] sm:$0xff]  ;;  %v760_v23 = vld [vmem:[#allocation8 + $0x6d8] sm:$0xff] }
  0xc2   :  { %4661 = vmatprep.subr.bf16.mxu1 %v4660_v22  ;;  %v752_v22 = vld [vmem:[#allocation8 + $0x698] sm:$0xff]  ;;  %v4432_v26 = vpack.c.bf16 %v774_v21, %v766_v20  ;;  %v765_v27 = vld [vmem:[#allocation8 + $0x700] sm:$0xff]  ;;  %v751_v30 = vld [vmem:[#allocation8 + $0x690] sm:$0xff] }
  0xc3   :  { %4407 = vmatpush1.bf16.msra.mxu0 %v4406_v16  ;;  %v749_v16 = vld [vmem:[#allocation8 + $0x680] sm:$0xff]  ;;  %v768_v32 = vld [vmem:[#allocation8 + $0x718] sm:$0xff]  ;;  %v767_v37 = vld [vmem:[#allocation8 + $0x710] sm:$0xff] }
  0xc4   :  { %4409 = vmatprep.subr.bf16.mxu0 %v4408_v19  ;;  %v743_v19 = vld [vmem:[#allocation8 + $0x650] sm:$0xff]  ;;  %v4430_v24 = vpack.c.bf16 %v757_v17, %v749_v16  ;;  %v776_v33 = vld [vmem:[#allocation8 + $0x758] sm:$0xff]  ;;  %v781_v44 = vld [vmem:[#allocation8 + $0x780] sm:$0xff] }
  0xc5   :  { %4663 = vmatpush1.bf16.msra.mxu1 %v4662_v29  ;;  %v4682_v25 = vpack.c.bf16 %v743_v19, %v735_v14  ;;  %v4684_v29 = vpack.c.bf16 %v760_v23, %v752_v22  ;;  %v4688_v36 = vpack.c.bf16 %v776_v33, %v768_v32  ;;  %v775_v38 = vld [vmem:[#allocation8 + $0x750] sm:$0xff]  ;;  %v784_v0 = vld [vmem:[#allocation8 + $0x798] sm:$0xff]  ;;  %v805_v4 = vld [vmem:[#allocation8 + $0x840] sm:$0xff] }
  0xc6   :  { %4665 = vmatprep.subr.bf16.mxu1 %v4664_v34  ;;  %v4690_v39 = vpack.c.bf16 %v775_v38, %v767_v37  ;;  %v792_v43 = vld [vmem:[#allocation8 + $0x7d8] sm:$0xff]  ;;  %v783_v48 = vld [vmem:[#allocation8 + $0x790] sm:$0xff]  ;;  %v814_v9 = vld [vmem:[#allocation8 + $0x888] sm:$0xff] }
  0xc7   :  { %4411 = vmatpush1.bf16.msra.mxu0 %v4410_v28  ;;  %v773_v28 = vld [vmem:[#allocation8 + $0x740] sm:$0xff]  ;;  %v4692_v46 = vpack.c.bf16 %v792_v43, %v784_v0  ;;  %v791_v49 = vld [vmem:[#allocation8 + $0x7d0] sm:$0xff]  ;;  %v800_v53 = vld [vmem:[#allocation8 + $0x818] sm:$0xff] }
  0xc8   :  { %4413 = vmatprep.subr.bf16.mxu0 %v4412_v31  ;;  %v759_v31 = vld [vmem:[#allocation8 + $0x6d0] sm:$0xff]  ;;  %v4434_v34 = vpack.c.bf16 %v773_v28, %v765_v27  ;;  %v4694_v50 = vpack.c.bf16 %v791_v49, %v783_v48  ;;  %v808_v55 = vld [vmem:[#allocation8 + $0x858] sm:$0xff]  ;;  %v822_v11 = vld [vmem:[#allocation8 + $0x8c8] sm:$0xff] }
  0xc9   :  { %4667 = vmatpush1.bf16.msra.mxu1 %v4666_v41  ;;  %v4686_v35 = vpack.c.bf16 %v759_v31, %v751_v30  ;;  %v790_v41 = vld [vmem:[#allocation8 + $0x7c8] sm:$0xff]  ;;  %v4696_v56 = vpack.c.bf16 %v808_v55, %v800_v53  ;;  %v6499_v60 = vld [vmem:[#allocation7] sm:$0xff]  ;;  %v799_v7 = vld [vmem:[#allocation8 + $0x810] sm:$0xff] }
  0xca   :  { %4669 = vmatprep.subr.bf16.mxu1 %v4668_v45  ;;  %v789_v45 = vld [vmem:[#allocation8 + $0x7c0] sm:$0xff]  ;;  %v807_v8 = vld [vmem:[#allocation8 + $0x850] sm:$0xff]  ;;  %v830_v28 = vld [vmem:[#allocation8 + $0x908] sm:$0xff] }
  0xcb   :  { %4415 = vmatpush1.bf16.msra.mxu0 %v4414_v40  ;;  %v782_v40 = vld [vmem:[#allocation8 + $0x788] sm:$0xff]  ;;  %v4438_v47 = vpack.c.bf16 %v789_v45, %v781_v44  ;;  %v813_v19 = vld [vmem:[#allocation8 + $0x880] sm:$0xff]  ;;  %v823_v27 = vld [vmem:[#allocation8 + $0x8d0] sm:$0xff] }
  0xcc   :  { %4417 = vmatprep.subr.bf16.mxu0 %v4416_v42  ;;  %v4436_v42 = vpack.c.bf16 %v790_v41, %v782_v40  ;;  %v821_v20 = vld [vmem:[#allocation8 + $0x8c0] sm:$0xff]  ;;  %v838_v31 = vld [vmem:[#allocation8 + $0x948] sm:$0xff]  ;;  %v832_v32 = vld [vmem:[#allocation8 + $0x918] sm:$0xff] }
  0xcd   :  { %4671 = vmatpush1.bf16.msra.mxu1 %v4670_v52  ;;  %v806_v52 = vld [vmem:[#allocation8 + $0x848] sm:$0xff]  ;;  %v840_v33 = vld [vmem:[#allocation8 + $0x958] sm:$0xff]  ;;  %v4446_v38 = vpack.c.bf16 %v821_v20, %v813_v19  ;;  %v829_v40 = vld [vmem:[#allocation8 + $0x900] sm:$0xff]  ;;  %v4448_v44 = vpack.c.bf16 %v838_v31, %v830_v28 }
  0xce   :  { %4673 = vmatprep.subr.bf16.mxu1 %v4672_v57  ;;  %v170_v57 = vlaneseq  ;;  %v837_v41 = vld [vmem:[#allocation8 + $0x940] sm:$0xff]  ;;  %v4704_v45 = vpack.c.bf16 %v840_v33, %v832_v32  ;;  %v846_v48 = vld [vmem:[#allocation8 + $0x988] sm:$0xff]  ;;  %v887_v31 = vld [vmem:[#allocation8 + $0xad0] sm:$0xff] }
  0xcf   :  { %4419 = vmatpush1.bf16.msra.mxu0 %v4418_v51  ;;  %v798_v51 = vld [vmem:[#allocation8 + $0x808] sm:$0xff] }
  0xd0   :  { %4421 = vmatprep.subr.bf16.mxu0 %v4420_v54  ;;  %v4440_v54 = vpack.c.bf16 %v806_v52, %v798_v51  ;;  %v6494_v58 = vshrl.u32 %v170_v57, 7  ;;  %v848_v51 = vld [vmem:[#allocation8 + $0x998] sm:$0xff]  ;;  %v853_v57 = vld [vmem:[#allocation8 + $0x9c0] sm:$0xff]  ;;  %v878_v19 = vld [vmem:[#allocation8 + $0xa88] sm:$0xff] }
  0xd1   :  { %4675 = vmatpush1.bf16.msra.mxu1 %v4674_v1  ;;  %v856_v52 = vld [vmem:[#allocation8 + $0x9d8] sm:$0xff]  ;;  %v886_v20 = vld [vmem:[#allocation8 + $0xac8] sm:$0xff] }
  0xd2   :  { %4677 = vmatprep.subr.bf16.mxu1 %v4676_v6  ;;  %v6497_v59 = vsub.s32 0, %v6494_v58  ;;  %v6502_v61 = vsub.s32 1, %v6494_v58  ;;  %v6509_v1 = vsub.s32 3, %v6494_v58  ;;  %v4460_v28 = vpack.c.bf16 %v886_v20, %v878_v19  ;;  %v894_v32 = vld [vmem:[#allocation8 + $0xb08] sm:$0xff] }
  0xd3   :  { %4423 = vmatpush1.bf16.msra.mxu0 %v4422_v63  ;;  %v902_v33 = vld [vmem:[#allocation8 + $0xb48] sm:$0xff] }
  0xd4   :  { %4425 = vmatprep.subr.bf16.mxu0 %v4424_v3  ;;  %v173_v62 = vrot.slane %v6499_v60, %v6497_v59  ;;  %v177_v63 = vrot.slane %v6499_v60, %v6502_v61  ;;  %v797_v3 = vld [vmem:[#allocation8 + $0x800] sm:$0xff]  ;;  %v6513_v14 = vrot.slane %v6499_v60, %v6509_v1  ;;  %v942_v19 = vld [vmem:[#allocation8 + $0xc88] sm:$0xff] }
  0xd5   :  { %4679 = vmatpush1.bf16.msra.mxu1 %v4678_v13  ;;  %v824_v13 = vld [vmem:[#allocation8 + $0x8d8] sm:$0xff]  ;;  %v4442_v17 = vpack.c.bf16 %v805_v4, %v797_v3  ;;  %v855_v3 = vld [vmem:[#allocation8 + $0x9d0] sm:$0xff]  ;;  %v862_v4 = vld [vmem:[#allocation8 + $0xa08] sm:$0xff] }
  0xd6   :  { %4681 = vmatprep.subr.bf16.mxu1 %v4680_v18  ;;  %v4698_v18 = vpack.c.bf16 %v807_v8, %v799_v7  ;;  %v872_v7 = vld [vmem:[#allocation8 + $0xa58] sm:$0xff]  ;;  %v950_v20 = vld [vmem:[#allocation8 + $0xcc8] sm:$0xff] }
  0xd7   :  { %4427 = vmatpush1.bf16.msra.mxu0 %v4426_v12  ;;  %v816_v12 = vld [vmem:[#allocation8 + $0x898] sm:$0xff] }
  0xd8   :  { %4429 = vmatprep.subr.bf16.mxu0 %v4428_v15 }
  0xd9   :  { %4683 = vmatpush1.bf16.msra.mxu1 %v4682_v25  ;;  %v4700_v25 = vpack.c.bf16 %v824_v13, %v816_v12 }
  0xda   :  { %4685 = vmatprep.subr.bf16.mxu1 %v4684_v29 }
  0xdb   :  { %4431 = vmatpush1.bf16.msra.mxu0 %v4430_v24  ;;  %v4444_v24 = vpack.c.bf16 %v822_v11, %v814_v9  ;;  %v869_v11 = vld [vmem:[#allocation8 + $0xa40] sm:$0xff] }
  0xdc   :  { %4433 = vmatprep.subr.bf16.mxu0 %v4432_v26  ;;  %v815_v26 = vld [vmem:[#allocation8 + $0x890] sm:$0xff] }
  0xdd   :  { %4687 = vmatpush1.bf16.msra.mxu1 %v4686_v35 }
  0xde   :  { %4689 = vmatprep.subr.bf16.mxu1 %v4688_v36 }
  0xdf   :  { %4435 = vmatpush1.bf16.msra.mxu0 %v4434_v34 }
  0xe0   :  { %4437 = vmatprep.subr.bf16.mxu0 %v4436_v42 }
  0xe1   :  { %4691 = vmatpush1.bf16.msra.mxu1 %v4690_v39  ;;  %v4702_v39 = vpack.c.bf16 %v823_v27, %v815_v26  ;;  %v877_v26 = vld [vmem:[#allocation8 + $0xa80] sm:$0xff] }
  0xe2   :  { %4693 = vmatprep.subr.bf16.mxu1 %v4692_v46  ;;  %v831_v46 = vld [vmem:[#allocation8 + $0x910] sm:$0xff]  ;;  %v885_v27 = vld [vmem:[#allocation8 + $0xac0] sm:$0xff] }
  0xe3   :  { %4439 = vmatpush1.bf16.msra.mxu0 %v4438_v47  ;;  %v839_v47 = vld [vmem:[#allocation8 + $0x950] sm:$0xff] }
  0xe4   :  { %4441 = vmatprep.subr.bf16.mxu0 %v4440_v54  ;;  %v4450_v54 = vpack.c.bf16 %v837_v41, %v829_v40  ;;  %v4706_v55 = vpack.c.bf16 %v839_v47, %v831_v46  ;;  %v893_v40 = vld [vmem:[#allocation8 + $0xb00] sm:$0xff]  ;;  %v895_v46 = vld [vmem:[#allocation8 + $0xb10] sm:$0xff] }
  0xe5   :  { %4695 = vmatpush1.bf16.msra.mxu1 %v4694_v50  ;;  %v854_v50 = vld [vmem:[#allocation8 + $0x9c8] sm:$0xff]  ;;  %v901_v41 = vld [vmem:[#allocation8 + $0xb40] sm:$0xff]  ;;  %v903_v47 = vld [vmem:[#allocation8 + $0xb50] sm:$0xff] }
  0xe6   :  { %4697 = vmatprep.subr.bf16.mxu1 %v4696_v56  ;;  %v845_v56 = vld [vmem:[#allocation8 + $0x980] sm:$0xff] }
  0xe7   :  { %v4454_v8 = vpack.c.bf16 %v853_v57, %v845_v56  ;;  %v909_v56 = vld [vmem:[#allocation8 + $0xb80] sm:$0xff] }
  0xe8   :  { %v917_v57 = vld [vmem:[#allocation8 + $0xbc0] sm:$0xff] }
 0x171   :  { %v283_v2 = vpop.f32.mrb[0].mxu0 }
 0x172   :  { %v284_v5 = vadd.f32 %v283_v2, %v173_v62  ;;  %v285_v6 = vpop.f32.mrb[1].mxu0  ;;  %v847_v2 = vld [vmem:[#allocation8 + $0x990] sm:$0xff] }
 0x173   :  { %v286_v10 = vadd.f32 %v285_v6, %v177_v63  ;;  %v6515_v15 = vpop.f32.mrb[0].mxu1  ;;  %v864_v6 = vld [vmem:[#allocation8 + $0xa18] sm:$0xff]  ;;  %v4710_v9 = vpack.c.bf16 %v855_v3, %v847_v2  ;;  %v911_v2 = vld [vmem:[#allocation8 + $0xb90] sm:$0xff] }
 0x174   :  { %v362_v22 = vpop.f32.mrb[1].mxu1  ;;  %v6519_v23 = vmax.f32 %v284_v5, 0.0  ;;  %v870_v5 = vld [vmem:[#allocation8 + $0xa48] sm:$0xff]  ;;  %v4712_v13 = vpack.c.bf16 %v872_v7, %v864_v6  ;;  %v919_v3 = vld [vmem:[#allocation8 + $0xbd0] sm:$0xff]  ;;  %v928_v6 = vld [vmem:[#allocation8 + $0xc18] sm:$0xff] }
 0x175   :  { %v6517_v16 = vmax.f32 %v286_v10, 0.0  ;;  %v289_v21 = vpop.f32.mrb[2].mxu0  ;;  %v363_v35 = vadd.f32 %v362_v22, %v6513_v14  ;;  %v861_v10 = vld [vmem:[#allocation8 + $0xa00] sm:$0xff]  ;;  %v4456_v12 = vpack.c.bf16 %v870_v5, %v862_v4  ;;  %v888_v22 = vld [vmem:[#allocation8 + $0xad8] sm:$0xff]  ;;  %v926_v4 = vld [vmem:[#allocation8 + $0xc08] sm:$0xff] }
 0x176   :  { %v290_v29 = vadd.f32 %v289_v21, %v173_v62  ;;  %v291_v30 = vpop.f32.mrb[3].mxu0  ;;  %v4452_v62 = vpack.c.bf16 %v854_v50, %v846_v48  ;;  %v880_v21 = vld [vmem:[#allocation8 + $0xa98] sm:$0xff]  ;;  %v910_v48 = vld [vmem:[#allocation8 + $0xb88] sm:$0xff] }
 0x177   :  { %1671 = vmatprep.mubr.f32.mxu0 %v6517_v16  ;;  %1979 = vmatprep.mubr.f32.mxu1 %v6517_v16  ;;  %v292_v34 = vadd.f32 %v291_v30, %v177_v63  ;;  %v6528_v37 = vpop.f32.mrb[2].mxu1  ;;  %v6538_v53 = vmax.f32 %v363_v35, 0.0  ;;  %v4708_v63 = vpack.c.bf16 %v856_v52, %v848_v51  ;;  %v879_v30 = vld [vmem:[#allocation8 + $0xa90] sm:$0xff]  ;;  %v904_v35 = vld [vmem:[#allocation8 + $0xb58] sm:$0xff]  ;;  %v918_v50 = vld [vmem:[#allocation8 + $0xbc8] sm:$0xff] }
 0x178   :  { %1672 = vmatmul.mubr.f32.vlgmr.msra.gmra.mrb[8].mxu0 %v6519_v23  ;;  %1980 = vmatmul.mubr.f32.vlgmr.msra.gmra.mrb[8].mxu1 %v6519_v23  ;;  %v6526_v36 = vmax.f32 %v290_v29, 0.0  ;;  %v6532_v42 = vpop.f32.mrb[3].mxu1  ;;  %v4716_v29 = vpack.c.bf16 %v888_v22, %v880_v21  ;;  %v912_v51 = vld [vmem:[#allocation8 + $0xb98] sm:$0xff]  ;;  %v934_v5 = vld [vmem:[#allocation8 + $0xc48] sm:$0xff] }
 0x179   :  { %4443 = vmatpush1.bf16.msra.mxu0 %v4442_v17  ;;  %4699 = vmatpush1.bf16.msra.mxu1 %v4698_v18  ;;  %v6530_v0 = vmax.f32 %v292_v34, 0.0  ;;  %v6534_v43 = vpop.f32.mrb[4].mxu0  ;;  %v863_v17 = vld [vmem:[#allocation8 + $0xa10] sm:$0xff]  ;;  %v896_v34 = vld [vmem:[#allocation8 + $0xb18] sm:$0xff] }
 0x17a   :  { %4445 = vmatprep.subr.bf16.mxu0 %v4444_v24  ;;  %4701 = vmatprep.subr.bf16.mxu1 %v4700_v25  ;;  %v6536_v49 = vpop.f32.mrb[5].mxu0  ;;  %v871_v18 = vld [vmem:[#allocation8 + $0xa50] sm:$0xff]  ;;  %v4458_v24 = vpack.c.bf16 %v869_v11, %v861_v10  ;;  %v920_v52 = vld [vmem:[#allocation8 + $0xbd8] sm:$0xff]  ;;  %v925_v10 = vld [vmem:[#allocation8 + $0xc00] sm:$0xff] }
 0x17b   :  { %1677 = vmatprep.mubr.f32.mxu0 %v6530_v0  ;;  %1985 = vmatprep.mubr.f32.mxu1 %v6530_v0  ;;  %v4714_v25 = vpack.c.bf16 %v871_v18, %v863_v17  ;;  %v936_v7 = vld [vmem:[#allocation8 + $0xc58] sm:$0xff]  ;;  %v933_v11 = vld [vmem:[#allocation8 + $0xc40] sm:$0xff]  ;;  %v927_v17 = vld [vmem:[#allocation8 + $0xc10] sm:$0xff] }
 0x17c   :  { %1678 = vmatmul.mubr.f32.gmra.mrb[10].mxu0 %v6526_v36  ;;  %1986 = vmatmul.mubr.f32.gmra.mrb[10].mxu1 %v6526_v36  ;;  %v935_v18 = vld [vmem:[#allocation8 + $0xc50] sm:$0xff]  ;;  %v944_v21 = vld [vmem:[#allocation8 + $0xc98] sm:$0xff] }
 0x17d   :  { %4447 = vmatpush1.bf16.msra.mxu0 %v4446_v38  ;;  %4703 = vmatpush1.bf16.msra.mxu1 %v4702_v39  ;;  %v4462_v38 = vpack.c.bf16 %v885_v27, %v877_v26  ;;  %v4718_v39 = vpack.c.bf16 %v887_v31, %v879_v30  ;;  %v952_v22 = vld [vmem:[#allocation8 + $0xcd8] sm:$0xff]  ;;  %v941_v26 = vld [vmem:[#allocation8 + $0xc80] sm:$0xff]  ;;  %v943_v30 = vld [vmem:[#allocation8 + $0xc90] sm:$0xff] }
 0x17e   :  { %4449 = vmatprep.subr.bf16.mxu0 %v4448_v44  ;;  %4705 = vmatprep.subr.bf16.mxu1 %v4704_v45  ;;  %v4464_v44 = vpack.c.bf16 %v902_v33, %v894_v32  ;;  %v4720_v45 = vpack.c.bf16 %v904_v35, %v896_v34  ;;  %v949_v27 = vld [vmem:[#allocation8 + $0xcc0] sm:$0xff]  ;;  %v951_v31 = vld [vmem:[#allocation8 + $0xcd0] sm:$0xff]  ;;  %v958_v32 = vld [vmem:[#allocation8 + $0xd08] sm:$0xff] }
 0x17f   :  { %1748 = vmatprep.mubr.f32.mxu0 %v6538_v53  ;;  %2056 = vmatprep.mubr.f32.mxu1 %v6538_v53  ;;  %v966_v33 = vld [vmem:[#allocation8 + $0xd48] sm:$0xff]  ;;  %v960_v34 = vld [vmem:[#allocation8 + $0xd18] sm:$0xff] }
 0x180   :  { %v968_v35 = vld [vmem:[#allocation8 + $0xd58] sm:$0xff] }
 0x181   :  { %4451 = vmatpush1.bf16.msra.mxu0 %v4450_v54  ;;  %4707 = vmatpush1.bf16.msra.mxu1 %v4706_v55  ;;  %v4466_v54 = vpack.c.bf16 %v901_v41, %v893_v40  ;;  %v4722_v55 = vpack.c.bf16 %v903_v47, %v895_v46  ;;  %v957_v40 = vld [vmem:[#allocation8 + $0xd00] sm:$0xff]  ;;  %v959_v46 = vld [vmem:[#allocation8 + $0xd10] sm:$0xff] }
 0x182   :  { %4453 = vmatprep.subr.bf16.mxu0 %v4452_v62  ;;  %4709 = vmatprep.subr.bf16.mxu1 %v4708_v63  ;;  %v4468_v62 = vpack.c.bf16 %v918_v50, %v910_v48  ;;  %v4724_v63 = vpack.c.bf16 %v920_v52, %v912_v51  ;;  %v965_v41 = vld [vmem:[#allocation8 + $0xd40] sm:$0xff]  ;;  %v967_v47 = vld [vmem:[#allocation8 + $0xd50] sm:$0xff]  ;;  %v974_v48 = vld [vmem:[#allocation8 + $0xd88] sm:$0xff] }
 0x183   :  { %v982_v50 = vld [vmem:[#allocation8 + $0xdc8] sm:$0xff]  ;;  %v976_v51 = vld [vmem:[#allocation8 + $0xd98] sm:$0xff] }
 0x184   :  { %v984_v52 = vld [vmem:[#allocation8 + $0xdd8] sm:$0xff] }
 0x185   :  { %4455 = vmatpush1.bf16.msra.mxu0 %v4454_v8  ;;  %4711 = vmatpush1.bf16.msra.mxu1 %v4710_v9  ;;  %v4470_v8 = vpack.c.bf16 %v917_v57, %v909_v56  ;;  %v4726_v9 = vpack.c.bf16 %v919_v3, %v911_v2  ;;  %v973_v56 = vld [vmem:[#allocation8 + $0xd80] sm:$0xff]  ;;  %v975_v2 = vld [vmem:[#allocation8 + $0xd90] sm:$0xff] }
 0x186   :  { %4457 = vmatprep.subr.bf16.mxu0 %v4456_v12  ;;  %4713 = vmatprep.subr.bf16.mxu1 %v4712_v13  ;;  %v4472_v12 = vpack.c.bf16 %v934_v5, %v926_v4  ;;  %v4728_v13 = vpack.c.bf16 %v936_v7, %v928_v6  ;;  %v981_v57 = vld [vmem:[#allocation8 + $0xdc0] sm:$0xff]  ;;  %v983_v3 = vld [vmem:[#allocation8 + $0xdd0] sm:$0xff]  ;;  %v990_v4 = vld [vmem:[#allocation8 + $0xe08] sm:$0xff] }
 0x187   :  { %v998_v5 = vld [vmem:[#allocation8 + $0xe48] sm:$0xff]  ;;  %v992_v6 = vld [vmem:[#allocation8 + $0xe18] sm:$0xff] }
 0x188   :  { %v1000_v7 = vld [vmem:[#allocation8 + $0xe58] sm:$0xff] }
 0x189   :  { %4459 = vmatpush1.bf16.msra.mxu0 %v4458_v24  ;;  %4715 = vmatpush1.bf16.msra.mxu1 %v4714_v25  ;;  %v4474_v24 = vpack.c.bf16 %v933_v11, %v925_v10  ;;  %v4730_v25 = vpack.c.bf16 %v935_v18, %v927_v17  ;;  %v989_v10 = vld [vmem:[#allocation8 + $0xe00] sm:$0xff]  ;;  %v4744_v17 = vpack.c.bf16 %v1000_v7, %v992_v6  ;;  %v991_v18 = vld [vmem:[#allocation8 + $0xe10] sm:$0xff] }
 0x18a   :  { %4461 = vmatprep.subr.bf16.mxu0 %v4460_v28  ;;  %4717 = vmatprep.subr.bf16.mxu1 %v4716_v29  ;;  %v4476_v28 = vpack.c.bf16 %v950_v20, %v942_v19  ;;  %v4732_v29 = vpack.c.bf16 %v952_v22, %v944_v21  ;;  %v997_v11 = vld [vmem:[#allocation8 + $0xe40] sm:$0xff]  ;;  %v999_v19 = vld [vmem:[#allocation8 + $0xe50] sm:$0xff]  ;;  %v1006_v20 = vld [vmem:[#allocation8 + $0xe88] sm:$0xff] }
 0x18b   :  { %v1014_v22 = vld [vmem:[#allocation8 + $0xec8] sm:$0xff] }
 0x18d   :  { %4463 = vmatpush1.bf16.msra.mxu0 %v4462_v38  ;;  %4719 = vmatpush1.bf16.msra.mxu1 %v4718_v39  ;;  %v4478_v38 = vpack.c.bf16 %v949_v27, %v941_v26  ;;  %v4734_v39 = vpack.c.bf16 %v951_v31, %v943_v30  ;;  %v4490_v26 = vpack.c.bf16 %v997_v11, %v989_v10  ;;  %v6550_v30 = vpop.f32.mrb[4].mxu1  ;;  %v1054_v10 = vld [vmem:[#allocation8 + $0x1008] sm:$0xff] }
 0x18e   :  { %4465 = vmatprep.subr.bf16.mxu0 %v4464_v44  ;;  %4721 = vmatprep.subr.bf16.mxu1 %v4720_v45  ;;  %v4480_v44 = vpack.c.bf16 %v966_v33, %v958_v32  ;;  %v4736_v45 = vpack.c.bf16 %v968_v35, %v960_v34  ;;  %v4746_v27 = vpack.c.bf16 %v999_v19, %v991_v18  ;;  %v1007_v33 = vld [vmem:[#allocation8 + $0xe90] sm:$0xff]  ;;  %v1022_v35 = vld [vmem:[#allocation8 + $0xf08] sm:$0xff]  ;;  %v192_v18 = vsub.s32 5, %v6494_v58 }
 0x18f   :  { %v4492_v31 = vpack.c.bf16 %v1014_v22, %v1006_v20  ;;  %v1015_v34 = vld [vmem:[#allocation8 + $0xed0] sm:$0xff]  ;;  %v1062_v11 = vld [vmem:[#allocation8 + $0x1048] sm:$0xff] }
 0x191   :  { %4467 = vmatpush1.bf16.msra.mxu0 %v4466_v54  ;;  %4723 = vmatpush1.bf16.msra.mxu1 %v4722_v55  ;;  %v4482_v54 = vpack.c.bf16 %v965_v41, %v957_v40  ;;  %v4738_v55 = vpack.c.bf16 %v967_v47, %v959_v46  ;;  %v1024_v40 = vld [vmem:[#allocation8 + $0xf18] sm:$0xff]  ;;  %v4750_v46 = vpack.c.bf16 %v1015_v34, %v1007_v33  ;;  %v1021_v47 = vld [vmem:[#allocation8 + $0xf00] sm:$0xff]  ;;  %v1078_v33 = vld [vmem:[#allocation8 + $0x10c8] sm:$0xff] }
 0x192   :  { %4469 = vmatprep.subr.bf16.mxu0 %v4468_v62  ;;  %4725 = vmatprep.subr.bf16.mxu1 %v4724_v63  ;;  %v4484_v62 = vpack.c.bf16 %v982_v50, %v974_v48  ;;  %v4740_v63 = vpack.c.bf16 %v984_v52, %v976_v51  ;;  %v1032_v41 = vld [vmem:[#allocation8 + $0xf58] sm:$0xff]  ;;  %v1029_v48 = vld [vmem:[#allocation8 + $0xf40] sm:$0xff]  ;;  %v1023_v52 = vld [vmem:[#allocation8 + $0xf10] sm:$0xff] }
 0x193   :  { %v4752_v51 = vpack.c.bf16 %v1032_v41, %v1024_v40  ;;  %v1072_v34 = vld [vmem:[#allocation8 + $0x1098] sm:$0xff] }
 0x195   :  { %4471 = vmatpush1.bf16.msra.mxu0 %v4470_v8  ;;  %4727 = vmatpush1.bf16.msra.mxu1 %v4726_v9  ;;  %v4486_v8 = vpack.c.bf16 %v981_v57, %v973_v56  ;;  %v4742_v9 = vpack.c.bf16 %v983_v3, %v975_v2  ;;  %v1046_v56 = vld [vmem:[#allocation8 + $0xfc8] sm:$0xff]  ;;  %v1040_v57 = vld [vmem:[#allocation8 + $0xf98] sm:$0xff]  ;;  %v4498_v2 = vpack.c.bf16 %v1029_v48, %v1021_v47  ;;  %v1069_v47 = vld [vmem:[#allocation8 + $0x1080] sm:$0xff] }
 0x196   :  { %4473 = vmatprep.subr.bf16.mxu0 %v4472_v12  ;;  %4729 = vmatprep.subr.bf16.mxu1 %v4728_v13  ;;  %v6546_v12 = vpop.f32.mrb[6].mxu0  ;;  %v4488_v13 = vpack.c.bf16 %v998_v5, %v990_v4  ;;  %v1037_v4 = vld [vmem:[#allocation8 + $0xf80] sm:$0xff] }
 0x197   :  { %v6548_v21 = vpop.f32.mrb[7].mxu0  ;;  %v1045_v5 = vld [vmem:[#allocation8 + $0xfc0] sm:$0xff] }
 0x198   :  { %v4502_v20 = vpack.c.bf16 %v1045_v5, %v1037_v4  ;;  %v1077_v48 = vld [vmem:[#allocation8 + $0x10c0] sm:$0xff] }
 0x199   :  { %4475 = vmatpush1.bf16.msra.mxu0 %v4474_v24  ;;  %4731 = vmatpush1.bf16.msra.mxu1 %v4730_v25  ;;  %v1008_v24 = vld [vmem:[#allocation8 + $0xe98] sm:$0xff]  ;;  %v1093_v4 = vld [vmem:[#allocation8 + $0x1140] sm:$0xff] }
 0x19a   :  { %4477 = vmatprep.subr.bf16.mxu0 %v4476_v28  ;;  %4733 = vmatprep.subr.bf16.mxu1 %v4732_v29  ;;  %v1016_v25 = vld [vmem:[#allocation8 + $0xed8] sm:$0xff]  ;;  %v1005_v28 = vld [vmem:[#allocation8 + $0xe80] sm:$0xff] }
 0x19b   :  { %v1013_v29 = vld [vmem:[#allocation8 + $0xec0] sm:$0xff]  ;;  %v4748_v32 = vpack.c.bf16 %v1016_v25, %v1008_v24 }
 0x19c   :  { %v1053_v24 = vld [vmem:[#allocation8 + $0x1000] sm:$0xff] }
 0x19d   :  { %4479 = vmatpush1.bf16.msra.mxu0 %v4478_v38  ;;  %4735 = vmatpush1.bf16.msra.mxu1 %v4734_v39  ;;  %v6552_v38 = vpop.f32.mrb[5].mxu1  ;;  %v1030_v39 = vld [vmem:[#allocation8 + $0xf48] sm:$0xff]  ;;  %v1061_v25 = vld [vmem:[#allocation8 + $0x1040] sm:$0xff] }
 0x19e   :  { %4481 = vmatprep.subr.bf16.mxu0 %v4480_v44  ;;  %4737 = vmatprep.subr.bf16.mxu1 %v4736_v45  ;;  %v6555_v44 = vsub.s32 2, %v6494_v58  ;;  %v4494_v45 = vpack.c.bf16 %v1013_v29, %v1005_v28  ;;  %v4496_v50 = vpack.c.bf16 %v1030_v39, %v1022_v35  ;;  %v1055_v28 = vld [vmem:[#allocation8 + $0x1010] sm:$0xff]  ;;  %v1080_v35 = vld [vmem:[#allocation8 + $0x10d8] sm:$0xff]  ;;  %v6568_v39 = vrot.slane %v6499_v60, %v192_v18 }
 0x19f   :  { %v1063_v29 = vld [vmem:[#allocation8 + $0x1050] sm:$0xff] }
 0x1a1   :  { %4483 = vmatpush1.bf16.msra.mxu0 %v4482_v54  ;;  %4739 = vmatpush1.bf16.msra.mxu1 %v4738_v55  ;;  %v1031_v54 = vld [vmem:[#allocation8 + $0xf50] sm:$0xff]  ;;  %v1038_v55 = vld [vmem:[#allocation8 + $0xf88] sm:$0xff] }
 0x1a2   :  { %4485 = vmatprep.subr.bf16.mxu0 %v4484_v62  ;;  %4741 = vmatprep.subr.bf16.mxu1 %v4740_v63  ;;  %v1048_v62 = vld [vmem:[#allocation8 + $0xfd8] sm:$0xff]  ;;  %v181_v63 = vrot.slane %v6499_v60, %v6555_v44  ;;  %v4754_v3 = vpack.c.bf16 %v1031_v54, %v1023_v52  ;;  %v4500_v6 = vpack.c.bf16 %v1046_v56, %v1038_v55  ;;  %v1079_v52 = vld [vmem:[#allocation8 + $0x10d0] sm:$0xff]  ;;  %v1086_v60 = vld [vmem:[#allocation8 + $0x1108] sm:$0xff] }
 0x1a3   :  { %v4756_v7 = vpack.c.bf16 %v1048_v62, %v1040_v57  ;;  %v1094_v54 = vld [vmem:[#allocation8 + $0x1148] sm:$0xff]  ;;  %v1088_v55 = vld [vmem:[#allocation8 + $0x1118] sm:$0xff] }
 0x1a4   :  { %v361_v19 = vadd.f32 %v6515_v15, %v181_v63  ;;  %v369_v15 = vadd.f32 %v6532_v42, %v6513_v14  ;;  %v367_v41 = vadd.f32 %v6528_v37, %v181_v63  ;;  %v4764_v42 = vpack.c.bf16 %v1080_v35, %v1072_v34  ;;  %v1096_v56 = vld [vmem:[#allocation8 + $0x1158] sm:$0xff] }
 0x1a5   :  { %4487 = vmatpush1.bf16.msra.mxu0 %v4486_v8  ;;  %4743 = vmatpush1.bf16.msra.mxu1 %v4742_v9  ;;  %v1039_v8 = vld [vmem:[#allocation8 + $0xf90] sm:$0xff]  ;;  %v440_v37 = vadd.f32 %v6536_v49, %v6568_v39  ;;  %v4510_v63 = vpack.c.bf16 %v1077_v48, %v1069_v47  ;;  %v4512_v5 = vpack.c.bf16 %v1094_v54, %v1086_v60  ;;  %v1110_v49 = vld [vmem:[#allocation8 + $0x11c8] sm:$0xff] }
 0x1a6   :  { %4489 = vmatprep.subr.bf16.mxu0 %v4488_v13  ;;  %4745 = vmatprep.subr.bf16.mxu1 %v4744_v17  ;;  %v1047_v9 = vld [vmem:[#allocation8 + $0xfd0] sm:$0xff]  ;;  %v1056_v13 = vld [vmem:[#allocation8 + $0x1018] sm:$0xff]  ;;  %v6570_v40 = vmax.f32 %v361_v19, 0.0  ;;  %v6575_v57 = vmax.f32 %v369_v15, 0.0  ;;  %v6581_v62 = vmax.f32 %v367_v41, 0.0  ;;  %v1117_v15 = vld [vmem:[#allocation8 + $0x1200] sm:$0xff] }
 0x1a7   :  { %v1064_v17 = vld [vmem:[#allocation8 + $0x1058] sm:$0xff]  ;;  %v4758_v22 = vpack.c.bf16 %v1047_v9, %v1039_v8  ;;  %v1095_v8 = vld [vmem:[#allocation8 + $0x1150] sm:$0xff]  ;;  %v1102_v9 = vld [vmem:[#allocation8 + $0x1188] sm:$0xff] }
 0x1a8   :  { %v1125_v41 = vld [vmem:[#allocation8 + $0x1240] sm:$0xff]  ;;  %v1119_v47 = vld [vmem:[#allocation8 + $0x1210] sm:$0xff] }
 0x1a9   :  { %4491 = vmatpush1.bf16.msra.mxu0 %v4490_v26  ;;  %4747 = vmatpush1.bf16.msra.mxu1 %v4746_v27  ;;  %v4504_v26 = vpack.c.bf16 %v1062_v11, %v1054_v10  ;;  %v4760_v27 = vpack.c.bf16 %v1064_v17, %v1056_v13  ;;  %v1104_v10 = vld [vmem:[#allocation8 + $0x1198] sm:$0xff]  ;;  %v6583_v13 = vmax.f32 %v440_v37, 0.0  ;;  %v1127_v48 = vld [vmem:[#allocation8 + $0x1250] sm:$0xff]  ;;  %v4522_v60 = vpack.c.bf16 %v1125_v41, %v1117_v15  ;;  %v1182_v41 = vld [vmem:[#allocation8 + $0x1408] sm:$0xff] }
 0x1aa   :  { %4493 = vmatprep.subr.bf16.mxu0 %v4492_v31  ;;  %4749 = vmatprep.subr.bf16.mxu1 %v4748_v32  ;;  %v1070_v31 = vld [vmem:[#allocation8 + $0x1088] sm:$0xff]  ;;  %v6561_v32 = vpop.f32.mrb[6].mxu1  ;;  %v1112_v11 = vld [vmem:[#allocation8 + $0x11d8] sm:$0xff]  ;;  %v4778_v54 = vpack.c.bf16 %v1127_v48, %v1119_v47  ;;  %v1175_v15 = vld [vmem:[#allocation8 + $0x13d0] sm:$0xff] }
 0x1ab   :  { %v4508_v14 = vpack.c.bf16 %v1078_v33, %v1070_v31  ;;  %v1120_v31 = vld [vmem:[#allocation8 + $0x1218] sm:$0xff] }
 0x1ac   :  { %v1128_v33 = vld [vmem:[#allocation8 + $0x1258] sm:$0xff] }
 0x1ad   :  { %4495 = vmatpush1.bf16.msra.mxu0 %v4494_v45  ;;  %4751 = vmatpush1.bf16.msra.mxu1 %v4750_v46  ;;  %v4506_v45 = vpack.c.bf16 %v1061_v25, %v1053_v24  ;;  %v4762_v46 = vpack.c.bf16 %v1063_v29, %v1055_v28  ;;  %v4516_v24 = vpack.c.bf16 %v1110_v49, %v1102_v9  ;;  %v1118_v28 = vld [vmem:[#allocation8 + $0x1208] sm:$0xff]  ;;  %v1149_v49 = vld [vmem:[#allocation8 + $0x1300] sm:$0xff]  ;;  %v1192_v47 = vld [vmem:[#allocation8 + $0x1458] sm:$0xff] }
 0x1ae   :  { %4497 = vmatprep.subr.bf16.mxu0 %v4496_v50  ;;  %4753 = vmatprep.subr.bf16.mxu1 %v4752_v51  ;;  %v6573_v50 = vpop.f32.mrb[7].mxu1  ;;  %v1071_v51 = vld [vmem:[#allocation8 + $0x1090] sm:$0xff]  ;;  %v4772_v25 = vpack.c.bf16 %v1112_v11, %v1104_v10  ;;  %v1126_v29 = vld [vmem:[#allocation8 + $0x1248] sm:$0xff]  ;;  %v1157_v10 = vld [vmem:[#allocation8 + $0x1340] sm:$0xff] }
 0x1b1   :  { %4499 = vmatpush1.bf16.msra.mxu0 %v4498_v2  ;;  %4755 = vmatpush1.bf16.msra.mxu1 %v4754_v3  ;;  %v4766_v2 = vpack.c.bf16 %v1079_v52, %v1071_v51  ;;  %v1085_v3 = vld [vmem:[#allocation8 + $0x1100] sm:$0xff]  ;;  %v1136_v51 = vld [vmem:[#allocation8 + $0x1298] sm:$0xff] }
 0x1b2   :  { %4501 = vmatprep.subr.bf16.mxu0 %v4500_v6  ;;  %4757 = vmatprep.subr.bf16.mxu1 %v4756_v7  ;;  %v4768_v6 = vpack.c.bf16 %v1096_v56, %v1088_v55  ;;  %v1087_v7 = vld [vmem:[#allocation8 + $0x1110] sm:$0xff]  ;;  %v4514_v17 = vpack.c.bf16 %v1093_v4, %v1085_v3  ;;  %v1144_v52 = vld [vmem:[#allocation8 + $0x12d8] sm:$0xff]  ;;  %v1133_v55 = vld [vmem:[#allocation8 + $0x1280] sm:$0xff] }
 0x1b3   :  { %v4770_v19 = vpack.c.bf16 %v1095_v8, %v1087_v7  ;;  %v1141_v56 = vld [vmem:[#allocation8 + $0x12c0] sm:$0xff]  ;;  %v1143_v3 = vld [vmem:[#allocation8 + $0x12d0] sm:$0xff]  ;;  %v1150_v4 = vld [vmem:[#allocation8 + $0x1308] sm:$0xff] }
 0x1b4   :  { %v1160_v7 = vld [vmem:[#allocation8 + $0x1358] sm:$0xff]  ;;  %v4526_v8 = vpack.c.bf16 %v1141_v56, %v1133_v55  ;;  %v1191_v55 = vld [vmem:[#allocation8 + $0x1450] sm:$0xff]  ;;  %v1198_v56 = vld [vmem:[#allocation8 + $0x1488] sm:$0xff] }
 0x1b5   :  { %4503 = vmatpush1.bf16.msra.mxu0 %v4502_v20  ;;  %4759 = vmatpush1.bf16.msra.mxu1 %v4758_v22  ;;  %v1101_v20 = vld [vmem:[#allocation8 + $0x1180] sm:$0xff] }
 0x1b6   :  { %4505 = vmatprep.subr.bf16.mxu0 %v4504_v26  ;;  %4761 = vmatprep.subr.bf16.mxu1 %v4760_v27  ;;  %v1109_v22 = vld [vmem:[#allocation8 + $0x11c0] sm:$0xff]  ;;  %v1103_v26 = vld [vmem:[#allocation8 + $0x1190] sm:$0xff] }
 0x1b7   :  { %v1111_v27 = vld [vmem:[#allocation8 + $0x11d0] sm:$0xff]  ;;  %v4518_v34 = vpack.c.bf16 %v1109_v22, %v1101_v20  ;;  %v1166_v22 = vld [vmem:[#allocation8 + $0x1388] sm:$0xff] }
 0x1b8   :  { %1749 = vmatmul.mubr.f32.vlgmr.msra.gmra.mrb[8].mxu0 %v6570_v40  ;;  %2057 = vmatmul.mubr.f32.vlgmr.msra.gmra.mrb[8].mxu1 %v6570_v40  ;;  %v4774_v35 = vpack.c.bf16 %v1111_v27, %v1103_v26  ;;  %v1159_v20 = vld [vmem:[#allocation8 + $0x1350] sm:$0xff]  ;;  %v1176_v26 = vld [vmem:[#allocation8 + $0x13d8] sm:$0xff]  ;;  %v4530_v27 = vpack.c.bf16 %v1157_v10, %v1149_v49  ;;  %v1214_v10 = vld [vmem:[#allocation8 + $0x1508] sm:$0xff] }
 0x1b9   :  { %4507 = vmatpush1.bf16.msra.mxu0 %v4506_v45  ;;  %4763 = vmatpush1.bf16.msra.mxu1 %v4762_v46  ;;  %v4520_v45 = vpack.c.bf16 %v1126_v29, %v1118_v28  ;;  %v4776_v46 = vpack.c.bf16 %v1128_v33, %v1120_v31  ;;  %v1165_v29 = vld [vmem:[#allocation8 + $0x1380] sm:$0xff]  ;;  %v1207_v49 = vld [vmem:[#allocation8 + $0x14d0] sm:$0xff] }
 0x1ba   :  { %4509 = vmatprep.subr.bf16.mxu0 %v4508_v14  ;;  %4765 = vmatprep.subr.bf16.mxu1 %v4764_v42  ;;  %v1134_v14 = vld [vmem:[#allocation8 + $0x1288] sm:$0xff]  ;;  %v1173_v31 = vld [vmem:[#allocation8 + $0x13c0] sm:$0xff] }
 0x1bb   :  { %1754 = vmatprep.mubr.f32.mxu0 %v6575_v57  ;;  %2062 = vmatprep.mubr.f32.mxu1 %v6575_v57  ;;  %v1142_v42 = vld [vmem:[#allocation8 + $0x12c8] sm:$0xff]  ;;  %v4534_v48 = vpack.c.bf16 %v1173_v31, %v1165_v29  ;;  %v1223_v29 = vld [vmem:[#allocation8 + $0x1550] sm:$0xff] }
 0x1bc   :  { %1755 = vmatmul.mubr.f32.gmra.mrb[10].mxu0 %v6581_v62  ;;  %2063 = vmatmul.mubr.f32.gmra.mrb[10].mxu1 %v6581_v62  ;;  %v4524_v37 = vpack.c.bf16 %v1142_v42, %v1134_v14  ;;  %v1181_v42 = vld [vmem:[#allocation8 + $0x1400] sm:$0xff]  ;;  %v1230_v31 = vld [vmem:[#allocation8 + $0x1588] sm:$0xff] }
 0x1bd   :  { %4511 = vmatpush1.bf16.msra.mxu0 %v4510_v63  ;;  %4767 = vmatpush1.bf16.msra.mxu1 %v4766_v2  ;;  %v4780_v63 = vpack.c.bf16 %v1144_v52, %v1136_v51  ;;  %v1135_v2 = vld [vmem:[#allocation8 + $0x1290] sm:$0xff]  ;;  %v1189_v51 = vld [vmem:[#allocation8 + $0x1440] sm:$0xff] }
 0x1be   :  { %4513 = vmatprep.subr.bf16.mxu0 %v4512_v5  ;;  %4769 = vmatprep.subr.bf16.mxu1 %v4768_v6  ;;  %v1158_v5 = vld [vmem:[#allocation8 + $0x1348] sm:$0xff]  ;;  %v1152_v6 = vld [vmem:[#allocation8 + $0x1318] sm:$0xff]  ;;  %v4782_v9 = vpack.c.bf16 %v1143_v3, %v1135_v2  ;;  %v4538_v3 = vpack.c.bf16 %v1189_v51, %v1181_v42  ;;  %v1239_v42 = vld [vmem:[#allocation8 + $0x15d0] sm:$0xff] }
 0x1bf   :  { %1825 = vmatprep.mubr.f32.mxu0 %v6583_v13  ;;  %2133 = vmatprep.mubr.f32.mxu1 %v6583_v13  ;;  %v4528_v11 = vpack.c.bf16 %v1158_v5, %v1150_v4  ;;  %v1208_v2 = vld [vmem:[#allocation8 + $0x14d8] sm:$0xff]  ;;  %v1197_v5 = vld [vmem:[#allocation8 + $0x1480] sm:$0xff]  ;;  %v1246_v51 = vld [vmem:[#allocation8 + $0x1608] sm:$0xff] }
 0x1c1   :  { %4515 = vmatpush1.bf16.msra.mxu0 %v4514_v17  ;;  %4771 = vmatpush1.bf16.msra.mxu1 %v4770_v19  ;;  %v4784_v17 = vpack.c.bf16 %v1160_v7, %v1152_v6  ;;  %v1151_v19 = vld [vmem:[#allocation8 + $0x1310] sm:$0xff]  ;;  %v1205_v6 = vld [vmem:[#allocation8 + $0x14c0] sm:$0xff] }
 0x1c2   :  { %4517 = vmatprep.subr.bf16.mxu0 %v4516_v24  ;;  %4773 = vmatprep.subr.bf16.mxu1 %v4772_v25  ;;  %v1174_v24 = vld [vmem:[#allocation8 + $0x13c8] sm:$0xff]  ;;  %v1168_v25 = vld [vmem:[#allocation8 + $0x1398] sm:$0xff]  ;;  %v4786_v28 = vpack.c.bf16 %v1159_v20, %v1151_v19  ;;  %v4542_v20 = vpack.c.bf16 %v1205_v6, %v1197_v5  ;;  %v1255_v5 = vld [vmem:[#allocation8 + $0x1650] sm:$0xff] }
 0x1c3   :  { %v4532_v33 = vpack.c.bf16 %v1174_v24, %v1166_v22  ;;  %v1224_v19 = vld [vmem:[#allocation8 + $0x1558] sm:$0xff]  ;;  %v1213_v24 = vld [vmem:[#allocation8 + $0x1500] sm:$0xff]  ;;  %v1262_v6 = vld [vmem:[#allocation8 + $0x1688] sm:$0xff] }
 0x1c5   :  { %4519 = vmatpush1.bf16.msra.mxu0 %v4518_v34  ;;  %4775 = vmatpush1.bf16.msra.mxu1 %v4774_v35  ;;  %v4788_v34 = vpack.c.bf16 %v1176_v26, %v1168_v25  ;;  %v1167_v35 = vld [vmem:[#allocation8 + $0x1390] sm:$0xff]  ;;  %v1221_v25 = vld [vmem:[#allocation8 + $0x1540] sm:$0xff] }
 0x1c6   :  { %4521 = vmatprep.subr.bf16.mxu0 %v4520_v45  ;;  %4777 = vmatprep.subr.bf16.mxu1 %v4776_v46  ;;  %v1190_v45 = vld [vmem:[#allocation8 + $0x1448] sm:$0xff]  ;;  %v1184_v46 = vld [vmem:[#allocation8 + $0x1418] sm:$0xff]  ;;  %v4790_v14 = vpack.c.bf16 %v1175_v15, %v1167_v35  ;;  %v4546_v15 = vpack.c.bf16 %v1221_v25, %v1213_v24  ;;  %v1271_v24 = vld [vmem:[#allocation8 + $0x16d0] sm:$0xff] }
 0x1c7   :  { %v4536_v52 = vpack.c.bf16 %v1190_v45, %v1182_v41  ;;  %v1240_v35 = vld [vmem:[#allocation8 + $0x15d8] sm:$0xff]  ;;  %v1229_v45 = vld [vmem:[#allocation8 + $0x1580] sm:$0xff]  ;;  %v1278_v25 = vld [vmem:[#allocation8 + $0x1708] sm:$0xff] }
 0x1c9   :  { %4523 = vmatpush1.bf16.msra.mxu0 %v4522_v60  ;;  %4779 = vmatpush1.bf16.msra.mxu1 %v4778_v54  ;;  %v4792_v60 = vpack.c.bf16 %v1192_v47, %v1184_v46  ;;  %v1183_v54 = vld [vmem:[#allocation8 + $0x1410] sm:$0xff]  ;;  %v1237_v46 = vld [vmem:[#allocation8 + $0x15c0] sm:$0xff] }
 0x1ca   :  { %4525 = vmatprep.subr.bf16.mxu0 %v4524_v37  ;;  %4781 = vmatprep.subr.bf16.mxu1 %v4780_v63  ;;  %v1206_v37 = vld [vmem:[#allocation8 + $0x14c8] sm:$0xff]  ;;  %v1200_v63 = vld [vmem:[#allocation8 + $0x1498] sm:$0xff]  ;;  %v4794_v4 = vpack.c.bf16 %v1191_v55, %v1183_v54  ;;  %v4550_v55 = vpack.c.bf16 %v1237_v46, %v1229_v45  ;;  %v1279_v45 = vld [vmem:[#allocation8 + $0x1710] sm:$0xff] }
 0x1cb   :  { %v4540_v7 = vpack.c.bf16 %v1206_v37, %v1198_v56  ;;  %v1256_v54 = vld [vmem:[#allocation8 + $0x1658] sm:$0xff]  ;;  %v1245_v37 = vld [vmem:[#allocation8 + $0x1600] sm:$0xff]  ;;  %v1287_v46 = vld [vmem:[#allocation8 + $0x1750] sm:$0xff] }
 0x1cd   :  { %4527 = vmatpush1.bf16.msra.mxu0 %v4526_v8  ;;  %4783 = vmatpush1.bf16.msra.mxu1 %v4782_v9  ;;  %v4796_v8 = vpack.c.bf16 %v1208_v2, %v1200_v63  ;;  %v1199_v9 = vld [vmem:[#allocation8 + $0x1490] sm:$0xff]  ;;  %v1253_v63 = vld [vmem:[#allocation8 + $0x1640] sm:$0xff] }
 0x1ce   :  { %4529 = vmatprep.subr.bf16.mxu0 %v4528_v11  ;;  %4785 = vmatprep.subr.bf16.mxu1 %v4784_v17  ;;  %v1222_v11 = vld [vmem:[#allocation8 + $0x1548] sm:$0xff]  ;;  %v1216_v17 = vld [vmem:[#allocation8 + $0x1518] sm:$0xff]  ;;  %v4798_v22 = vpack.c.bf16 %v1207_v49, %v1199_v9  ;;  %v4554_v49 = vpack.c.bf16 %v1253_v63, %v1245_v37 }
 0x1cf   :  { %v4544_v26 = vpack.c.bf16 %v1222_v11, %v1214_v10  ;;  %v1272_v9 = vld [vmem:[#allocation8 + $0x16d8] sm:$0xff]  ;;  %v1261_v11 = vld [vmem:[#allocation8 + $0x1680] sm:$0xff] }
 0x1d1   :  { %4531 = vmatpush1.bf16.msra.mxu0 %v4530_v27  ;;  %4787 = vmatpush1.bf16.msra.mxu1 %v4786_v28  ;;  %v4800_v27 = vpack.c.bf16 %v1224_v19, %v1216_v17  ;;  %v1215_v28 = vld [vmem:[#allocation8 + $0x1510] sm:$0xff]  ;;  %v1269_v17 = vld [vmem:[#allocation8 + $0x16c0] sm:$0xff] }
 0x1d2   :  { %4533 = vmatprep.subr.bf16.mxu0 %v4532_v33  ;;  %4789 = vmatprep.subr.bf16.mxu1 %v4788_v34  ;;  %v1238_v33 = vld [vmem:[#allocation8 + $0x15c8] sm:$0xff]  ;;  %v1232_v34 = vld [vmem:[#allocation8 + $0x1598] sm:$0xff]  ;;  %v4802_v41 = vpack.c.bf16 %v1223_v29, %v1215_v28  ;;  %v188_v29 = vsub.s32 4, %v6494_v58 }
 0x1d3   :  { %v4548_v47 = vpack.c.bf16 %v1238_v33, %v1230_v31  ;;  %v1288_v28 = vld [vmem:[#allocation8 + $0x1758] sm:$0xff]  ;;  %v4558_v31 = vpack.c.bf16 %v1269_v17, %v1261_v11  ;;  %v1309_v11 = vld [vmem:[#allocation8 + $0x1800] sm:$0xff] }
 0x1d4   :  { %v1317_v17 = vld [vmem:[#allocation8 + $0x1840] sm:$0xff] }
 0x1d5   :  { %4535 = vmatpush1.bf16.msra.mxu0 %v4534_v48  ;;  %4791 = vmatpush1.bf16.msra.mxu1 %v4790_v14  ;;  %v4804_v48 = vpack.c.bf16 %v1240_v35, %v1232_v34  ;;  %v1231_v14 = vld [vmem:[#allocation8 + $0x1590] sm:$0xff]  ;;  %v1277_v34 = vld [vmem:[#allocation8 + $0x1700] sm:$0xff] }
 0x1d6   :  { %4537 = vmatprep.subr.bf16.mxu0 %v4536_v52  ;;  %4793 = vmatprep.subr.bf16.mxu1 %v4792_v60  ;;  %v1254_v52 = vld [vmem:[#allocation8 + $0x1648] sm:$0xff]  ;;  %v1248_v60 = vld [vmem:[#allocation8 + $0x1618] sm:$0xff]  ;;  %v4806_v56 = vpack.c.bf16 %v1239_v42, %v1231_v14  ;;  %v1285_v35 = vld [vmem:[#allocation8 + $0x1740] sm:$0xff] }
 0x1d7   :  { %v4552_v2 = vpack.c.bf16 %v1254_v52, %v1246_v51  ;;  %v1296_v14 = vld [vmem:[#allocation8 + $0x1798] sm:$0xff] }
 0x1d8   :  { %v1304_v42 = vld [vmem:[#allocation8 + $0x17d8] sm:$0xff] }
 0x1d9   :  { %4539 = vmatpush1.bf16.msra.mxu0 %v4538_v3  ;;  %4795 = vmatpush1.bf16.msra.mxu1 %v4794_v4  ;;  %v4808_v3 = vpack.c.bf16 %v1256_v54, %v1248_v60  ;;  %v1247_v4 = vld [vmem:[#allocation8 + $0x1610] sm:$0xff]  ;;  %v6592_v51 = vld [vmem:[#allocation7] sm:$0xff]  ;;  %v4562_v60 = vpack.c.bf16 %v1285_v35, %v1277_v34  ;;  %v4818_v54 = vpack.c.bf16 %v1287_v46, %v1279_v45  ;;  %v1333_v45 = vld [vmem:[#allocation8 + $0x18c0] sm:$0xff] }
 0x1da   :  { %4541 = vmatprep.subr.bf16.mxu0 %v4540_v7  ;;  %4797 = vmatprep.subr.bf16.mxu1 %v4796_v8  ;;  %v1270_v7 = vld [vmem:[#allocation8 + $0x16c8] sm:$0xff]  ;;  %v1264_v8 = vld [vmem:[#allocation8 + $0x1698] sm:$0xff]  ;;  %v4810_v10 = vpack.c.bf16 %v1255_v5, %v1247_v4  ;;  %v189_v52 = vrot.slane %v6592_v51, %v188_v29  ;;  %v4820_v63 = vpack.c.bf16 %v1304_v42, %v1296_v14 }
 0x1db   :  { %v4556_v19 = vpack.c.bf16 %v1270_v7, %v1262_v6  ;;  %v1310_v4 = vld [vmem:[#allocation8 + $0x1808] sm:$0xff]  ;;  %v1312_v6 = vld [vmem:[#allocation8 + $0x1818] sm:$0xff]  ;;  %v4570_v35 = vpack.c.bf16 %v1317_v17, %v1309_v11  ;;  %v1357_v17 = vld [vmem:[#allocation8 + $0x1980] sm:$0xff] }
 0x1dc   :  { %v1318_v5 = vld [vmem:[#allocation8 + $0x1848] sm:$0xff]  ;;  %v1320_v7 = vld [vmem:[#allocation8 + $0x1858] sm:$0xff]  ;;  %v444_v34 = vadd.f32 %v6546_v12, %v189_v52 }
 0x1dd   :  { %4543 = vmatpush1.bf16.msra.mxu0 %v4542_v20  ;;  %4799 = vmatpush1.bf16.msra.mxu1 %v4798_v22  ;;  %v4812_v20 = vpack.c.bf16 %v1272_v9, %v1264_v8  ;;  %v1263_v22 = vld [vmem:[#allocation8 + $0x1690] sm:$0xff]  ;;  %v200_v8 = vsub.s32 7, %v6494_v58  ;;  %v438_v9 = vadd.f32 %v6534_v43, %v189_v52  ;;  %v1350_v14 = vld [vmem:[#allocation8 + $0x1948] sm:$0xff]  ;;  %v1344_v42 = vld [vmem:[#allocation8 + $0x1918] sm:$0xff] }
 0x1de   :  { %4545 = vmatprep.subr.bf16.mxu0 %v4544_v26  ;;  %4801 = vmatprep.subr.bf16.mxu1 %v4800_v27  ;;  %v1286_v26 = vld [vmem:[#allocation8 + $0x1748] sm:$0xff]  ;;  %v1280_v27 = vld [vmem:[#allocation8 + $0x1718] sm:$0xff]  ;;  %v4814_v33 = vpack.c.bf16 %v1271_v24, %v1263_v22  ;;  %v1311_v22 = vld [vmem:[#allocation8 + $0x1810] sm:$0xff]  ;;  %v6615_v52 = vmax.f32 %v444_v34, 0.0 }
 0x1df   :  { %v1319_v24 = vld [vmem:[#allocation8 + $0x1850] sm:$0xff]  ;;  %v6604_v43 = vrot.slane %v6592_v51, %v200_v8 }
 0x1e1   :  { %4547 = vmatpush1.bf16.msra.mxu0 %v4546_v15  ;;  %4803 = vmatpush1.bf16.msra.mxu1 %v4802_v41  ;;  %v4560_v15 = vpack.c.bf16 %v1286_v26, %v1278_v25  ;;  %v4816_v41 = vpack.c.bf16 %v1288_v28, %v1280_v27  ;;  %v1326_v25 = vld [vmem:[#allocation8 + $0x1888] sm:$0xff]  ;;  %v1328_v27 = vld [vmem:[#allocation8 + $0x1898] sm:$0xff]  ;;  %v517_v12 = vadd.f32 %v6552_v38, %v6604_v43 }
 0x1e2   :  { %4549 = vmatprep.subr.bf16.mxu0 %v4548_v47  ;;  %4805 = vmatprep.subr.bf16.mxu1 %v4804_v48  ;;  %v1294_v47 = vld [vmem:[#allocation8 + $0x1788] sm:$0xff]  ;;  %v1336_v28 = vld [vmem:[#allocation8 + $0x18d8] sm:$0xff] }
 0x1e3   :  { %v1302_v48 = vld [vmem:[#allocation8 + $0x17c8] sm:$0xff] }
 0x1e4   :  { %v4564_v37 = vpack.c.bf16 %v1302_v48, %v1294_v47  ;;  %v1334_v26 = vld [vmem:[#allocation8 + $0x18c8] sm:$0xff]  ;;  %v4828_v47 = vpack.c.bf16 %v1336_v28, %v1328_v27  ;;  %v1376_v28 = vld [vmem:[#allocation8 + $0x1a18] sm:$0xff] }
 0x1e5   :  { %4551 = vmatpush1.bf16.msra.mxu0 %v4550_v55  ;;  %4807 = vmatpush1.bf16.msra.mxu1 %v4806_v56  ;;  %v1293_v55 = vld [vmem:[#allocation8 + $0x1780] sm:$0xff]  ;;  %v4572_v46 = vpack.c.bf16 %v1334_v26, %v1326_v25  ;;  %v1342_v48 = vld [vmem:[#allocation8 + $0x1908] sm:$0xff]  ;;  %v1367_v25 = vld [vmem:[#allocation8 + $0x19d0] sm:$0xff] }
 0x1e6   :  { %4553 = vmatprep.subr.bf16.mxu0 %v4552_v2  ;;  %4809 = vmatprep.subr.bf16.mxu1 %v4808_v3  ;;  %v1301_v56 = vld [vmem:[#allocation8 + $0x17c0] sm:$0xff]  ;;  %v1295_v2 = vld [vmem:[#allocation8 + $0x1790] sm:$0xff]  ;;  %v1366_v38 = vld [vmem:[#allocation8 + $0x19c8] sm:$0xff] }
 0x1e7   :  { %v1303_v3 = vld [vmem:[#allocation8 + $0x17d0] sm:$0xff]  ;;  %v1374_v26 = vld [vmem:[#allocation8 + $0x1a08] sm:$0xff] }
 0x1e8   :  { %v1382_v27 = vld [vmem:[#allocation8 + $0x1a48] sm:$0xff] }
 0x1e9   :  { %4555 = vmatpush1.bf16.msra.mxu0 %v4554_v49  ;;  %4811 = vmatpush1.bf16.msra.mxu1 %v4810_v10  ;;  %v4566_v49 = vpack.c.bf16 %v1301_v56, %v1293_v55  ;;  %v4822_v10 = vpack.c.bf16 %v1303_v3, %v1295_v2  ;;  %v4576_v2 = vpack.c.bf16 %v1350_v14, %v1342_v48  ;;  %v1398_v48 = vld [vmem:[#allocation8 + $0x1ac8] sm:$0xff]  ;;  %v1392_v14 = vld [vmem:[#allocation8 + $0x1a98] sm:$0xff] }
 0x1ea   :  { %4557 = vmatprep.subr.bf16.mxu0 %v4556_v19  ;;  %4813 = vmatprep.subr.bf16.mxu1 %v4812_v20  ;;  %v4568_v19 = vpack.c.bf16 %v1318_v5, %v1310_v4  ;;  %v4824_v20 = vpack.c.bf16 %v1320_v7, %v1312_v6  ;;  %v1343_v4 = vld [vmem:[#allocation8 + $0x1910] sm:$0xff]  ;;  %v1358_v6 = vld [vmem:[#allocation8 + $0x1988] sm:$0xff]  ;;  %v1360_v7 = vld [vmem:[#allocation8 + $0x1998] sm:$0xff] }
 0x1eb   :  { %v1351_v5 = vld [vmem:[#allocation8 + $0x1950] sm:$0xff] }
 0x1ec   :  { %v4834_v11 = vpack.c.bf16 %v1351_v5, %v1343_v4  ;;  %v1406_v4 = vld [vmem:[#allocation8 + $0x1b08] sm:$0xff] }
 0x1ed   :  { %4559 = vmatpush1.bf16.msra.mxu0 %v4558_v31  ;;  %4815 = vmatpush1.bf16.msra.mxu1 %v4814_v33  ;;  %v446_v31 = vadd.f32 %v6548_v21, %v6568_v39  ;;  %v6606_v33 = vmax.f32 %v438_v9, 0.0  ;;  %v1327_v21 = vld [vmem:[#allocation8 + $0x1890] sm:$0xff]  ;;  %v1368_v9 = vld [vmem:[#allocation8 + $0x19d8] sm:$0xff]  ;;  %v1414_v5 = vld [vmem:[#allocation8 + $0x1b48] sm:$0xff] }
 0x1ee   :  { %4561 = vmatprep.subr.bf16.mxu0 %v4560_v15  ;;  %4817 = vmatprep.subr.bf16.mxu1 %v4816_v41  ;;  %v4826_v15 = vpack.c.bf16 %v1319_v24, %v1311_v22  ;;  %v1325_v41 = vld [vmem:[#allocation8 + $0x1880] sm:$0xff]  ;;  %v1335_v39 = vld [vmem:[#allocation8 + $0x18d0] sm:$0xff]  ;;  %v4836_v22 = vpack.c.bf16 %v1368_v9, %v1360_v7 }
 0x1ef   :  { %v4574_v55 = vpack.c.bf16 %v1333_v45, %v1325_v41  ;;  %v4830_v56 = vpack.c.bf16 %v1335_v39, %v1327_v21  ;;  %v1359_v24 = vld [vmem:[#allocation8 + $0x1990] sm:$0xff]  ;;  %v1381_v41 = vld [vmem:[#allocation8 + $0x1a40] sm:$0xff]  ;;  %v4584_v45 = vpack.c.bf16 %v1382_v27, %v1374_v26  ;;  %v1390_v39 = vld [vmem:[#allocation8 + $0x1a88] sm:$0xff] }
 0x1f0   :  { %v1383_v21 = vld [vmem:[#allocation8 + $0x1a50] sm:$0xff]  ;;  %v1424_v26 = vld [vmem:[#allocation8 + $0x1b98] sm:$0xff] }
 0x1f1   :  { %4563 = vmatpush1.bf16.msra.mxu0 %v4562_v60  ;;  %4819 = vmatpush1.bf16.msra.mxu1 %v4818_v54  ;;  %v1352_v60 = vld [vmem:[#allocation8 + $0x1958] sm:$0xff]  ;;  %v6609_v54 = vmax.f32 %v446_v31, 0.0 }
 0x1f2   :  { %4565 = vmatprep.subr.bf16.mxu0 %v4564_v37  ;;  %4821 = vmatprep.subr.bf16.mxu1 %v4820_v63  ;;  %v1341_v37 = vld [vmem:[#allocation8 + $0x1900] sm:$0xff]  ;;  %v4832_v3 = vpack.c.bf16 %v1352_v60, %v1344_v42  ;;  %v1384_v31 = vld [vmem:[#allocation8 + $0x1a58] sm:$0xff] }
 0x1f3   :  { %v1349_v63 = vld [vmem:[#allocation8 + $0x1940] sm:$0xff]  ;;  %v1400_v42 = vld [vmem:[#allocation8 + $0x1ad8] sm:$0xff] }
 0x1f4   :  { %v1432_v27 = vld [vmem:[#allocation8 + $0x1bd8] sm:$0xff] }
 0x1f5   :  { %4567 = vmatpush1.bf16.msra.mxu0 %v4566_v49  ;;  %4823 = vmatpush1.bf16.msra.mxu1 %v4822_v10  ;;  %v6617_v49 = vmax.f32 %v517_v12, 0.0  ;;  %v4578_v10 = vpack.c.bf16 %v1349_v63, %v1341_v37  ;;  %v4588_v37 = vpack.c.bf16 %v1398_v48, %v1390_v39  ;;  %v4844_v63 = vpack.c.bf16 %v1400_v42, %v1392_v14  ;;  %v1440_v39 = vld [vmem:[#allocation8 + $0x1c18] sm:$0xff] }
 0x1f6   :  { %4569 = vmatprep.subr.bf16.mxu0 %v4568_v19  ;;  %4825 = vmatprep.subr.bf16.mxu1 %v4824_v20  ;;  %v1365_v19 = vld [vmem:[#allocation8 + $0x19c0] sm:$0xff]  ;;  %v4580_v20 = vpack.c.bf16 %v1366_v38, %v1358_v6  ;;  %v1408_v6 = vld [vmem:[#allocation8 + $0x1b18] sm:$0xff] }
 0x1f7   :  { %v4582_v34 = vpack.c.bf16 %v1365_v19, %v1357_v17  ;;  %v1416_v38 = vld [vmem:[#allocation8 + $0x1b58] sm:$0xff]  ;;  %v4592_v17 = vpack.c.bf16 %v1414_v5, %v1406_v4 }
 0x1f8   :  { %1826 = vmatmul.mubr.f32.vlgmr.msra.gmra.mrb[8].mxu0 %v6606_v33  ;;  %2134 = vmatmul.mubr.f32.vlgmr.msra.gmra.mrb[8].mxu1 %v6606_v33  ;;  %v4848_v19 = vpack.c.bf16 %v1416_v38, %v1408_v6  ;;  %v1448_v48 = vld [vmem:[#allocation8 + $0x1c58] sm:$0xff] }
 0x1f9   :  { %4571 = vmatpush1.bf16.msra.mxu0 %v4570_v35  ;;  %4827 = vmatpush1.bf16.msra.mxu1 %v4826_v15  ;;  %v4838_v35 = vpack.c.bf16 %v1367_v25, %v1359_v24  ;;  %v1373_v15 = vld [vmem:[#allocation8 + $0x1a00] sm:$0xff]  ;;  %v1422_v24 = vld [vmem:[#allocation8 + $0x1b88] sm:$0xff]  ;;  %v1456_v4 = vld [vmem:[#allocation8 + $0x1c98] sm:$0xff] }
 0x1fa   :  { %4573 = vmatprep.subr.bf16.mxu0 %v4572_v46  ;;  %4829 = vmatprep.subr.bf16.mxu1 %v4828_v47  ;;  %v4840_v46 = vpack.c.bf16 %v1384_v31, %v1376_v28  ;;  %v1375_v47 = vld [vmem:[#allocation8 + $0x1a10] sm:$0xff]  ;;  %v4586_v60 = vpack.c.bf16 %v1381_v41, %v1373_v15  ;;  %v1430_v25 = vld [vmem:[#allocation8 + $0x1bc8] sm:$0xff]  ;;  %v4852_v41 = vpack.c.bf16 %v1432_v27, %v1424_v26  ;;  %v1464_v5 = vld [vmem:[#allocation8 + $0x1cd8] sm:$0xff] }
 0x1fb   :  { %1831 = vmatprep.mubr.f32.mxu0 %v6609_v54  ;;  %2139 = vmatprep.mubr.f32.mxu1 %v6609_v54  ;;  %v4842_v12 = vpack.c.bf16 %v1383_v21, %v1375_v47  ;;  %v4596_v15 = vpack.c.bf16 %v1430_v25, %v1422_v24  ;;  %v1438_v47 = vld [vmem:[#allocation8 + $0x1c08] sm:$0xff]  ;;  %v1472_v24 = vld [vmem:[#allocation8 + $0x1d18] sm:$0xff] }
 0x1fc   :  { %1832 = vmatmul.mubr.f32.gmra.mrb[10].mxu0 %v6615_v52  ;;  %2140 = vmatmul.mubr.f32.gmra.mrb[10].mxu1 %v6615_v52  ;;  %v1446_v21 = vld [vmem:[#allocation8 + $0x1c48] sm:$0xff]  ;;  %v1480_v25 = vld [vmem:[#allocation8 + $0x1d58] sm:$0xff] }
 0x1fd   :  { %4575 = vmatpush1.bf16.msra.mxu0 %v4574_v55  ;;  %4831 = vmatpush1.bf16.msra.mxu1 %v4830_v56  ;;  %v1389_v55 = vld [vmem:[#allocation8 + $0x1a80] sm:$0xff] }
 0x1fe   :  { %4577 = vmatprep.subr.bf16.mxu0 %v4576_v2  ;;  %4833 = vmatprep.subr.bf16.mxu1 %v4832_v3  ;;  %v1397_v56 = vld [vmem:[#allocation8 + $0x1ac0] sm:$0xff]  ;;  %v1391_v2 = vld [vmem:[#allocation8 + $0x1a90] sm:$0xff] }
 0x1ff   :  { %1902 = vmatprep.mubr.f32.mxu0 %v6617_v49  ;;  %2210 = vmatprep.mubr.f32.mxu1 %v6617_v49  ;;  %v1399_v3 = vld [vmem:[#allocation8 + $0x1ad0] sm:$0xff]  ;;  %v4590_v7 = vpack.c.bf16 %v1397_v56, %v1389_v55  ;;  %v4600_v55 = vpack.c.bf16 %v1446_v21, %v1438_v47  ;;  %v4856_v56 = vpack.c.bf16 %v1448_v48, %v1440_v39  ;;  %v1488_v47 = vld [vmem:[#allocation8 + $0x1d98] sm:$0xff] }
 0x200   :  { %v4846_v9 = vpack.c.bf16 %v1399_v3, %v1391_v2  ;;  %v1454_v2 = vld [vmem:[#allocation8 + $0x1c88] sm:$0xff]  ;;  %v1496_v21 = vld [vmem:[#allocation8 + $0x1dd8] sm:$0xff] }
 0x201   :  { %4579 = vmatpush1.bf16.msra.mxu0 %v4578_v10  ;;  %4835 = vmatpush1.bf16.msra.mxu1 %v4834_v11  ;;  %v1405_v10 = vld [vmem:[#allocation8 + $0x1b00] sm:$0xff]  ;;  %v1462_v3 = vld [vmem:[#allocation8 + $0x1cc8] sm:$0xff] }
 0x202   :  { %4581 = vmatprep.subr.bf16.mxu0 %v4580_v20  ;;  %4837 = vmatprep.subr.bf16.mxu1 %v4836_v22  ;;  %v1413_v11 = vld [vmem:[#allocation8 + $0x1b40] sm:$0xff]  ;;  %v1407_v20 = vld [vmem:[#allocation8 + $0x1b10] sm:$0xff] }
 0x203   :  { %v1415_v22 = vld [vmem:[#allocation8 + $0x1b50] sm:$0xff]  ;;  %v4594_v28 = vpack.c.bf16 %v1413_v11, %v1405_v10  ;;  %v4604_v10 = vpack.c.bf16 %v1462_v3, %v1454_v2  ;;  %v4860_v11 = vpack.c.bf16 %v1464_v5, %v1456_v4  ;;  %v1504_v2 = vld [vmem:[#allocation8 + $0x1e18] sm:$0xff] }
 0x204   :  { %v4850_v31 = vpack.c.bf16 %v1415_v22, %v1407_v20  ;;  %v1470_v20 = vld [vmem:[#allocation8 + $0x1d08] sm:$0xff]  ;;  %v1512_v3 = vld [vmem:[#allocation8 + $0x1e58] sm:$0xff] }
 0x205   :  { %4583 = vmatpush1.bf16.msra.mxu0 %v4582_v34  ;;  %4839 = vmatpush1.bf16.msra.mxu1 %v4838_v35  ;;  %v1421_v34 = vld [vmem:[#allocation8 + $0x1b80] sm:$0xff]  ;;  %v1478_v22 = vld [vmem:[#allocation8 + $0x1d48] sm:$0xff] }
 0x206   :  { %4585 = vmatprep.subr.bf16.mxu0 %v4584_v45  ;;  %4841 = vmatprep.subr.bf16.mxu1 %v4840_v46  ;;  %v1429_v35 = vld [vmem:[#allocation8 + $0x1bc0] sm:$0xff]  ;;  %v1423_v45 = vld [vmem:[#allocation8 + $0x1b90] sm:$0xff] }
 0x207   :  { %v1431_v46 = vld [vmem:[#allocation8 + $0x1bd0] sm:$0xff]  ;;  %v4598_v14 = vpack.c.bf16 %v1429_v35, %v1421_v34  ;;  %v4608_v34 = vpack.c.bf16 %v1478_v22, %v1470_v20  ;;  %v4864_v35 = vpack.c.bf16 %v1480_v25, %v1472_v24  ;;  %v1520_v20 = vld [vmem:[#allocation8 + $0x1e98] sm:$0xff] }
 0x208   :  { %v4854_v42 = vpack.c.bf16 %v1431_v46, %v1423_v45  ;;  %v1486_v45 = vld [vmem:[#allocation8 + $0x1d88] sm:$0xff]  ;;  %v1528_v22 = vld [vmem:[#allocation8 + $0x1ed8] sm:$0xff] }
 0x209   :  { %4587 = vmatpush1.bf16.msra.mxu0 %v4586_v60  ;;  %4843 = vmatpush1.bf16.msra.mxu1 %v4842_v12  ;;  %v1437_v60 = vld [vmem:[#allocation8 + $0x1c00] sm:$0xff]  ;;  %v1494_v46 = vld [vmem:[#allocation8 + $0x1dc8] sm:$0xff] }
 0x20a   :  { %4589 = vmatprep.subr.bf16.mxu0 %v4588_v37  ;;  %4845 = vmatprep.subr.bf16.mxu1 %v4844_v63  ;;  %v1445_v12 = vld [vmem:[#allocation8 + $0x1c40] sm:$0xff]  ;;  %v1439_v37 = vld [vmem:[#allocation8 + $0x1c10] sm:$0xff] }
 0x20b   :  { %v1447_v63 = vld [vmem:[#allocation8 + $0x1c50] sm:$0xff]  ;;  %v4602_v6 = vpack.c.bf16 %v1445_v12, %v1437_v60  ;;  %v4612_v60 = vpack.c.bf16 %v1494_v46, %v1486_v45  ;;  %v4868_v12 = vpack.c.bf16 %v1496_v21, %v1488_v47  ;;  %v1536_v45 = vld [vmem:[#allocation8 + $0x1f18] sm:$0xff]  ;;  %v196_v47 = vsub.s32 6, %v6494_v58 }
 0x20c   :  { %v4858_v38 = vpack.c.bf16 %v1447_v63, %v1439_v37  ;;  %v1502_v37 = vld [vmem:[#allocation8 + $0x1e08] sm:$0xff]  ;;  %v1544_v46 = vld [vmem:[#allocation8 + $0x1f58] sm:$0xff]  ;;  %v4062_v58 = vld [vmem:[%s6965_s7 + $0x188] sm:$0xff] }
 0x20d   :  { %4591 = vmatpush1.bf16.msra.mxu0 %v4590_v7  ;;  %4847 = vmatpush1.bf16.msra.mxu1 %v4846_v9  ;;  %v1453_v7 = vld [vmem:[#allocation8 + $0x1c80] sm:$0xff]  ;;  %v1510_v63 = vld [vmem:[#allocation8 + $0x1e48] sm:$0xff] }
 0x20e   :  { %4593 = vmatprep.subr.bf16.mxu0 %v4592_v17  ;;  %4849 = vmatprep.subr.bf16.mxu1 %v4848_v19  ;;  %v1461_v9 = vld [vmem:[#allocation8 + $0x1cc0] sm:$0xff]  ;;  %v1455_v17 = vld [vmem:[#allocation8 + $0x1c90] sm:$0xff] }
 0x20f   :  { %v1463_v19 = vld [vmem:[#allocation8 + $0x1cd0] sm:$0xff]  ;;  %v4606_v26 = vpack.c.bf16 %v1461_v9, %v1453_v7  ;;  %v4616_v7 = vpack.c.bf16 %v1510_v63, %v1502_v37  ;;  %v4872_v9 = vpack.c.bf16 %v1512_v3, %v1504_v2  ;;  %v1558_v37 = vld [vmem:[#allocation8 + $0x1fc8] sm:$0xff]  ;;  %v1552_v63 = vld [vmem:[#allocation8 + $0x1f98] sm:$0xff]  ;;  %v197_v3 = vrot.slane %v6592_v51, %v196_v47 }
 0x210   :  { %v4862_v27 = vpack.c.bf16 %v1463_v19, %v1455_v17  ;;  %v1518_v17 = vld [vmem:[#allocation8 + $0x1e88] sm:$0xff]  ;;  %v1560_v2 = vld [vmem:[#allocation8 + $0x1fd8] sm:$0xff] }
 0x211   :  { %4595 = vmatpush1.bf16.msra.mxu0 %v4594_v28  ;;  %4851 = vmatpush1.bf16.msra.mxu1 %v4850_v31  ;;  %v1469_v28 = vld [vmem:[#allocation8 + $0x1d00] sm:$0xff]  ;;  %v1526_v19 = vld [vmem:[#allocation8 + $0x1ec8] sm:$0xff] }
 0x212   :  { %4597 = vmatprep.subr.bf16.mxu0 %v4596_v15  ;;  %4853 = vmatprep.subr.bf16.mxu1 %v4852_v41  ;;  %v1477_v31 = vld [vmem:[#allocation8 + $0x1d40] sm:$0xff]  ;;  %v1471_v15 = vld [vmem:[#allocation8 + $0x1d10] sm:$0xff] }
 0x213   :  { %v1479_v41 = vld [vmem:[#allocation8 + $0x1d50] sm:$0xff]  ;;  %v4610_v39 = vpack.c.bf16 %v1477_v31, %v1469_v28  ;;  %v4620_v28 = vpack.c.bf16 %v1526_v19, %v1518_v17  ;;  %v4876_v31 = vpack.c.bf16 %v1528_v22, %v1520_v20  ;;  %v546_v17 = vld [vmem:[#allocation8 + $0x28] sm:$0xff]  ;;  %v548_v20 = vld [vmem:[#allocation8 + $0x38] sm:$0xff] }
 0x214   :  { %v4866_v48 = vpack.c.bf16 %v1479_v41, %v1471_v15  ;;  %v1534_v15 = vld [vmem:[#allocation8 + $0x1f08] sm:$0xff]  ;;  %v556_v22 = vld [vmem:[#allocation8 + $0x78] sm:$0xff] }
 0x215   :  { %4599 = vmatpush1.bf16.msra.mxu0 %v4598_v14  ;;  %4855 = vmatpush1.bf16.msra.mxu1 %v4854_v42  ;;  %v1485_v14 = vld [vmem:[#allocation8 + $0x1d80] sm:$0xff]  ;;  %v1542_v41 = vld [vmem:[#allocation8 + $0x1f48] sm:$0xff] }
 0x216   :  { %4601 = vmatprep.subr.bf16.mxu0 %v4600_v55  ;;  %4857 = vmatprep.subr.bf16.mxu1 %v4856_v56  ;;  %v1493_v42 = vld [vmem:[#allocation8 + $0x1dc0] sm:$0xff]  ;;  %v1487_v55 = vld [vmem:[#allocation8 + $0x1d90] sm:$0xff]  ;;  %v554_v19 = vld [vmem:[#allocation8 + $0x68] sm:$0xff] }
 0x217   :  { %v1495_v56 = vld [vmem:[#allocation8 + $0x1dd0] sm:$0xff]  ;;  %v4614_v4 = vpack.c.bf16 %v1493_v42, %v1485_v14  ;;  %v1541_v14 = vld [vmem:[#allocation8 + $0x1f40] sm:$0xff]  ;;  %v4624_v42 = vpack.c.bf16 %v1542_v41, %v1534_v15  ;;  %v562_v41 = vld [vmem:[#allocation8 + $0xa8] sm:$0xff] }
 0x218   :  { %v4870_v5 = vpack.c.bf16 %v1495_v56, %v1487_v55  ;;  %v1543_v55 = vld [vmem:[#allocation8 + $0x1f50] sm:$0xff]  ;;  %v1550_v56 = vld [vmem:[#allocation8 + $0x1f88] sm:$0xff] }
 0x219   :  { %4603 = vmatpush1.bf16.msra.mxu0 %v4602_v6  ;;  %4859 = vmatpush1.bf16.msra.mxu1 %v4858_v38  ;;  %v1501_v6 = vld [vmem:[#allocation8 + $0x1e00] sm:$0xff]  ;;  %v555_v15 = vld [vmem:[#allocation8 + $0x70] sm:$0xff] }
 0x21a   :  { %4605 = vmatprep.subr.bf16.mxu0 %v4604_v10  ;;  %4861 = vmatprep.subr.bf16.mxu1 %v4860_v11  ;;  %v1509_v38 = vld [vmem:[#allocation8 + $0x1e40] sm:$0xff]  ;;  %v1503_v10 = vld [vmem:[#allocation8 + $0x1e10] sm:$0xff] }
 0x21b   :  { %v1511_v11 = vld [vmem:[#allocation8 + $0x1e50] sm:$0xff]  ;;  %v4618_v24 = vpack.c.bf16 %v1509_v38, %v1501_v6  ;;  %v1549_v6 = vld [vmem:[#allocation8 + $0x1f80] sm:$0xff] }
 0x21c   :  { %v4874_v25 = vpack.c.bf16 %v1511_v11, %v1503_v10  ;;  %v1557_v38 = vld [vmem:[#allocation8 + $0x1fc0] sm:$0xff]  ;;  %v1551_v10 = vld [vmem:[#allocation8 + $0x1f90] sm:$0xff] }
 0x21d   :  { %4607 = vmatpush1.bf16.msra.mxu0 %v4606_v26  ;;  %4863 = vmatpush1.bf16.msra.mxu1 %v4862_v27  ;;  %v1517_v26 = vld [vmem:[#allocation8 + $0x1e80] sm:$0xff]  ;;  %v1559_v11 = vld [vmem:[#allocation8 + $0x1fd0] sm:$0xff]  ;;  %v4630_v51 = vpack.c.bf16 %v1557_v38, %v1549_v6 }
 0x21e   :  { %4609 = vmatprep.subr.bf16.mxu0 %v4608_v34  ;;  %4865 = vmatprep.subr.bf16.mxu1 %v4864_v35  ;;  %v1525_v27 = vld [vmem:[#allocation8 + $0x1ec0] sm:$0xff]  ;;  %v1519_v34 = vld [vmem:[#allocation8 + $0x1e90] sm:$0xff] }
 0x21f   :  { %v1527_v35 = vld [vmem:[#allocation8 + $0x1ed0] sm:$0xff]  ;;  %v4622_v21 = vpack.c.bf16 %v1525_v27, %v1517_v26  ;;  %v545_v26 = vld [vmem:[#allocation8 + $0x20] sm:$0xff]  ;;  %v523_v27 = vadd.f32 %v6573_v50, %v6604_v43 }
 0x220   :  { %v561_v50 = vld [vmem:[#allocation8 + $0xa0] sm:$0xff] }
 0x221   :  { %4611 = vmatpush1.bf16.msra.mxu0 %v4610_v39  ;;  %4867 = vmatpush1.bf16.msra.mxu1 %v4866_v48  ;;  %v4878_v39 = vpack.c.bf16 %v1527_v35, %v1519_v34  ;;  %v1533_v48 = vld [vmem:[#allocation8 + $0x1f00] sm:$0xff]  ;;  %v547_v35 = vld [vmem:[#allocation8 + $0x30] sm:$0xff] }
 0x222   :  { %4613 = vmatprep.subr.bf16.mxu0 %v4612_v60  ;;  %4869 = vmatprep.subr.bf16.mxu1 %v4868_v12  ;;  %v4880_v60 = vpack.c.bf16 %v1544_v46, %v1536_v45  ;;  %v1535_v12 = vld [vmem:[#allocation8 + $0x1f10] sm:$0xff]  ;;  %v553_v34 = vld [vmem:[#allocation8 + $0x60] sm:$0xff]  ;;  %v521_v45 = vadd.f32 %v6561_v32, %v197_v3  ;;  %v570_v46 = vld [vmem:[#allocation8 + $0xe8] sm:$0xff] }
 0x223   :  { %v569_v43 = vld [vmem:[#allocation8 + $0xe0] sm:$0xff]  ;;  %v578_v32 = vld [vmem:[#allocation8 + $0x128] sm:$0xff] }
 0x224   :  { %v577_v6 = vld [vmem:[#allocation8 + $0x120] sm:$0xff] }
 0x225   :  { %4615 = vmatpush1.bf16.msra.mxu0 %v4614_v4  ;;  %4871 = vmatpush1.bf16.msra.mxu1 %v4870_v5  ;;  %v4626_v4 = vpack.c.bf16 %v1541_v14, %v1533_v48  ;;  %v4882_v5 = vpack.c.bf16 %v1543_v55, %v1535_v12  ;;  %v5146_v48 = vpack.c.bf16 %v555_v15, %v547_v35  ;;  %v563_v55 = vld [vmem:[#allocation8 + $0xb0] sm:$0xff]  ;;  %v585_v38 = vld [vmem:[#allocation8 + $0x160] sm:$0xff]  ;;  %v610_v35 = vld [vmem:[#allocation8 + $0x228] sm:$0xff] }
 0x226   :  { %4617 = vmatprep.subr.bf16.mxu0 %v4616_v7  ;;  %4873 = vmatprep.subr.bf16.mxu1 %v4872_v9  ;;  %v4628_v7 = vpack.c.bf16 %v1558_v37, %v1550_v56  ;;  %v4884_v9 = vpack.c.bf16 %v1560_v2, %v1552_v63  ;;  %v571_v56 = vld [vmem:[#allocation8 + $0xf0] sm:$0xff]  ;;  %v6637_v37 = vmax.f32 %v521_v45, 0.0  ;;  %v586_v63 = vld [vmem:[#allocation8 + $0x168] sm:$0xff]  ;;  %v580_v2 = vld [vmem:[#allocation8 + $0x138] sm:$0xff] }
 0x227   :  { %v618_v15 = vld [vmem:[#allocation8 + $0x268] sm:$0xff]  ;;  %v620_v45 = vld [vmem:[#allocation8 + $0x278] sm:$0xff] }
 0x229   :  { %4619 = vmatpush1.bf16.msra.mxu0 %v4618_v24  ;;  %4875 = vmatpush1.bf16.msra.mxu1 %v4874_v25  ;;  %v515_v24 = vadd.f32 %v6550_v30, %v197_v3  ;;  %v4886_v25 = vpack.c.bf16 %v1559_v11, %v1551_v10  ;;  %v564_v30 = vld [vmem:[#allocation8 + $0xb8] sm:$0xff]  ;;  %v587_v11 = vld [vmem:[#allocation8 + $0x170] sm:$0xff] }
 0x22a   :  { %4621 = vmatprep.subr.bf16.mxu0 %v4620_v28  ;;  %4877 = vmatprep.subr.bf16.mxu1 %v4876_v31  ;;  %v4888_v28 = vpack.c.bf16 %v554_v19, %v546_v17  ;;  %v5144_v31 = vpack.c.bf16 %v556_v22, %v548_v20  ;;  %v588_v3 = vld [vmem:[#allocation8 + $0x178] sm:$0xff]  ;;  %v594_v17 = vld [vmem:[#allocation8 + $0x1a8] sm:$0xff] }
 0x22b   :  { %v6633_v14 = vmax.f32 %v515_v24, 0.0  ;;  %v5152_v10 = vpack.c.bf16 %v588_v3, %v580_v2  ;;  %v602_v19 = vld [vmem:[#allocation8 + $0x1e8] sm:$0xff]  ;;  %v596_v20 = vld [vmem:[#allocation8 + $0x1b8] sm:$0xff]  ;;  %v4898_v24 = vpack.c.bf16 %v585_v38, %v577_v6  ;;  %v625_v3 = vld [vmem:[#allocation8 + $0x2a0] sm:$0xff] }
 0x22c   :  { %v604_v22 = vld [vmem:[#allocation8 + $0x1f8] sm:$0xff]  ;;  %v635_v38 = vld [vmem:[#allocation8 + $0x2f0] sm:$0xff] }
 0x22d   :  { %4623 = vmatpush1.bf16.msra.mxu0 %v4622_v21  ;;  %4879 = vmatpush1.bf16.msra.mxu1 %v4878_v39  ;;  %v572_v21 = vld [vmem:[#allocation8 + $0xf8] sm:$0xff]  ;;  %v4890_v39 = vpack.c.bf16 %v553_v34, %v545_v26  ;;  %v593_v26 = vld [vmem:[#allocation8 + $0x1a0] sm:$0xff]  ;;  %v603_v34 = vld [vmem:[#allocation8 + $0x1f0] sm:$0xff] }
 0x22e   :  { %4625 = vmatprep.subr.bf16.mxu0 %v4624_v42  ;;  %4881 = vmatprep.subr.bf16.mxu1 %v4880_v60  ;;  %v6635_v42 = vmax.f32 %v523_v27, 0.0  ;;  %v4892_v60 = vpack.c.bf16 %v570_v46, %v562_v41  ;;  %v5148_v12 = vpack.c.bf16 %v572_v21, %v564_v30  ;;  %v601_v27 = vld [vmem:[#allocation8 + $0x1e0] sm:$0xff]  ;;  %v612_v41 = vld [vmem:[#allocation8 + $0x238] sm:$0xff]  ;;  %v4904_v21 = vpack.c.bf16 %v618_v15, %v610_v35 }
 0x22f   :  { %v4902_v46 = vpack.c.bf16 %v601_v27, %v593_v26  ;;  %v651_v26 = vld [vmem:[#allocation8 + $0x370] sm:$0xff]  ;;  %v658_v27 = vld [vmem:[#allocation8 + $0x3a8] sm:$0xff] }
 0x231   :  { %4627 = vmatpush1.bf16.msra.mxu0 %v4626_v4  ;;  %4883 = vmatpush1.bf16.msra.mxu1 %v4882_v5  ;;  %v4894_v4 = vpack.c.bf16 %v569_v43, %v561_v50  ;;  %v5150_v5 = vpack.c.bf16 %v571_v56, %v563_v55  ;;  %v5160_v50 = vpack.c.bf16 %v620_v45, %v612_v41  ;;  %v619_v43 = vld [vmem:[#allocation8 + $0x270] sm:$0xff]  ;;  %v628_v55 = vld [vmem:[#allocation8 + $0x2b8] sm:$0xff]  ;;  %v657_v45 = vld [vmem:[#allocation8 + $0x3a0] sm:$0xff] }
 0x232   :  { %4629 = vmatprep.subr.bf16.mxu0 %v4628_v7  ;;  %4885 = vmatprep.subr.bf16.mxu1 %v4884_v9  ;;  %v579_v7 = vld [vmem:[#allocation8 + $0x130] sm:$0xff]  ;;  %v4896_v9 = vpack.c.bf16 %v586_v63, %v578_v32  ;;  %v636_v56 = vld [vmem:[#allocation8 + $0x2f8] sm:$0xff] }
 0x233   :  { %v5164_v6 = vpack.c.bf16 %v636_v56, %v628_v55  ;;  %v673_v56 = vld [vmem:[#allocation8 + $0x420] sm:$0xff] }
 0x235   :  { %4631 = vmatpush1.bf16.msra.mxu0 %v4630_v51  ;;  %4887 = vmatpush1.bf16.msra.mxu1 %v4886_v25  ;;  %v5154_v51 = vpack.c.bf16 %v587_v11, %v579_v7  ;;  %v4900_v25 = vpack.c.bf16 %v602_v19, %v594_v17  ;;  %v642_v7 = vld [vmem:[#allocation8 + $0x328] sm:$0xff]  ;;  %v652_v11 = vld [vmem:[#allocation8 + $0x378] sm:$0xff] }
 0x236   :  { %4889 = vmatprep.subr.bf16.mxu0 %v4888_v28  ;;  %5145 = vmatprep.subr.bf16.mxu1 %v5144_v31  ;;  %v595_v28 = vld [vmem:[#allocation8 + $0x1b0] sm:$0xff]  ;;  %v5156_v31 = vpack.c.bf16 %v604_v22, %v596_v20  ;;  %v641_v22 = vld [vmem:[#allocation8 + $0x320] sm:$0xff] }
 0x237   :  { %v5158_v30 = vpack.c.bf16 %v603_v34, %v595_v28  ;;  %v666_v28 = vld [vmem:[#allocation8 + $0x3e8] sm:$0xff]  ;;  %v668_v34 = vld [vmem:[#allocation8 + $0x3f8] sm:$0xff] }
 0x238   :  { %1903 = vmatmul.mubr.f32.vlgmr.msra.gmra.mrb[8].mxu0 %v6633_v14  ;;  %2211 = vmatmul.mubr.f32.vlgmr.msra.gmra.mrb[8].mxu1 %v6633_v14  ;;  %v4916_v41 = vpack.c.bf16 %v666_v28, %v658_v27 }
 0x239   :  { %4891 = vmatpush1.bf16.msra.mxu0 %v4890_v39  ;;  %5147 = vmatpush1.bf16.msra.mxu1 %v5146_v48  ;;  %v617_v39 = vld [vmem:[#allocation8 + $0x260] sm:$0xff]  ;;  %v611_v48 = vld [vmem:[#allocation8 + $0x230] sm:$0xff] }
 0x23a   :  { %1908 = vmatprep.mubr.f32.mxu0 %v6635_v42  ;;  %2216 = vmatprep.mubr.f32.mxu1 %v6635_v42  ;;  %v5162_v63 = vpack.c.bf16 %v619_v43, %v611_v48  ;;  %v682_v48 = vld [vmem:[#allocation8 + $0x468] sm:$0xff]  ;;  %v684_v43 = vld [vmem:[#allocation8 + $0x478] sm:$0xff] }
 0x23b   :  { %4893 = vmatprep.subr.bf16.mxu0 %v4892_v60  ;;  %5149 = vmatprep.subr.bf16.mxu1 %v5148_v12  ;;  %v626_v60 = vld [vmem:[#allocation8 + $0x2a8] sm:$0xff] }
 0x23c   :  { %1909 = vmatmul.mubr.f32.gmra.mrb[10].mxu0 %v6637_v37  ;;  %2217 = vmatmul.mubr.f32.gmra.mrb[10].mxu1 %v6637_v37  ;;  %v634_v12 = vld [vmem:[#allocation8 + $0x2e8] sm:$0xff] }
 0x23d   :  { %4895 = vmatpush1.bf16.msra.mxu0 %v4894_v4  ;;  %2287 = vmatprep.mubr.f32.mxu0 %v6517_v16  ;;  %v4908_v2 = vpack.c.bf16 %v634_v12, %v626_v60  ;;  %v633_v4 = vld [vmem:[#allocation8 + $0x2e0] sm:$0xff] }
 0x23e   :  { %5151 = vmatpush1.bf16.msra.mxu1 %v5150_v5  ;;  %2595 = vmatprep.mubr.f32.mxu1 %v6517_v16  ;;  %v609_v16 = vld [vmem:[#allocation8 + $0x220] sm:$0xff]  ;;  %v627_v5 = vld [vmem:[#allocation8 + $0x2b0] sm:$0xff]  ;;  %v4910_v17 = vpack.c.bf16 %v633_v4, %v625_v3  ;;  %v690_v4 = vld [vmem:[#allocation8 + $0x4a8] sm:$0xff] }
 0x23f   :  { %4897 = vmatprep.subr.bf16.mxu0 %v4896_v9  ;;  %5153 = vmatprep.subr.bf16.mxu1 %v5152_v10  ;;  %v4906_v32 = vpack.c.bf16 %v617_v39, %v609_v16  ;;  %v650_v9 = vld [vmem:[#allocation8 + $0x368] sm:$0xff]  ;;  %v644_v10 = vld [vmem:[#allocation8 + $0x338] sm:$0xff]  ;;  %v5166_v19 = vpack.c.bf16 %v635_v38, %v627_v5  ;;  %v667_v16 = vld [vmem:[#allocation8 + $0x3f0] sm:$0xff] }
 0x240   :  { %v4912_v20 = vpack.c.bf16 %v650_v9, %v642_v7  ;;  %v674_v39 = vld [vmem:[#allocation8 + $0x428] sm:$0xff]  ;;  %v683_v3 = vld [vmem:[#allocation8 + $0x470] sm:$0xff]  ;;  %v700_v38 = vld [vmem:[#allocation8 + $0x4f8] sm:$0xff] }
 0x241   :  { %4899 = vmatpush1.bf16.msra.mxu0 %v4898_v24  ;;  %v649_v24 = vld [vmem:[#allocation8 + $0x360] sm:$0xff]  ;;  %v4920_v55 = vpack.c.bf16 %v682_v48, %v674_v39  ;;  %v698_v5 = vld [vmem:[#allocation8 + $0x4e8] sm:$0xff] }
 0x242   :  { %5155 = vmatpush1.bf16.msra.mxu1 %v5154_v51  ;;  %4901 = vmatprep.subr.bf16.mxu0 %v4900_v25  ;;  %v643_v51 = vld [vmem:[#allocation8 + $0x330] sm:$0xff]  ;;  %v5168_v25 = vpack.c.bf16 %v652_v11, %v644_v10  ;;  %v4914_v35 = vpack.c.bf16 %v649_v24, %v641_v22  ;;  %v4924_v10 = vpack.c.bf16 %v698_v5, %v690_v4  ;;  %v689_v11 = vld [vmem:[#allocation8 + $0x4a0] sm:$0xff]  ;;  %v706_v24 = vld [vmem:[#allocation8 + $0x528] sm:$0xff] }
 0x243   :  { %5157 = vmatprep.subr.bf16.mxu1 %v5156_v31  ;;  %v660_v31 = vld [vmem:[#allocation8 + $0x3b8] sm:$0xff]  ;;  %v5170_v15 = vpack.c.bf16 %v651_v26, %v643_v51  ;;  %v699_v22 = vld [vmem:[#allocation8 + $0x4f0] sm:$0xff]  ;;  %v714_v51 = vld [vmem:[#allocation8 + $0x568] sm:$0xff] }
 0x244   :  { %v716_v26 = vld [vmem:[#allocation8 + $0x578] sm:$0xff] }
 0x245   :  { %4903 = vmatpush1.bf16.msra.mxu0 %v4902_v46  ;;  %v665_v46 = vld [vmem:[#allocation8 + $0x3e0] sm:$0xff] }
 0x246   :  { %5159 = vmatpush1.bf16.msra.mxu1 %v5158_v30  ;;  %4905 = vmatprep.subr.bf16.mxu0 %v4904_v21  ;;  %v659_v30 = vld [vmem:[#allocation8 + $0x3b0] sm:$0xff]  ;;  %v5172_v21 = vpack.c.bf16 %v668_v34, %v660_v31  ;;  %v4918_v60 = vpack.c.bf16 %v665_v46, %v657_v45  ;;  %v4928_v31 = vpack.c.bf16 %v714_v51, %v706_v24  ;;  %v705_v34 = vld [vmem:[#allocation8 + $0x520] sm:$0xff]  ;;  %v722_v46 = vld [vmem:[#allocation8 + $0x5a8] sm:$0xff] }
 0x247   :  { %5161 = vmatprep.subr.bf16.mxu1 %v5160_v50  ;;  %v676_v50 = vld [vmem:[#allocation8 + $0x438] sm:$0xff]  ;;  %v5174_v12 = vpack.c.bf16 %v667_v16, %v659_v30  ;;  %v715_v45 = vld [vmem:[#allocation8 + $0x570] sm:$0xff]  ;;  %v730_v30 = vld [vmem:[#allocation8 + $0x5e8] sm:$0xff] }
 0x248   :  { %v732_v16 = vld [vmem:[#allocation8 + $0x5f8] sm:$0xff] }
 0x249   :  { %4907 = vmatpush1.bf16.msra.mxu0 %v4906_v32  ;;  %v681_v32 = vld [vmem:[#allocation8 + $0x460] sm:$0xff] }
 0x24a   :  { %5163 = vmatpush1.bf16.msra.mxu1 %v5162_v63  ;;  %4909 = vmatprep.subr.bf16.mxu0 %v4908_v2  ;;  %v675_v63 = vld [vmem:[#allocation8 + $0x430] sm:$0xff]  ;;  %v5176_v2 = vpack.c.bf16 %v684_v43, %v676_v50  ;;  %v4922_v7 = vpack.c.bf16 %v681_v32, %v673_v56  ;;  %v4932_v50 = vpack.c.bf16 %v730_v30, %v722_v46  ;;  %v721_v43 = vld [vmem:[#allocation8 + $0x5a0] sm:$0xff]  ;;  %v738_v32 = vld [vmem:[#allocation8 + $0x628] sm:$0xff] }
 0x24b   :  { %5165 = vmatprep.subr.bf16.mxu1 %v5164_v6  ;;  %v692_v6 = vld [vmem:[#allocation8 + $0x4b8] sm:$0xff]  ;;  %v5178_v9 = vpack.c.bf16 %v683_v3, %v675_v63  ;;  %v731_v56 = vld [vmem:[#allocation8 + $0x5f0] sm:$0xff]  ;;  %v746_v63 = vld [vmem:[#allocation8 + $0x668] sm:$0xff] }
 0x24c   :  { %v748_v3 = vld [vmem:[#allocation8 + $0x678] sm:$0xff] }
 0x24d   :  { %4911 = vmatpush1.bf16.msra.mxu0 %v4910_v17  ;;  %v697_v17 = vld [vmem:[#allocation8 + $0x4e0] sm:$0xff] }
 0x24e   :  { %5167 = vmatpush1.bf16.msra.mxu1 %v5166_v19  ;;  %4913 = vmatprep.subr.bf16.mxu0 %v4912_v20  ;;  %v691_v19 = vld [vmem:[#allocation8 + $0x4b0] sm:$0xff]  ;;  %v5180_v20 = vpack.c.bf16 %v700_v38, %v692_v6  ;;  %v4926_v27 = vpack.c.bf16 %v697_v17, %v689_v11  ;;  %v4936_v6 = vpack.c.bf16 %v746_v63, %v738_v32  ;;  %v737_v38 = vld [vmem:[#allocation8 + $0x620] sm:$0xff]  ;;  %v754_v17 = vld [vmem:[#allocation8 + $0x6a8] sm:$0xff] }
 0x24f   :  { %5169 = vmatprep.subr.bf16.mxu1 %v5168_v25  ;;  %v708_v25 = vld [vmem:[#allocation8 + $0x538] sm:$0xff]  ;;  %v5182_v28 = vpack.c.bf16 %v699_v22, %v691_v19  ;;  %v747_v11 = vld [vmem:[#allocation8 + $0x670] sm:$0xff]  ;;  %v762_v19 = vld [vmem:[#allocation8 + $0x6e8] sm:$0xff] }
 0x250   :  { %v764_v22 = vld [vmem:[#allocation8 + $0x6f8] sm:$0xff] }
 0x251   :  { %4915 = vmatpush1.bf16.msra.mxu0 %v4914_v35  ;;  %v713_v35 = vld [vmem:[#allocation8 + $0x560] sm:$0xff] }
 0x252   :  { %5171 = vmatpush1.bf16.msra.mxu1 %v5170_v15  ;;  %4917 = vmatprep.subr.bf16.mxu0 %v4916_v41  ;;  %v707_v15 = vld [vmem:[#allocation8 + $0x530] sm:$0xff]  ;;  %v5184_v41 = vpack.c.bf16 %v716_v26, %v708_v25  ;;  %v4930_v39 = vpack.c.bf16 %v713_v35, %v705_v34  ;;  %v4940_v25 = vpack.c.bf16 %v762_v19, %v754_v17  ;;  %v753_v26 = vld [vmem:[#allocation8 + $0x6a0] sm:$0xff]  ;;  %v770_v35 = vld [vmem:[#allocation8 + $0x728] sm:$0xff] }
 0x253   :  { %5173 = vmatprep.subr.bf16.mxu1 %v5172_v21  ;;  %v724_v21 = vld [vmem:[#allocation8 + $0x5b8] sm:$0xff]  ;;  %v5186_v48 = vpack.c.bf16 %v715_v45, %v707_v15  ;;  %v763_v34 = vld [vmem:[#allocation8 + $0x6f0] sm:$0xff]  ;;  %v778_v15 = vld [vmem:[#allocation8 + $0x768] sm:$0xff] }
 0x254   :  { %v780_v45 = vld [vmem:[#allocation8 + $0x778] sm:$0xff] }
 0x255   :  { %4919 = vmatpush1.bf16.msra.mxu0 %v4918_v60  ;;  %v729_v60 = vld [vmem:[#allocation8 + $0x5e0] sm:$0xff] }
 0x256   :  { %5175 = vmatpush1.bf16.msra.mxu1 %v5174_v12  ;;  %4921 = vmatprep.subr.bf16.mxu0 %v4920_v55  ;;  %v723_v12 = vld [vmem:[#allocation8 + $0x5b0] sm:$0xff]  ;;  %v5188_v55 = vpack.c.bf16 %v732_v16, %v724_v21  ;;  %v4934_v4 = vpack.c.bf16 %v729_v60, %v721_v43  ;;  %v4944_v21 = vpack.c.bf16 %v778_v15, %v770_v35  ;;  %v769_v16 = vld [vmem:[#allocation8 + $0x720] sm:$0xff]  ;;  %v786_v60 = vld [vmem:[#allocation8 + $0x7a8] sm:$0xff] }
 0x257   :  { %5177 = vmatprep.subr.bf16.mxu1 %v5176_v2  ;;  %v740_v2 = vld [vmem:[#allocation8 + $0x638] sm:$0xff]  ;;  %v5190_v5 = vpack.c.bf16 %v731_v56, %v723_v12  ;;  %v779_v43 = vld [vmem:[#allocation8 + $0x770] sm:$0xff]  ;;  %v794_v12 = vld [vmem:[#allocation8 + $0x7e8] sm:$0xff] }
 0x258   :  { %v796_v56 = vld [vmem:[#allocation8 + $0x7f8] sm:$0xff] }
 0x259   :  { %4923 = vmatpush1.bf16.msra.mxu0 %v4922_v7  ;;  %v745_v7 = vld [vmem:[#allocation8 + $0x660] sm:$0xff] }
 0x25a   :  { %5179 = vmatpush1.bf16.msra.mxu1 %v5178_v9  ;;  %4925 = vmatprep.subr.bf16.mxu0 %v4924_v10  ;;  %v739_v9 = vld [vmem:[#allocation8 + $0x630] sm:$0xff]  ;;  %v5192_v10 = vpack.c.bf16 %v748_v3, %v740_v2  ;;  %v4938_v24 = vpack.c.bf16 %v745_v7, %v737_v38  ;;  %v4948_v2 = vpack.c.bf16 %v794_v12, %v786_v60  ;;  %v785_v3 = vld [vmem:[#allocation8 + $0x7a0] sm:$0xff]  ;;  %v802_v7 = vld [vmem:[#allocation8 + $0x828] sm:$0xff] }
 0x25b   :  { %5181 = vmatprep.subr.bf16.mxu1 %v5180_v20  ;;  %v756_v20 = vld [vmem:[#allocation8 + $0x6b8] sm:$0xff]  ;;  %v5194_v51 = vpack.c.bf16 %v747_v11, %v739_v9  ;;  %v795_v38 = vld [vmem:[#allocation8 + $0x7f0] sm:$0xff]  ;;  %v810_v9 = vld [vmem:[#allocation8 + $0x868] sm:$0xff] }
 0x25c   :  { %v812_v11 = vld [vmem:[#allocation8 + $0x878] sm:$0xff] }
 0x25d   :  { %4927 = vmatpush1.bf16.msra.mxu0 %v4926_v27  ;;  %v761_v27 = vld [vmem:[#allocation8 + $0x6e0] sm:$0xff] }
 0x25e   :  { %5183 = vmatpush1.bf16.msra.mxu1 %v5182_v28  ;;  %4929 = vmatprep.subr.bf16.mxu0 %v4928_v31  ;;  %v755_v28 = vld [vmem:[#allocation8 + $0x6b0] sm:$0xff]  ;;  %v5196_v31 = vpack.c.bf16 %v764_v22, %v756_v20  ;;  %v4942_v46 = vpack.c.bf16 %v761_v27, %v753_v26  ;;  %v4952_v20 = vpack.c.bf16 %v810_v9, %v802_v7  ;;  %v818_v27 = vld [vmem:[#allocation8 + $0x8a8] sm:$0xff]  ;;  %v849_v9 = vld [vmem:[#allocation8 + $0x9a0] sm:$0xff] }
 0x25f   :  { %5185 = vmatprep.subr.bf16.mxu1 %v5184_v41  ;;  %v772_v41 = vld [vmem:[#allocation8 + $0x738] sm:$0xff]  ;;  %v5198_v30 = vpack.c.bf16 %v763_v34, %v755_v28  ;;  %v811_v26 = vld [vmem:[#allocation8 + $0x870] sm:$0xff]  ;;  %v826_v28 = vld [vmem:[#allocation8 + $0x8e8] sm:$0xff] }
 0x260   :  { %v828_v34 = vld [vmem:[#allocation8 + $0x8f8] sm:$0xff] }
 0x261   :  { %4931 = vmatpush1.bf16.msra.mxu0 %v4930_v39  ;;  %v777_v39 = vld [vmem:[#allocation8 + $0x760] sm:$0xff] }
 0x262   :  { %5187 = vmatpush1.bf16.msra.mxu1 %v5186_v48  ;;  %4933 = vmatprep.subr.bf16.mxu0 %v4932_v50  ;;  %v771_v48 = vld [vmem:[#allocation8 + $0x730] sm:$0xff]  ;;  %v5200_v50 = vpack.c.bf16 %v780_v45, %v772_v41  ;;  %v4946_v32 = vpack.c.bf16 %v777_v39, %v769_v16  ;;  %v4956_v41 = vpack.c.bf16 %v826_v28, %v818_v27  ;;  %v817_v45 = vld [vmem:[#allocation8 + $0x8a0] sm:$0xff]  ;;  %v834_v39 = vld [vmem:[#allocation8 + $0x928] sm:$0xff] }
 0x263   :  { %5189 = vmatprep.subr.bf16.mxu1 %v5188_v55  ;;  %v788_v55 = vld [vmem:[#allocation8 + $0x7b8] sm:$0xff]  ;;  %v5202_v63 = vpack.c.bf16 %v779_v43, %v771_v48  ;;  %v827_v16 = vld [vmem:[#allocation8 + $0x8f0] sm:$0xff]  ;;  %v842_v48 = vld [vmem:[#allocation8 + $0x968] sm:$0xff] }
 0x264   :  { %v844_v43 = vld [vmem:[#allocation8 + $0x978] sm:$0xff]  ;;  %v873_v27 = vld [vmem:[#allocation8 + $0xa60] sm:$0xff]  ;;  %v867_v28 = vld [vmem:[#allocation8 + $0xa30] sm:$0xff] }
 0x265   :  { %4935 = vmatpush1.bf16.msra.mxu0 %v4934_v4  ;;  %v793_v4 = vld [vmem:[#allocation8 + $0x7e0] sm:$0xff] }
 0x266   :  { %5191 = vmatpush1.bf16.msra.mxu1 %v5190_v5  ;;  %4937 = vmatprep.subr.bf16.mxu0 %v4936_v6  ;;  %v787_v5 = vld [vmem:[#allocation8 + $0x7b0] sm:$0xff]  ;;  %v5204_v6 = vpack.c.bf16 %v796_v56, %v788_v55  ;;  %v4950_v17 = vpack.c.bf16 %v793_v4, %v785_v3  ;;  %v4960_v55 = vpack.c.bf16 %v842_v48, %v834_v39  ;;  %v833_v56 = vld [vmem:[#allocation8 + $0x920] sm:$0xff]  ;;  %v850_v3 = vld [vmem:[#allocation8 + $0x9a8] sm:$0xff] }
 0x267   :  { %5193 = vmatprep.subr.bf16.mxu1 %v5192_v10  ;;  %v804_v10 = vld [vmem:[#allocation8 + $0x838] sm:$0xff]  ;;  %v5206_v19 = vpack.c.bf16 %v795_v38, %v787_v5  ;;  %v858_v4 = vld [vmem:[#allocation8 + $0x9e8] sm:$0xff]  ;;  %v889_v39 = vld [vmem:[#allocation8 + $0xae0] sm:$0xff] }
 0x268   :  { %v5208_v22 = vpack.c.bf16 %v812_v11, %v804_v10  ;;  %v860_v5 = vld [vmem:[#allocation8 + $0x9f8] sm:$0xff]  ;;  %v4964_v7 = vpack.c.bf16 %v858_v4, %v850_v3  ;;  %v857_v10 = vld [vmem:[#allocation8 + $0x9e0] sm:$0xff]  ;;  %v851_v11 = vld [vmem:[#allocation8 + $0x9b0] sm:$0xff] }
 0x269   :  { %4939 = vmatpush1.bf16.msra.mxu0 %v4938_v24  ;;  %v801_v24 = vld [vmem:[#allocation8 + $0x820] sm:$0xff]  ;;  %v883_v48 = vld [vmem:[#allocation8 + $0xab0] sm:$0xff] }
 0x26a   :  { %5195 = vmatpush1.bf16.msra.mxu1 %v5194_v51  ;;  %4941 = vmatprep.subr.bf16.mxu0 %v4940_v25  ;;  %v809_v51 = vld [vmem:[#allocation8 + $0x860] sm:$0xff]  ;;  %v803_v25 = vld [vmem:[#allocation8 + $0x830] sm:$0xff] }
 0x26b   :  { %5197 = vmatprep.subr.bf16.mxu1 %v5196_v31  ;;  %v820_v31 = vld [vmem:[#allocation8 + $0x8b8] sm:$0xff]  ;;  %v4954_v35 = vpack.c.bf16 %v809_v51, %v801_v24  ;;  %v5210_v15 = vpack.c.bf16 %v811_v26, %v803_v25  ;;  %v4966_v51 = vpack.c.bf16 %v857_v10, %v849_v9  ;;  %v865_v26 = vld [vmem:[#allocation8 + $0xa20] sm:$0xff]  ;;  %v899_v4 = vld [vmem:[#allocation8 + $0xb30] sm:$0xff] }
 0x26c   :  { %v876_v24 = vld [vmem:[#allocation8 + $0xa78] sm:$0xff]  ;;  %v905_v3 = vld [vmem:[#allocation8 + $0xb60] sm:$0xff] }
 0x26d   :  { %4943 = vmatpush1.bf16.msra.mxu0 %v4942_v46  ;;  %v825_v46 = vld [vmem:[#allocation8 + $0x8e0] sm:$0xff]  ;;  %v924_v9 = vld [vmem:[#allocation8 + $0xbf8] sm:$0xff] }
 0x26e   :  { %5199 = vmatpush1.bf16.msra.mxu1 %v5198_v30  ;;  %4945 = vmatprep.subr.bf16.mxu0 %v4944_v21  ;;  %v819_v30 = vld [vmem:[#allocation8 + $0x8b0] sm:$0xff]  ;;  %v5212_v21 = vpack.c.bf16 %v828_v34, %v820_v31  ;;  %v4958_v60 = vpack.c.bf16 %v825_v46, %v817_v45  ;;  %v892_v45 = vld [vmem:[#allocation8 + $0xaf8] sm:$0xff]  ;;  %v4970_v46 = vpack.c.bf16 %v873_v27, %v865_v26 }
 0x26f   :  { %5201 = vmatprep.subr.bf16.mxu1 %v5200_v50  ;;  %v836_v50 = vld [vmem:[#allocation8 + $0x938] sm:$0xff]  ;;  %v5214_v12 = vpack.c.bf16 %v827_v16, %v819_v30  ;;  %v875_v34 = vld [vmem:[#allocation8 + $0xa70] sm:$0xff]  ;;  %v881_v16 = vld [vmem:[#allocation8 + $0xaa0] sm:$0xff] }
 0x270   :  { %v5226_v30 = vpack.c.bf16 %v875_v34, %v867_v28  ;;  %v940_v26 = vld [vmem:[#allocation8 + $0xc78] sm:$0xff]  ;;  %v929_v34 = vld [vmem:[#allocation8 + $0xc20] sm:$0xff] }
 0x271   :  { %4947 = vmatpush1.bf16.msra.mxu0 %v4946_v32  ;;  %v841_v32 = vld [vmem:[#allocation8 + $0x960] sm:$0xff] }
 0x272   :  { %5203 = vmatpush1.bf16.msra.mxu1 %v5202_v63  ;;  %4949 = vmatprep.subr.bf16.mxu0 %v4948_v2  ;;  %v835_v63 = vld [vmem:[#allocation8 + $0x930] sm:$0xff]  ;;  %v5216_v2 = vpack.c.bf16 %v844_v43, %v836_v50 }
 0x273   :  { %5205 = vmatprep.subr.bf16.mxu1 %v5204_v6  ;;  %v4962_v6 = vpack.c.bf16 %v841_v32, %v833_v56  ;;  %v891_v43 = vld [vmem:[#allocation8 + $0xaf0] sm:$0xff]  ;;  %v908_v56 = vld [vmem:[#allocation8 + $0xb78] sm:$0xff]  ;;  %v4974_v32 = vpack.c.bf16 %v889_v39, %v881_v16 }
 0x274   :  { %v956_v16 = vld [vmem:[#allocation8 + $0xcf8] sm:$0xff] }
 0x275   :  { %4951 = vmatpush1.bf16.msra.mxu0 %v4950_v17 }
 0x276   :  { %5207 = vmatpush1.bf16.msra.mxu1 %v5206_v19  ;;  %4953 = vmatprep.subr.bf16.mxu0 %v4952_v20  ;;  %v859_v19 = vld [vmem:[#allocation8 + $0x9f0] sm:$0xff]  ;;  %v866_v20 = vld [vmem:[#allocation8 + $0xa28] sm:$0xff] }
 0x277   :  { %5209 = vmatprep.subr.bf16.mxu1 %v5208_v22  ;;  %v868_v22 = vld [vmem:[#allocation8 + $0xa38] sm:$0xff] }
 0x278   :  { %2288 = vmatmul.mubr.f32.vlgmr.msra.gmra.mrb[12].mxu0 %v6519_v23  ;;  %v5224_v31 = vpack.c.bf16 %v876_v24, %v868_v22  ;;  %v923_v24 = vld [vmem:[#allocation8 + $0xbf0] sm:$0xff] }
 0x279   :  { %2596 = vmatmul.mubr.f32.vlgmr.msra.gmra.mrb[12].mxu1 %v6519_v23  ;;  %2293 = vmatprep.mubr.f32.mxu0 %v6530_v0  ;;  %v843_v23 = vld [vmem:[#allocation8 + $0x970] sm:$0xff] }
 0x27a   :  { %4955 = vmatpush1.bf16.msra.mxu0 %v4954_v35  ;;  %2601 = vmatprep.mubr.f32.mxu1 %v6530_v0  ;;  %v852_v0 = vld [vmem:[#allocation8 + $0x9b8] sm:$0xff]  ;;  %v5218_v38 = vpack.c.bf16 %v843_v23, %v835_v63  ;;  %v882_v35 = vld [vmem:[#allocation8 + $0xaa8] sm:$0xff]  ;;  %v5230_v63 = vpack.c.bf16 %v891_v43, %v883_v48  ;;  %v897_v23 = vld [vmem:[#allocation8 + $0xb20] sm:$0xff] }
 0x27b   :  { %5211 = vmatpush1.bf16.msra.mxu1 %v5210_v15  ;;  %4957 = vmatprep.subr.bf16.mxu0 %v4956_v41  ;;  %v5220_v17 = vpack.c.bf16 %v860_v5, %v852_v0  ;;  %v890_v15 = vld [vmem:[#allocation8 + $0xae8] sm:$0xff]  ;;  %v884_v41 = vld [vmem:[#allocation8 + $0xab8] sm:$0xff]  ;;  %v907_v5 = vld [vmem:[#allocation8 + $0xb70] sm:$0xff]  ;;  %v4978_v10 = vpack.c.bf16 %v905_v3, %v897_v23 }
 0x27c   :  { %2294 = vmatmul.mubr.f32.gmra.mrb[14].mxu0 %v6526_v36  ;;  %5213 = vmatprep.subr.bf16.mxu1 %v5212_v21  ;;  %v4972_v21 = vpack.c.bf16 %v890_v15, %v882_v35  ;;  %v5228_v50 = vpack.c.bf16 %v892_v45, %v884_v41  ;;  %v937_v35 = vld [vmem:[#allocation8 + $0xc60] sm:$0xff]  ;;  %v931_v15 = vld [vmem:[#allocation8 + $0xc30] sm:$0xff]  ;;  %v972_v23 = vld [vmem:[#allocation8 + $0xd78] sm:$0xff] }
 0x27d   :  { %2602 = vmatmul.mubr.f32.gmra.mrb[14].mxu1 %v6526_v36  ;;  %2364 = vmatprep.mubr.f32.mxu0 %v6538_v53  ;;  %v874_v36 = vld [vmem:[#allocation8 + $0xa68] sm:$0xff]  ;;  %v939_v45 = vld [vmem:[#allocation8 + $0xc70] sm:$0xff]  ;;  %v4986_v39 = vpack.c.bf16 %v937_v35, %v929_v34  ;;  %v945_v43 = vld [vmem:[#allocation8 + $0xca0] sm:$0xff] }
 0x27e   :  { %4959 = vmatpush1.bf16.msra.mxu0 %v4958_v60  ;;  %2672 = vmatprep.mubr.f32.mxu1 %v6538_v53  ;;  %v5222_v53 = vpack.c.bf16 %v859_v19, %v851_v11  ;;  %v4968_v25 = vpack.c.bf16 %v874_v36, %v866_v20  ;;  %v898_v60 = vld [vmem:[#allocation8 + $0xb28] sm:$0xff]  ;;  %v5234_v11 = vpack.c.bf16 %v907_v5, %v899_v4  ;;  %v913_v19 = vld [vmem:[#allocation8 + $0xba0] sm:$0xff]  ;;  %v915_v36 = vld [vmem:[#allocation8 + $0xbb0] sm:$0xff] }
 0x27f   :  { %5215 = vmatpush1.bf16.msra.mxu1 %v5214_v12  ;;  %4961 = vmatprep.subr.bf16.mxu0 %v4960_v55  ;;  %v906_v12 = vld [vmem:[#allocation8 + $0xb68] sm:$0xff]  ;;  %v900_v55 = vld [vmem:[#allocation8 + $0xb38] sm:$0xff]  ;;  %v921_v20 = vld [vmem:[#allocation8 + $0xbe0] sm:$0xff]  ;;  %v5238_v28 = vpack.c.bf16 %v923_v24, %v915_v36  ;;  %v5242_v48 = vpack.c.bf16 %v939_v45, %v931_v15 }
 0x280   :  { %5217 = vmatprep.subr.bf16.mxu1 %v5216_v2  ;;  %v4976_v2 = vpack.c.bf16 %v906_v12, %v898_v60  ;;  %v5232_v0 = vpack.c.bf16 %v908_v56, %v900_v55  ;;  %v4982_v27 = vpack.c.bf16 %v921_v20, %v913_v19  ;;  %v953_v60 = vld [vmem:[#allocation8 + $0xce0] sm:$0xff]  ;;  %v947_v12 = vld [vmem:[#allocation8 + $0xcb0] sm:$0xff]  ;;  %v988_v19 = vld [vmem:[#allocation8 + $0xdf8] sm:$0xff] }
 0x281   :  { %v955_v56 = vld [vmem:[#allocation8 + $0xcf0] sm:$0xff]  ;;  %v4990_v3 = vpack.c.bf16 %v953_v60, %v945_v43  ;;  %v961_v5 = vld [vmem:[#allocation8 + $0xd20] sm:$0xff]  ;;  %v1004_v34 = vld [vmem:[#allocation8 + $0xe78] sm:$0xff] }
 0x282   :  { %4963 = vmatpush1.bf16.msra.mxu0 %v4962_v6  ;;  %v914_v6 = vld [vmem:[#allocation8 + $0xba8] sm:$0xff]  ;;  %v5246_v4 = vpack.c.bf16 %v955_v56, %v947_v12  ;;  %v977_v24 = vld [vmem:[#allocation8 + $0xda0] sm:$0xff]  ;;  %v1020_v43 = vld [vmem:[#allocation8 + $0xef8] sm:$0xff] }
 0x283   :  { %5219 = vmatpush1.bf16.msra.mxu1 %v5218_v38  ;;  %4965 = vmatprep.subr.bf16.mxu0 %v4964_v7  ;;  %v922_v38 = vld [vmem:[#allocation8 + $0xbe8] sm:$0xff]  ;;  %v916_v7 = vld [vmem:[#allocation8 + $0xbb8] sm:$0xff]  ;;  %v993_v45 = vld [vmem:[#allocation8 + $0xe20] sm:$0xff] }
 0x284   :  { %5221 = vmatprep.subr.bf16.mxu1 %v5220_v17  ;;  %v4980_v17 = vpack.c.bf16 %v922_v38, %v914_v6  ;;  %v5236_v22 = vpack.c.bf16 %v924_v9, %v916_v7  ;;  %v969_v6 = vld [vmem:[#allocation8 + $0xd60] sm:$0xff]  ;;  %v963_v38 = vld [vmem:[#allocation8 + $0xd30] sm:$0xff] }
 0x285   :  { %v971_v9 = vld [vmem:[#allocation8 + $0xd70] sm:$0xff]  ;;  %v4994_v20 = vpack.c.bf16 %v969_v6, %v961_v5  ;;  %v1009_v56 = vld [vmem:[#allocation8 + $0xea0] sm:$0xff]  ;;  %v1036_v5 = vld [vmem:[#allocation8 + $0xf78] sm:$0xff] }
 0x286   :  { %4967 = vmatpush1.bf16.msra.mxu0 %v4966_v51  ;;  %v930_v51 = vld [vmem:[#allocation8 + $0xc28] sm:$0xff]  ;;  %v5250_v36 = vpack.c.bf16 %v971_v9, %v963_v38  ;;  %v1025_v9 = vld [vmem:[#allocation8 + $0xf20] sm:$0xff] }
 0x287   :  { %5223 = vmatpush1.bf16.msra.mxu1 %v5222_v53  ;;  %4969 = vmatprep.subr.bf16.mxu0 %v4968_v25  ;;  %v938_v53 = vld [vmem:[#allocation8 + $0xc68] sm:$0xff]  ;;  %v932_v25 = vld [vmem:[#allocation8 + $0xc38] sm:$0xff] }
 0x288   :  { %5225 = vmatprep.subr.bf16.mxu1 %v5224_v31  ;;  %v4984_v31 = vpack.c.bf16 %v938_v53, %v930_v51  ;;  %v5240_v41 = vpack.c.bf16 %v940_v26, %v932_v25  ;;  %v985_v51 = vld [vmem:[#allocation8 + $0xde0] sm:$0xff]  ;;  %v979_v53 = vld [vmem:[#allocation8 + $0xdb0] sm:$0xff] }
 0x289   :  { %v987_v26 = vld [vmem:[#allocation8 + $0xdf0] sm:$0xff]  ;;  %v4998_v35 = vpack.c.bf16 %v985_v51, %v977_v24  ;;  %v1052_v24 = vld [vmem:[#allocation8 + $0xff8] sm:$0xff] }
 0x28a   :  { %4971 = vmatpush1.bf16.msra.mxu0 %v4970_v46  ;;  %v946_v46 = vld [vmem:[#allocation8 + $0xca8] sm:$0xff]  ;;  %v5254_v15 = vpack.c.bf16 %v987_v26, %v979_v53  ;;  %v1041_v26 = vld [vmem:[#allocation8 + $0xfa0] sm:$0xff] }
 0x28b   :  { %5227 = vmatpush1.bf16.msra.mxu1 %v5226_v30  ;;  %4973 = vmatprep.subr.bf16.mxu0 %v4972_v21  ;;  %v954_v30 = vld [vmem:[#allocation8 + $0xce8] sm:$0xff]  ;;  %v948_v21 = vld [vmem:[#allocation8 + $0xcb8] sm:$0xff] }
 0x28c   :  { %5229 = vmatprep.subr.bf16.mxu1 %v5228_v50  ;;  %v4988_v50 = vpack.c.bf16 %v954_v30, %v946_v46  ;;  %v5244_v55 = vpack.c.bf16 %v956_v16, %v948_v21  ;;  %v1001_v46 = vld [vmem:[#allocation8 + $0xe60] sm:$0xff]  ;;  %v995_v30 = vld [vmem:[#allocation8 + $0xe30] sm:$0xff] }
 0x28d   :  { %v1003_v16 = vld [vmem:[#allocation8 + $0xe70] sm:$0xff]  ;;  %v5002_v60 = vpack.c.bf16 %v1001_v46, %v993_v45  ;;  %v1068_v45 = vld [vmem:[#allocation8 + $0x1078] sm:$0xff] }
 0x28e   :  { %4975 = vmatpush1.bf16.msra.mxu0 %v4974_v32  ;;  %v962_v32 = vld [vmem:[#allocation8 + $0xd28] sm:$0xff]  ;;  %v5258_v12 = vpack.c.bf16 %v1003_v16, %v995_v30 }
 0x28f   :  { %5231 = vmatpush1.bf16.msra.mxu1 %v5230_v63  ;;  %4977 = vmatprep.subr.bf16.mxu0 %v4976_v2  ;;  %v970_v63 = vld [vmem:[#allocation8 + $0xd68] sm:$0xff]  ;;  %v964_v2 = vld [vmem:[#allocation8 + $0xd38] sm:$0xff] }
 0x290   :  { %5233 = vmatprep.subr.bf16.mxu1 %v5232_v0  ;;  %v4992_v0 = vpack.c.bf16 %v970_v63, %v962_v32  ;;  %v5248_v7 = vpack.c.bf16 %v972_v23, %v964_v2  ;;  %v1017_v32 = vld [vmem:[#allocation8 + $0xee0] sm:$0xff]  ;;  %v1011_v63 = vld [vmem:[#allocation8 + $0xeb0] sm:$0xff] }
 0x291   :  { %v1019_v23 = vld [vmem:[#allocation8 + $0xef0] sm:$0xff]  ;;  %v5006_v6 = vpack.c.bf16 %v1017_v32, %v1009_v56  ;;  %v1084_v56 = vld [vmem:[#allocation8 + $0x10f8] sm:$0xff] }
 0x292   :  { %4979 = vmatpush1.bf16.msra.mxu0 %v4978_v10  ;;  %v978_v10 = vld [vmem:[#allocation8 + $0xda8] sm:$0xff]  ;;  %v5262_v38 = vpack.c.bf16 %v1019_v23, %v1011_v63  ;;  %v1073_v23 = vld [vmem:[#allocation8 + $0x10a0] sm:$0xff] }
 0x293   :  { %5235 = vmatpush1.bf16.msra.mxu1 %v5234_v11  ;;  %4981 = vmatprep.subr.bf16.mxu0 %v4980_v17  ;;  %v986_v11 = vld [vmem:[#allocation8 + $0xde8] sm:$0xff]  ;;  %v980_v17 = vld [vmem:[#allocation8 + $0xdb8] sm:$0xff] }
 0x294   :  { %5237 = vmatprep.subr.bf16.mxu1 %v5236_v22  ;;  %v4996_v22 = vpack.c.bf16 %v986_v11, %v978_v10  ;;  %v5252_v25 = vpack.c.bf16 %v988_v19, %v980_v17  ;;  %v1033_v10 = vld [vmem:[#allocation8 + $0xf60] sm:$0xff]  ;;  %v1027_v11 = vld [vmem:[#allocation8 + $0xf30] sm:$0xff] }
 0x295   :  { %v1035_v19 = vld [vmem:[#allocation8 + $0xf70] sm:$0xff]  ;;  %v5010_v51 = vpack.c.bf16 %v1033_v10, %v1025_v9  ;;  %v1100_v9 = vld [vmem:[#allocation8 + $0x1178] sm:$0xff] }
 0x296   :  { %4983 = vmatpush1.bf16.msra.mxu0 %v4982_v27  ;;  %v994_v27 = vld [vmem:[#allocation8 + $0xe28] sm:$0xff]  ;;  %v5266_v53 = vpack.c.bf16 %v1035_v19, %v1027_v11  ;;  %v1089_v19 = vld [vmem:[#allocation8 + $0x1120] sm:$0xff] }
 0x297   :  { %5239 = vmatpush1.bf16.msra.mxu1 %v5238_v28  ;;  %4985 = vmatprep.subr.bf16.mxu0 %v4984_v31  ;;  %v1002_v28 = vld [vmem:[#allocation8 + $0xe68] sm:$0xff]  ;;  %v996_v31 = vld [vmem:[#allocation8 + $0xe38] sm:$0xff] }
 0x298   :  { %5241 = vmatprep.subr.bf16.mxu1 %v5240_v41  ;;  %v5000_v41 = vpack.c.bf16 %v1002_v28, %v994_v27  ;;  %v5256_v21 = vpack.c.bf16 %v1004_v34, %v996_v31  ;;  %v1049_v27 = vld [vmem:[#allocation8 + $0xfe0] sm:$0xff]  ;;  %v1043_v28 = vld [vmem:[#allocation8 + $0xfb0] sm:$0xff] }
 0x299   :  { %v1051_v34 = vld [vmem:[#allocation8 + $0xff0] sm:$0xff]  ;;  %v5014_v46 = vpack.c.bf16 %v1049_v27, %v1041_v26 }
 0x29a   :  { %4987 = vmatpush1.bf16.msra.mxu0 %v4986_v39  ;;  %v1010_v39 = vld [vmem:[#allocation8 + $0xea8] sm:$0xff]  ;;  %v5270_v30 = vpack.c.bf16 %v1051_v34, %v1043_v28  ;;  %v1105_v28 = vld [vmem:[#allocation8 + $0x11a0] sm:$0xff]  ;;  %v1107_v34 = vld [vmem:[#allocation8 + $0x11b0] sm:$0xff] }
 0x29b   :  { %5243 = vmatpush1.bf16.msra.mxu1 %v5242_v48  ;;  %4989 = vmatprep.subr.bf16.mxu0 %v4988_v50  ;;  %v1018_v48 = vld [vmem:[#allocation8 + $0xee8] sm:$0xff]  ;;  %v1012_v50 = vld [vmem:[#allocation8 + $0xeb8] sm:$0xff] }
 0x29c   :  { %5245 = vmatprep.subr.bf16.mxu1 %v5244_v55  ;;  %v5004_v55 = vpack.c.bf16 %v1018_v48, %v1010_v39  ;;  %v5260_v2 = vpack.c.bf16 %v1020_v43, %v1012_v50  ;;  %v1057_v39 = vld [vmem:[#allocation8 + $0x1020] sm:$0xff]  ;;  %v1059_v50 = vld [vmem:[#allocation8 + $0x1030] sm:$0xff] }
 0x29d   :  { %v1065_v48 = vld [vmem:[#allocation8 + $0x1060] sm:$0xff]  ;;  %v1067_v43 = vld [vmem:[#allocation8 + $0x1070] sm:$0xff] }
 0x29e   :  { %4991 = vmatpush1.bf16.msra.mxu0 %v4990_v3  ;;  %v1026_v3 = vld [vmem:[#allocation8 + $0xf28] sm:$0xff]  ;;  %v5018_v32 = vpack.c.bf16 %v1065_v48, %v1057_v39  ;;  %v5274_v63 = vpack.c.bf16 %v1067_v43, %v1059_v50  ;;  %v1129_v39 = vld [vmem:[#allocation8 + $0x1260] sm:$0xff]  ;;  %v1123_v48 = vld [vmem:[#allocation8 + $0x1230] sm:$0xff] }
 0x29f   :  { %5247 = vmatpush1.bf16.msra.mxu1 %v5246_v4  ;;  %4993 = vmatprep.subr.bf16.mxu0 %v4992_v0  ;;  %v1034_v4 = vld [vmem:[#allocation8 + $0xf68] sm:$0xff]  ;;  %v1028_v0 = vld [vmem:[#allocation8 + $0xf38] sm:$0xff]  ;;  %v1131_v43 = vld [vmem:[#allocation8 + $0x1270] sm:$0xff] }
 0x2a0   :  { %5249 = vmatprep.subr.bf16.mxu1 %v5248_v7  ;;  %v5008_v7 = vpack.c.bf16 %v1034_v4, %v1026_v3  ;;  %v5264_v17 = vpack.c.bf16 %v1036_v5, %v1028_v0  ;;  %v1081_v3 = vld [vmem:[#allocation8 + $0x10e0] sm:$0xff]  ;;  %v1075_v4 = vld [vmem:[#allocation8 + $0x10b0] sm:$0xff] }
 0x2a1   :  { %v1083_v5 = vld [vmem:[#allocation8 + $0x10f0] sm:$0xff]  ;;  %v5022_v10 = vpack.c.bf16 %v1081_v3, %v1073_v23  ;;  %v1137_v23 = vld [vmem:[#allocation8 + $0x12a0] sm:$0xff] }
 0x2a2   :  { %4995 = vmatpush1.bf16.msra.mxu0 %v4994_v20  ;;  %v1042_v20 = vld [vmem:[#allocation8 + $0xfa8] sm:$0xff]  ;;  %v5278_v11 = vpack.c.bf16 %v1083_v5, %v1075_v4  ;;  %v1145_v3 = vld [vmem:[#allocation8 + $0x12e0] sm:$0xff]  ;;  %v1139_v4 = vld [vmem:[#allocation8 + $0x12b0] sm:$0xff] }
 0x2a3   :  { %5251 = vmatpush1.bf16.msra.mxu1 %v5250_v36  ;;  %4997 = vmatprep.subr.bf16.mxu0 %v4996_v22  ;;  %v1050_v36 = vld [vmem:[#allocation8 + $0xfe8] sm:$0xff]  ;;  %v1044_v22 = vld [vmem:[#allocation8 + $0xfb8] sm:$0xff]  ;;  %v1147_v5 = vld [vmem:[#allocation8 + $0x12f0] sm:$0xff] }
 0x2a4   :  { %5253 = vmatprep.subr.bf16.mxu1 %v5252_v25  ;;  %v5012_v25 = vpack.c.bf16 %v1050_v36, %v1042_v20  ;;  %v5268_v31 = vpack.c.bf16 %v1052_v24, %v1044_v22  ;;  %v1097_v20 = vld [vmem:[#allocation8 + $0x1160] sm:$0xff]  ;;  %v1091_v36 = vld [vmem:[#allocation8 + $0x1130] sm:$0xff]  ;;  %v1106_v24 = vld [vmem:[#allocation8 + $0x11a8] sm:$0xff] }
 0x2a6   :  { %4999 = vmatpush1.bf16.msra.mxu0 %v4998_v35  ;;  %v1058_v35 = vld [vmem:[#allocation8 + $0x1028] sm:$0xff] }
 0x2a7   :  { %5255 = vmatpush1.bf16.msra.mxu1 %v5254_v15  ;;  %5001 = vmatprep.subr.bf16.mxu0 %v5000_v41  ;;  %v1066_v15 = vld [vmem:[#allocation8 + $0x1068] sm:$0xff]  ;;  %v1060_v41 = vld [vmem:[#allocation8 + $0x1038] sm:$0xff] }
 0x2a8   :  { %5257 = vmatprep.subr.bf16.mxu1 %v5256_v21  ;;  %v5016_v21 = vpack.c.bf16 %v1066_v15, %v1058_v35  ;;  %v5272_v16 = vpack.c.bf16 %v1068_v45, %v1060_v41  ;;  %v1115_v15 = vld [vmem:[#allocation8 + $0x11f0] sm:$0xff]  ;;  %v1122_v41 = vld [vmem:[#allocation8 + $0x1228] sm:$0xff]  ;;  %v1124_v45 = vld [vmem:[#allocation8 + $0x1238] sm:$0xff] }
 0x2aa   :  { %5003 = vmatpush1.bf16.msra.mxu0 %v5002_v60  ;;  %v1074_v60 = vld [vmem:[#allocation8 + $0x10a8] sm:$0xff] }
 0x2ab   :  { %5259 = vmatpush1.bf16.msra.mxu1 %v5258_v12  ;;  %5005 = vmatprep.subr.bf16.mxu0 %v5004_v55  ;;  %v1082_v12 = vld [vmem:[#allocation8 + $0x10e8] sm:$0xff]  ;;  %v1076_v55 = vld [vmem:[#allocation8 + $0x10b8] sm:$0xff] }
 0x2ac   :  { %5261 = vmatprep.subr.bf16.mxu1 %v5260_v2  ;;  %v5020_v2 = vpack.c.bf16 %v1082_v12, %v1074_v60  ;;  %v5276_v0 = vpack.c.bf16 %v1084_v56, %v1076_v55  ;;  %v1138_v60 = vld [vmem:[#allocation8 + $0x12a8] sm:$0xff]  ;;  %v1140_v55 = vld [vmem:[#allocation8 + $0x12b8] sm:$0xff] }
 0x2ad   :  { %v1146_v12 = vld [vmem:[#allocation8 + $0x12e8] sm:$0xff]  ;;  %v1148_v56 = vld [vmem:[#allocation8 + $0x12f8] sm:$0xff] }
 0x2ae   :  { %5007 = vmatpush1.bf16.msra.mxu0 %v5006_v6  ;;  %v1090_v6 = vld [vmem:[#allocation8 + $0x1128] sm:$0xff] }
 0x2af   :  { %5263 = vmatpush1.bf16.msra.mxu1 %v5262_v38  ;;  %5009 = vmatprep.subr.bf16.mxu0 %v5008_v7  ;;  %v1098_v38 = vld [vmem:[#allocation8 + $0x1168] sm:$0xff]  ;;  %v1092_v7 = vld [vmem:[#allocation8 + $0x1138] sm:$0xff] }
 0x2b0   :  { %5265 = vmatprep.subr.bf16.mxu1 %v5264_v17  ;;  %v5024_v17 = vpack.c.bf16 %v1098_v38, %v1090_v6  ;;  %v5280_v22 = vpack.c.bf16 %v1100_v9, %v1092_v7  ;;  %v1154_v6 = vld [vmem:[#allocation8 + $0x1328] sm:$0xff]  ;;  %v1156_v7 = vld [vmem:[#allocation8 + $0x1338] sm:$0xff] }
 0x2b1   :  { %v1162_v38 = vld [vmem:[#allocation8 + $0x1368] sm:$0xff]  ;;  %v1164_v9 = vld [vmem:[#allocation8 + $0x1378] sm:$0xff] }
 0x2b2   :  { %5011 = vmatpush1.bf16.msra.mxu0 %v5010_v51  ;;  %v1114_v51 = vld [vmem:[#allocation8 + $0x11e8] sm:$0xff] }
 0x2b3   :  { %5267 = vmatpush1.bf16.msra.mxu1 %v5266_v53  ;;  %5013 = vmatprep.subr.bf16.mxu0 %v5012_v25  ;;  %v1116_v53 = vld [vmem:[#allocation8 + $0x11f8] sm:$0xff]  ;;  %v5026_v25 = vpack.c.bf16 %v1097_v20, %v1089_v19  ;;  %v5028_v27 = vpack.c.bf16 %v1114_v51, %v1106_v24  ;;  %v1153_v19 = vld [vmem:[#allocation8 + $0x1320] sm:$0xff]  ;;  %v1170_v24 = vld [vmem:[#allocation8 + $0x13a8] sm:$0xff] }
 0x2b4   :  { %5269 = vmatprep.subr.bf16.mxu1 %v5268_v31  ;;  %v1113_v31 = vld [vmem:[#allocation8 + $0x11e0] sm:$0xff]  ;;  %v1178_v51 = vld [vmem:[#allocation8 + $0x13e8] sm:$0xff] }
 0x2b5   :  { %v1161_v20 = vld [vmem:[#allocation8 + $0x1360] sm:$0xff] }
 0x2b6   :  { %5015 = vmatpush1.bf16.msra.mxu0 %v5014_v46  ;;  %v1132_v46 = vld [vmem:[#allocation8 + $0x1278] sm:$0xff] }
 0x2b7   :  { %5271 = vmatpush1.bf16.msra.mxu1 %v5270_v30  ;;  %5017 = vmatprep.subr.bf16.mxu0 %v5016_v21  ;;  %v5030_v30 = vpack.c.bf16 %v1113_v31, %v1105_v28  ;;  %v5288_v50 = vpack.c.bf16 %v1132_v46, %v1124_v45  ;;  %v1169_v28 = vld [vmem:[#allocation8 + $0x13a0] sm:$0xff]  ;;  %v1188_v45 = vld [vmem:[#allocation8 + $0x1438] sm:$0xff] }
 0x2b8   :  { %5273 = vmatprep.subr.bf16.mxu1 %v5272_v16  ;;  %v1121_v16 = vld [vmem:[#allocation8 + $0x1220] sm:$0xff]  ;;  %v1196_v46 = vld [vmem:[#allocation8 + $0x1478] sm:$0xff] }
 0x2b9   :  { %2365 = vmatmul.mubr.f32.vlgmr.msra.gmra.mrb[12].mxu0 %v6570_v40  ;;  %v1177_v31 = vld [vmem:[#allocation8 + $0x13e0] sm:$0xff] }
 0x2ba   :  { %2673 = vmatmul.mubr.f32.vlgmr.msra.gmra.mrb[12].mxu1 %v6570_v40  ;;  %2370 = vmatprep.mubr.f32.mxu0 %v6575_v57  ;;  %v1099_v40 = vld [vmem:[#allocation8 + $0x1170] sm:$0xff] }
 0x2bb   :  { %5019 = vmatpush1.bf16.msra.mxu0 %v5018_v32  ;;  %2678 = vmatprep.mubr.f32.mxu1 %v6575_v57  ;;  %v1108_v57 = vld [vmem:[#allocation8 + $0x11b8] sm:$0xff]  ;;  %v5282_v26 = vpack.c.bf16 %v1099_v40, %v1091_v36  ;;  %v5034_v32 = vpack.c.bf16 %v1129_v39, %v1121_v16  ;;  %v1155_v36 = vld [vmem:[#allocation8 + $0x1330] sm:$0xff]  ;;  %v1185_v16 = vld [vmem:[#allocation8 + $0x1420] sm:$0xff] }
 0x2bc   :  { %5275 = vmatpush1.bf16.msra.mxu1 %v5274_v63  ;;  %5021 = vmatprep.subr.bf16.mxu0 %v5020_v2  ;;  %v5284_v35 = vpack.c.bf16 %v1116_v53, %v1108_v57  ;;  %v5290_v63 = vpack.c.bf16 %v1131_v43, %v1123_v48  ;;  %v5036_v2 = vpack.c.bf16 %v1146_v12, %v1138_v60  ;;  %v1163_v40 = vld [vmem:[#allocation8 + $0x1370] sm:$0xff]  ;;  %v1172_v57 = vld [vmem:[#allocation8 + $0x13b8] sm:$0xff]  ;;  %v1193_v39 = vld [vmem:[#allocation8 + $0x1460] sm:$0xff] }
 0x2bd   :  { %2371 = vmatmul.mubr.f32.gmra.mrb[14].mxu0 %v6581_v62  ;;  %5277 = vmatprep.subr.bf16.mxu1 %v5276_v0  ;;  %v5292_v0 = vpack.c.bf16 %v1148_v56, %v1140_v55  ;;  %v1180_v53 = vld [vmem:[#allocation8 + $0x13f8] sm:$0xff]  ;;  %v1187_v48 = vld [vmem:[#allocation8 + $0x1430] sm:$0xff]  ;;  %v1202_v60 = vld [vmem:[#allocation8 + $0x14a8] sm:$0xff] }
 0x2be   :  { %2679 = vmatmul.mubr.f32.gmra.mrb[14].mxu1 %v6581_v62  ;;  %2441 = vmatprep.mubr.f32.mxu0 %v6583_v13  ;;  %v1130_v62 = vld [vmem:[#allocation8 + $0x1268] sm:$0xff]  ;;  %v1195_v43 = vld [vmem:[#allocation8 + $0x1470] sm:$0xff]  ;;  %v1204_v55 = vld [vmem:[#allocation8 + $0x14b8] sm:$0xff] }
 0x2bf   :  { %5023 = vmatpush1.bf16.msra.mxu0 %v5022_v10  ;;  %2749 = vmatprep.mubr.f32.mxu1 %v6583_v13  ;;  %v5286_v13 = vpack.c.bf16 %v1115_v15, %v1107_v34  ;;  %v5032_v21 = vpack.c.bf16 %v1130_v62, %v1122_v41  ;;  %v5038_v10 = vpack.c.bf16 %v1145_v3, %v1137_v23  ;;  %v1171_v34 = vld [vmem:[#allocation8 + $0x13b0] sm:$0xff]  ;;  %v1186_v41 = vld [vmem:[#allocation8 + $0x1428] sm:$0xff]  ;;  %v1212_v56 = vld [vmem:[#allocation8 + $0x14f8] sm:$0xff] }
 0x2c0   :  { %5279 = vmatpush1.bf16.msra.mxu1 %v5278_v11  ;;  %5025 = vmatprep.subr.bf16.mxu0 %v5024_v17  ;;  %v5294_v11 = vpack.c.bf16 %v1147_v5, %v1139_v4  ;;  %v5040_v17 = vpack.c.bf16 %v1162_v38, %v1154_v6  ;;  %v1179_v15 = vld [vmem:[#allocation8 + $0x13f0] sm:$0xff]  ;;  %v1194_v62 = vld [vmem:[#allocation8 + $0x1468] sm:$0xff]  ;;  %v1201_v23 = vld [vmem:[#allocation8 + $0x14a0] sm:$0xff] }
 0x2c1   :  { %5281 = vmatprep.subr.bf16.mxu1 %v5280_v22  ;;  %v5296_v22 = vpack.c.bf16 %v1164_v9, %v1156_v7  ;;  %v1210_v12 = vld [vmem:[#allocation8 + $0x14e8] sm:$0xff]  ;;  %v1209_v3 = vld [vmem:[#allocation8 + $0x14e0] sm:$0xff]  ;;  %v1203_v4 = vld [vmem:[#allocation8 + $0x14b0] sm:$0xff] }
 0x2c2   :  { %v1211_v5 = vld [vmem:[#allocation8 + $0x14f0] sm:$0xff]  ;;  %v1218_v6 = vld [vmem:[#allocation8 + $0x1528] sm:$0xff]  ;;  %v1220_v7 = vld [vmem:[#allocation8 + $0x1538] sm:$0xff] }
 0x2c3   :  { %5027 = vmatpush1.bf16.msra.mxu0 %v5026_v25  ;;  %v5042_v25 = vpack.c.bf16 %v1161_v20, %v1153_v19  ;;  %v1226_v38 = vld [vmem:[#allocation8 + $0x1568] sm:$0xff]  ;;  %v1228_v9 = vld [vmem:[#allocation8 + $0x1578] sm:$0xff]  ;;  %v1217_v19 = vld [vmem:[#allocation8 + $0x1520] sm:$0xff] }
 0x2c4   :  { %5283 = vmatpush1.bf16.msra.mxu1 %v5282_v26  ;;  %5029 = vmatprep.subr.bf16.mxu0 %v5028_v27  ;;  %v5298_v26 = vpack.c.bf16 %v1163_v40, %v1155_v36  ;;  %v5044_v27 = vpack.c.bf16 %v1178_v51, %v1170_v24  ;;  %v1225_v20 = vld [vmem:[#allocation8 + $0x1560] sm:$0xff]  ;;  %v1219_v36 = vld [vmem:[#allocation8 + $0x1530] sm:$0xff]  ;;  %v1234_v24 = vld [vmem:[#allocation8 + $0x15a8] sm:$0xff] }
 0x2c5   :  { %5285 = vmatprep.subr.bf16.mxu1 %v5284_v35  ;;  %v5300_v35 = vpack.c.bf16 %v1180_v53, %v1172_v57  ;;  %v1227_v40 = vld [vmem:[#allocation8 + $0x1570] sm:$0xff]  ;;  %v1242_v51 = vld [vmem:[#allocation8 + $0x15e8] sm:$0xff]  ;;  %v1236_v57 = vld [vmem:[#allocation8 + $0x15b8] sm:$0xff] }
 0x2c6   :  { %v1244_v53 = vld [vmem:[#allocation8 + $0x15f8] sm:$0xff] }
 0x2c7   :  { %5031 = vmatpush1.bf16.msra.mxu0 %v5030_v30  ;;  %v5046_v30 = vpack.c.bf16 %v1177_v31, %v1169_v28  ;;  %v1233_v28 = vld [vmem:[#allocation8 + $0x15a0] sm:$0xff] }
 0x2c8   :  { %5287 = vmatpush1.bf16.msra.mxu1 %v5286_v13  ;;  %5033 = vmatprep.subr.bf16.mxu0 %v5032_v21  ;;  %v5302_v13 = vpack.c.bf16 %v1179_v15, %v1171_v34  ;;  %v5048_v21 = vpack.c.bf16 %v1194_v62, %v1186_v41  ;;  %v1241_v31 = vld [vmem:[#allocation8 + $0x15e0] sm:$0xff]  ;;  %v1235_v34 = vld [vmem:[#allocation8 + $0x15b0] sm:$0xff]  ;;  %v1250_v41 = vld [vmem:[#allocation8 + $0x1628] sm:$0xff] }
 0x2c9   :  { %5289 = vmatprep.subr.bf16.mxu1 %v5288_v50  ;;  %v5304_v50 = vpack.c.bf16 %v1196_v46, %v1188_v45  ;;  %v1243_v15 = vld [vmem:[#allocation8 + $0x15f0] sm:$0xff]  ;;  %v1258_v62 = vld [vmem:[#allocation8 + $0x1668] sm:$0xff]  ;;  %v1252_v45 = vld [vmem:[#allocation8 + $0x1638] sm:$0xff] }
 0x2ca   :  { %v1260_v46 = vld [vmem:[#allocation8 + $0x1678] sm:$0xff] }
 0x2cb   :  { %5035 = vmatpush1.bf16.msra.mxu0 %v5034_v32  ;;  %v5050_v32 = vpack.c.bf16 %v1193_v39, %v1185_v16  ;;  %v1249_v16 = vld [vmem:[#allocation8 + $0x1620] sm:$0xff] }
 0x2cc   :  { %5291 = vmatpush1.bf16.msra.mxu1 %v5290_v63  ;;  %5037 = vmatprep.subr.bf16.mxu0 %v5036_v2  ;;  %v5306_v63 = vpack.c.bf16 %v1195_v43, %v1187_v48  ;;  %v5052_v2 = vpack.c.bf16 %v1210_v12, %v1202_v60  ;;  %v1257_v39 = vld [vmem:[#allocation8 + $0x1660] sm:$0xff]  ;;  %v1251_v48 = vld [vmem:[#allocation8 + $0x1630] sm:$0xff]  ;;  %v1266_v60 = vld [vmem:[#allocation8 + $0x16a8] sm:$0xff] }
 0x2cd   :  { %5293 = vmatprep.subr.bf16.mxu1 %v5292_v0  ;;  %v5308_v0 = vpack.c.bf16 %v1212_v56, %v1204_v55  ;;  %v1259_v43 = vld [vmem:[#allocation8 + $0x1670] sm:$0xff]  ;;  %v1274_v12 = vld [vmem:[#allocation8 + $0x16e8] sm:$0xff]  ;;  %v1268_v55 = vld [vmem:[#allocation8 + $0x16b8] sm:$0xff] }
 0x2ce   :  { %v1276_v56 = vld [vmem:[#allocation8 + $0x16f8] sm:$0xff] }
 0x2cf   :  { %5039 = vmatpush1.bf16.msra.mxu0 %v5038_v10  ;;  %v5054_v10 = vpack.c.bf16 %v1209_v3, %v1201_v23  ;;  %v1265_v23 = vld [vmem:[#allocation8 + $0x16a0] sm:$0xff] }
 0x2d0   :  { %5295 = vmatpush1.bf16.msra.mxu1 %v5294_v11  ;;  %5041 = vmatprep.subr.bf16.mxu0 %v5040_v17  ;;  %v5310_v11 = vpack.c.bf16 %v1211_v5, %v1203_v4  ;;  %v5056_v17 = vpack.c.bf16 %v1226_v38, %v1218_v6  ;;  %v1273_v3 = vld [vmem:[#allocation8 + $0x16e0] sm:$0xff]  ;;  %v1267_v4 = vld [vmem:[#allocation8 + $0x16b0] sm:$0xff]  ;;  %v1282_v6 = vld [vmem:[#allocation8 + $0x1728] sm:$0xff] }
 0x2d1   :  { %5297 = vmatprep.subr.bf16.mxu1 %v5296_v22  ;;  %v5312_v22 = vpack.c.bf16 %v1228_v9, %v1220_v7  ;;  %v1275_v5 = vld [vmem:[#allocation8 + $0x16f0] sm:$0xff]  ;;  %v1290_v38 = vld [vmem:[#allocation8 + $0x1768] sm:$0xff]  ;;  %v1284_v7 = vld [vmem:[#allocation8 + $0x1738] sm:$0xff] }
 0x2d2   :  { %v1292_v9 = vld [vmem:[#allocation8 + $0x1778] sm:$0xff] }
 0x2d3   :  { %5043 = vmatpush1.bf16.msra.mxu0 %v5042_v25  ;;  %v5058_v25 = vpack.c.bf16 %v1225_v20, %v1217_v19  ;;  %v1281_v19 = vld [vmem:[#allocation8 + $0x1720] sm:$0xff] }
 0x2d4   :  { %5299 = vmatpush1.bf16.msra.mxu1 %v5298_v26  ;;  %5045 = vmatprep.subr.bf16.mxu0 %v5044_v27  ;;  %v5314_v26 = vpack.c.bf16 %v1227_v40, %v1219_v36  ;;  %v5060_v27 = vpack.c.bf16 %v1242_v51, %v1234_v24  ;;  %v1289_v20 = vld [vmem:[#allocation8 + $0x1760] sm:$0xff]  ;;  %v1283_v36 = vld [vmem:[#allocation8 + $0x1730] sm:$0xff]  ;;  %v1298_v24 = vld [vmem:[#allocation8 + $0x17a8] sm:$0xff] }
 0x2d5   :  { %5301 = vmatprep.subr.bf16.mxu1 %v5300_v35  ;;  %v5316_v35 = vpack.c.bf16 %v1244_v53, %v1236_v57  ;;  %v1291_v40 = vld [vmem:[#allocation8 + $0x1770] sm:$0xff]  ;;  %v1306_v51 = vld [vmem:[#allocation8 + $0x17e8] sm:$0xff]  ;;  %v1300_v57 = vld [vmem:[#allocation8 + $0x17b8] sm:$0xff] }
 0x2d6   :  { %v1308_v53 = vld [vmem:[#allocation8 + $0x17f8] sm:$0xff] }
 0x2d7   :  { %5047 = vmatpush1.bf16.msra.mxu0 %v5046_v30  ;;  %v5062_v30 = vpack.c.bf16 %v1241_v31, %v1233_v28  ;;  %v1297_v28 = vld [vmem:[#allocation8 + $0x17a0] sm:$0xff] }
 0x2d8   :  { %5303 = vmatpush1.bf16.msra.mxu1 %v5302_v13  ;;  %5049 = vmatprep.subr.bf16.mxu0 %v5048_v21  ;;  %v5318_v13 = vpack.c.bf16 %v1243_v15, %v1235_v34  ;;  %v5064_v21 = vpack.c.bf16 %v1258_v62, %v1250_v41  ;;  %v1305_v31 = vld [vmem:[#allocation8 + $0x17e0] sm:$0xff]  ;;  %v1299_v34 = vld [vmem:[#allocation8 + $0x17b0] sm:$0xff]  ;;  %v1314_v41 = vld [vmem:[#allocation8 + $0x1828] sm:$0xff] }
 0x2d9   :  { %5305 = vmatprep.subr.bf16.mxu1 %v5304_v50  ;;  %v5320_v50 = vpack.c.bf16 %v1260_v46, %v1252_v45  ;;  %v1307_v15 = vld [vmem:[#allocation8 + $0x17f0] sm:$0xff]  ;;  %v1322_v62 = vld [vmem:[#allocation8 + $0x1868] sm:$0xff]  ;;  %v1316_v45 = vld [vmem:[#allocation8 + $0x1838] sm:$0xff] }
 0x2da   :  { %v1324_v46 = vld [vmem:[#allocation8 + $0x1878] sm:$0xff] }
 0x2db   :  { %5051 = vmatpush1.bf16.msra.mxu0 %v5050_v32  ;;  %v5066_v32 = vpack.c.bf16 %v1257_v39, %v1249_v16  ;;  %v5336_v16 = vpack.c.bf16 %v1324_v46, %v1316_v45  ;;  %v1313_v39 = vld [vmem:[#allocation8 + $0x1820] sm:$0xff] }
 0x2dc   :  { %5307 = vmatpush1.bf16.msra.mxu1 %v5306_v63  ;;  %5053 = vmatprep.subr.bf16.mxu0 %v5052_v2  ;;  %v5322_v63 = vpack.c.bf16 %v1259_v43, %v1251_v48  ;;  %v5068_v2 = vpack.c.bf16 %v1274_v12, %v1266_v60  ;;  %v1321_v48 = vld [vmem:[#allocation8 + $0x1860] sm:$0xff]  ;;  %v1323_v43 = vld [vmem:[#allocation8 + $0x1870] sm:$0xff]  ;;  %v1330_v60 = vld [vmem:[#allocation8 + $0x18a8] sm:$0xff] }
 0x2dd   :  { %5309 = vmatprep.subr.bf16.mxu1 %v5308_v0  ;;  %v5324_v0 = vpack.c.bf16 %v1276_v56, %v1268_v55  ;;  %v1338_v12 = vld [vmem:[#allocation8 + $0x18e8] sm:$0xff]  ;;  %v1332_v55 = vld [vmem:[#allocation8 + $0x18b8] sm:$0xff]  ;;  %v1377_v46 = vld [vmem:[#allocation8 + $0x1a20] sm:$0xff] }
 0x2de   :  { %v1340_v56 = vld [vmem:[#allocation8 + $0x18f8] sm:$0xff] }
 0x2df   :  { %5055 = vmatpush1.bf16.msra.mxu0 %v5054_v10  ;;  %v5070_v10 = vpack.c.bf16 %v1273_v3, %v1265_v23  ;;  %v1329_v23 = vld [vmem:[#allocation8 + $0x18a0] sm:$0xff] }
 0x2e0   :  { %5311 = vmatpush1.bf16.msra.mxu1 %v5310_v11  ;;  %5057 = vmatprep.subr.bf16.mxu0 %v5056_v17  ;;  %v5326_v11 = vpack.c.bf16 %v1275_v5, %v1267_v4  ;;  %v5072_v17 = vpack.c.bf16 %v1290_v38, %v1282_v6  ;;  %v1337_v3 = vld [vmem:[#allocation8 + $0x18e0] sm:$0xff]  ;;  %v1331_v4 = vld [vmem:[#allocation8 + $0x18b0] sm:$0xff]  ;;  %v1346_v6 = vld [vmem:[#allocation8 + $0x1928] sm:$0xff] }
 0x2e1   :  { %5313 = vmatprep.subr.bf16.mxu1 %v5312_v22  ;;  %v5328_v22 = vpack.c.bf16 %v1292_v9, %v1284_v7  ;;  %v1339_v5 = vld [vmem:[#allocation8 + $0x18f0] sm:$0xff]  ;;  %v1354_v38 = vld [vmem:[#allocation8 + $0x1968] sm:$0xff]  ;;  %v1348_v7 = vld [vmem:[#allocation8 + $0x1938] sm:$0xff] }
 0x2e2   :  { %v1356_v9 = vld [vmem:[#allocation8 + $0x1978] sm:$0xff] }
 0x2e3   :  { %5059 = vmatpush1.bf16.msra.mxu0 %v5058_v25  ;;  %v5074_v25 = vpack.c.bf16 %v1289_v20, %v1281_v19  ;;  %v1345_v19 = vld [vmem:[#allocation8 + $0x1920] sm:$0xff] }
 0x2e4   :  { %5315 = vmatpush1.bf16.msra.mxu1 %v5314_v26  ;;  %5061 = vmatprep.subr.bf16.mxu0 %v5060_v27  ;;  %v5330_v26 = vpack.c.bf16 %v1291_v40, %v1283_v36  ;;  %v5076_v27 = vpack.c.bf16 %v1306_v51, %v1298_v24  ;;  %v1353_v20 = vld [vmem:[#allocation8 + $0x1960] sm:$0xff]  ;;  %v1347_v36 = vld [vmem:[#allocation8 + $0x1930] sm:$0xff]  ;;  %v1362_v40 = vld [vmem:[#allocation8 + $0x19a8] sm:$0xff] }
 0x2e5   :  { %5317 = vmatprep.subr.bf16.mxu1 %v5316_v35  ;;  %v5332_v35 = vpack.c.bf16 %v1308_v53, %v1300_v57  ;;  %v1370_v24 = vld [vmem:[#allocation8 + $0x19e8] sm:$0xff]  ;;  %v1372_v51 = vld [vmem:[#allocation8 + $0x19f8] sm:$0xff]  ;;  %v5090_v57 = vpack.c.bf16 %v1353_v20, %v1345_v19  ;;  %v1409_v19 = vld [vmem:[#allocation8 + $0x1b20] sm:$0xff] }
 0x2e6   :  { %v1417_v20 = vld [vmem:[#allocation8 + $0x1b60] sm:$0xff] }
 0x2e7   :  { %5063 = vmatpush1.bf16.msra.mxu0 %v5062_v30  ;;  %v5078_v30 = vpack.c.bf16 %v1305_v31, %v1297_v28  ;;  %v1363_v28 = vld [vmem:[#allocation8 + $0x19b0] sm:$0xff] }
 0x2e8   :  { %5319 = vmatpush1.bf16.msra.mxu1 %v5318_v13  ;;  %5065 = vmatprep.subr.bf16.mxu0 %v5064_v21  ;;  %v5334_v13 = vpack.c.bf16 %v1307_v15, %v1299_v34  ;;  %v5080_v21 = vpack.c.bf16 %v1322_v62, %v1314_v41  ;;  %v1371_v34 = vld [vmem:[#allocation8 + $0x19f0] sm:$0xff]  ;;  %v1380_v15 = vld [vmem:[#allocation8 + $0x1a38] sm:$0xff] }
 0x2e9   :  { %5321 = vmatprep.subr.bf16.mxu1 %v5320_v50  ;;  %v1315_v50 = vld [vmem:[#allocation8 + $0x1830] sm:$0xff]  ;;  %v1388_v41 = vld [vmem:[#allocation8 + $0x1a78] sm:$0xff] }
 0x2eb   :  { %5067 = vmatpush1.bf16.msra.mxu0 %v5066_v32  ;;  %v5082_v32 = vpack.c.bf16 %v1321_v48, %v1313_v39  ;;  %v1394_v39 = vld [vmem:[#allocation8 + $0x1aa8] sm:$0xff] }
 0x2ec   :  { %5323 = vmatpush1.bf16.msra.mxu1 %v5322_v63  ;;  %5069 = vmatprep.subr.bf16.mxu0 %v5068_v2  ;;  %v5338_v63 = vpack.c.bf16 %v1323_v43, %v1315_v50  ;;  %v5084_v2 = vpack.c.bf16 %v1338_v12, %v1330_v60  ;;  %v1402_v48 = vld [vmem:[#allocation8 + $0x1ae8] sm:$0xff]  ;;  %v1396_v50 = vld [vmem:[#allocation8 + $0x1ab8] sm:$0xff] }
 0x2ed   :  { %5325 = vmatprep.subr.bf16.mxu1 %v5324_v0  ;;  %v5340_v0 = vpack.c.bf16 %v1340_v56, %v1332_v55  ;;  %v1404_v43 = vld [vmem:[#allocation8 + $0x1af8] sm:$0xff]  ;;  %v5100_v55 = vpack.c.bf16 %v1402_v48, %v1394_v39  ;;  %v1393_v56 = vld [vmem:[#allocation8 + $0x1aa0] sm:$0xff]  ;;  %v1443_v48 = vld [vmem:[#allocation8 + $0x1c30] sm:$0xff] }
 0x2ee   :  { %v1449_v39 = vld [vmem:[#allocation8 + $0x1c60] sm:$0xff] }
 0x2ef   :  { %5071 = vmatpush1.bf16.msra.mxu0 %v5070_v10  ;;  %v5086_v10 = vpack.c.bf16 %v1337_v3, %v1329_v23  ;;  %v1403_v23 = vld [vmem:[#allocation8 + $0x1af0] sm:$0xff]  ;;  %v1410_v3 = vld [vmem:[#allocation8 + $0x1b28] sm:$0xff] }
 0x2f0   :  { %5327 = vmatpush1.bf16.msra.mxu1 %v5326_v11  ;;  %5073 = vmatprep.subr.bf16.mxu0 %v5072_v17  ;;  %v5342_v11 = vpack.c.bf16 %v1339_v5, %v1331_v4  ;;  %v5088_v17 = vpack.c.bf16 %v1354_v38, %v1346_v6  ;;  %v1418_v4 = vld [vmem:[#allocation8 + $0x1b68] sm:$0xff]  ;;  %v1412_v6 = vld [vmem:[#allocation8 + $0x1b38] sm:$0xff] }
 0x2f1   :  { %5329 = vmatprep.subr.bf16.mxu1 %v5328_v22  ;;  %v5344_v22 = vpack.c.bf16 %v1356_v9, %v1348_v7  ;;  %v1420_v38 = vld [vmem:[#allocation8 + $0x1b78] sm:$0xff] }
 0x2f3   :  { %5075 = vmatpush1.bf16.msra.mxu0 %v5074_v25  ;;  %v5092_v25 = vpack.c.bf16 %v1370_v24, %v1362_v40  ;;  %v1426_v40 = vld [vmem:[#allocation8 + $0x1ba8] sm:$0xff] }
 0x2f4   :  { %5331 = vmatpush1.bf16.msra.mxu1 %v5330_v26  ;;  %5077 = vmatprep.subr.bf16.mxu0 %v5076_v27  ;;  %v1361_v26 = vld [vmem:[#allocation8 + $0x19a0] sm:$0xff]  ;;  %v1434_v24 = vld [vmem:[#allocation8 + $0x1be8] sm:$0xff] }
 0x2f5   :  { %5333 = vmatprep.subr.bf16.mxu1 %v5332_v35  ;;  %v1369_v27 = vld [vmem:[#allocation8 + $0x19e0] sm:$0xff]  ;;  %v1378_v35 = vld [vmem:[#allocation8 + $0x1a28] sm:$0xff] }
 0x2f6   :  { %v5094_v62 = vpack.c.bf16 %v1369_v27, %v1361_v26  ;;  %v5106_v27 = vpack.c.bf16 %v1417_v20, %v1409_v19  ;;  %v1484_v19 = vld [vmem:[#allocation8 + $0x1d78] sm:$0xff] }
 0x2f7   :  { %5079 = vmatpush1.bf16.msra.mxu0 %v5078_v30  ;;  %v1385_v30 = vld [vmem:[#allocation8 + $0x1a60] sm:$0xff] }
 0x2f8   :  { %5335 = vmatpush1.bf16.msra.mxu1 %v5334_v13  ;;  %5081 = vmatprep.subr.bf16.mxu0 %v5080_v21  ;;  %v1379_v13 = vld [vmem:[#allocation8 + $0x1a30] sm:$0xff]  ;;  %v5352_v21 = vpack.c.bf16 %v1388_v41, %v1380_v15  ;;  %v5098_v60 = vpack.c.bf16 %v1385_v30, %v1377_v46  ;;  %v1452_v46 = vld [vmem:[#allocation8 + $0x1c78] sm:$0xff] }
 0x2f9   :  { %5337 = vmatprep.subr.bf16.mxu1 %v5336_v16  ;;  %v1387_v16 = vld [vmem:[#allocation8 + $0x1a70] sm:$0xff] }
 0x2fa   :  { %2442 = vmatmul.mubr.f32.vlgmr.msra.gmra.mrb[12].mxu0 %v6606_v33  ;;  %v5354_v12 = vpack.c.bf16 %v1387_v16, %v1379_v13  ;;  %v1435_v41 = vld [vmem:[#allocation8 + $0x1bf0] sm:$0xff]  ;;  %v1441_v16 = vld [vmem:[#allocation8 + $0x1c20] sm:$0xff] }
 0x2fb   :  { %2750 = vmatmul.mubr.f32.vlgmr.msra.gmra.mrb[12].mxu1 %v6606_v33  ;;  %2447 = vmatprep.mubr.f32.mxu0 %v6609_v54  ;;  %v1355_v33 = vld [vmem:[#allocation8 + $0x1970] sm:$0xff] }
 0x2fc   :  { %5083 = vmatpush1.bf16.msra.mxu0 %v5082_v32  ;;  %2755 = vmatprep.mubr.f32.mxu1 %v6609_v54  ;;  %v1364_v54 = vld [vmem:[#allocation8 + $0x19b8] sm:$0xff]  ;;  %v5346_v53 = vpack.c.bf16 %v1355_v33, %v1347_v36  ;;  %v1401_v32 = vld [vmem:[#allocation8 + $0x1ae0] sm:$0xff]  ;;  %v1411_v36 = vld [vmem:[#allocation8 + $0x1b30] sm:$0xff] }
 0x2fd   :  { %5339 = vmatpush1.bf16.msra.mxu1 %v5338_v63  ;;  %5085 = vmatprep.subr.bf16.mxu0 %v5084_v2  ;;  %v5348_v31 = vpack.c.bf16 %v1372_v51, %v1364_v54  ;;  %v1395_v63 = vld [vmem:[#allocation8 + $0x1ab0] sm:$0xff]  ;;  %v5356_v2 = vpack.c.bf16 %v1404_v43, %v1396_v50 }
 0x2fe   :  { %2448 = vmatmul.mubr.f32.gmra.mrb[14].mxu0 %v6615_v52  ;;  %5341 = vmatprep.subr.bf16.mxu1 %v5340_v0  ;;  %v1419_v33 = vld [vmem:[#allocation8 + $0x1b70] sm:$0xff] }
 0x2ff   :  { %2756 = vmatmul.mubr.f32.gmra.mrb[14].mxu1 %v6615_v52  ;;  %2518 = vmatprep.mubr.f32.mxu0 %v6617_v49  ;;  %v1386_v52 = vld [vmem:[#allocation8 + $0x1a68] sm:$0xff]  ;;  %v1451_v43 = vld [vmem:[#allocation8 + $0x1c70] sm:$0xff] }
 0x300   :  { %5087 = vmatpush1.bf16.msra.mxu0 %v5086_v10  ;;  %2826 = vmatprep.mubr.f32.mxu1 %v6617_v49  ;;  %v5350_v49 = vpack.c.bf16 %v1371_v34, %v1363_v28  ;;  %v5096_v45 = vpack.c.bf16 %v1386_v52, %v1378_v35  ;;  %v5102_v10 = vpack.c.bf16 %v1401_v32, %v1393_v56  ;;  %v1425_v34 = vld [vmem:[#allocation8 + $0x1ba0] sm:$0xff]  ;;  %v1427_v52 = vld [vmem:[#allocation8 + $0x1bb0] sm:$0xff]  ;;  %v1468_v56 = vld [vmem:[#allocation8 + $0x1cf8] sm:$0xff] }
 0x301   :  { %5343 = vmatpush1.bf16.msra.mxu1 %v5342_v11  ;;  %5089 = vmatprep.subr.bf16.mxu0 %v5088_v17  ;;  %v5358_v11 = vpack.c.bf16 %v1403_v23, %v1395_v63  ;;  %v5104_v17 = vpack.c.bf16 %v1418_v4, %v1410_v3  ;;  %v5362_v28 = vpack.c.bf16 %v1419_v33, %v1411_v36  ;;  %v1433_v35 = vld [vmem:[#allocation8 + $0x1be0] sm:$0xff]  ;;  %v1459_v4 = vld [vmem:[#allocation8 + $0x1cb0] sm:$0xff] }
 0x302   :  { %5345 = vmatprep.subr.bf16.mxu1 %v5344_v22  ;;  %v5360_v22 = vpack.c.bf16 %v1420_v38, %v1412_v6  ;;  %v5110_v30 = vpack.c.bf16 %v1433_v35, %v1425_v34  ;;  %v5366_v13 = vpack.c.bf16 %v1435_v41, %v1427_v52  ;;  %v5114_v32 = vpack.c.bf16 %v1449_v39, %v1441_v16  ;;  %v1457_v23 = vld [vmem:[#allocation8 + $0x1ca0] sm:$0xff]  ;;  %v1467_v38 = vld [vmem:[#allocation8 + $0x1cf0] sm:$0xff]  ;;  %v1500_v34 = vld [vmem:[#allocation8 + $0x1df8] sm:$0xff] }
 0x303   :  { %v5370_v63 = vpack.c.bf16 %v1451_v43, %v1443_v48  ;;  %v1465_v3 = vld [vmem:[#allocation8 + $0x1ce0] sm:$0xff]  ;;  %v5374_v36 = vpack.c.bf16 %v1467_v38, %v1459_v4  ;;  %v1516_v16 = vld [vmem:[#allocation8 + $0x1e78] sm:$0xff] }
 0x304   :  { %5091 = vmatpush1.bf16.msra.mxu0 %v5090_v57  ;;  %v1428_v57 = vld [vmem:[#allocation8 + $0x1bb8] sm:$0xff]  ;;  %v5118_v20 = vpack.c.bf16 %v1465_v3, %v1457_v23  ;;  %v1473_v33 = vld [vmem:[#allocation8 + $0x1d20] sm:$0xff] }
 0x305   :  { %5347 = vmatpush1.bf16.msra.mxu1 %v5346_v53  ;;  %5093 = vmatprep.subr.bf16.mxu0 %v5092_v25  ;;  %v1436_v53 = vld [vmem:[#allocation8 + $0x1bf8] sm:$0xff]  ;;  %v1489_v41 = vld [vmem:[#allocation8 + $0x1da0] sm:$0xff] }
 0x306   :  { %5349 = vmatprep.subr.bf16.mxu1 %v5348_v31  ;;  %v5108_v31 = vpack.c.bf16 %v1434_v24, %v1426_v40  ;;  %v5364_v15 = vpack.c.bf16 %v1436_v53, %v1428_v57  ;;  %v1481_v40 = vld [vmem:[#allocation8 + $0x1d60] sm:$0xff]  ;;  %v1475_v24 = vld [vmem:[#allocation8 + $0x1d30] sm:$0xff]  ;;  %v1532_v23 = vld [vmem:[#allocation8 + $0x1ef8] sm:$0xff] }
 0x307   :  { %v1483_v53 = vld [vmem:[#allocation8 + $0x1d70] sm:$0xff]  ;;  %v5122_v35 = vpack.c.bf16 %v1481_v40, %v1473_v33  ;;  %v1505_v43 = vld [vmem:[#allocation8 + $0x1e20] sm:$0xff]  ;;  %v1548_v33 = vld [vmem:[#allocation8 + $0x1f78] sm:$0xff] }
 0x308   :  { %5095 = vmatpush1.bf16.msra.mxu0 %v5094_v62  ;;  %v1442_v62 = vld [vmem:[#allocation8 + $0x1c28] sm:$0xff]  ;;  %v5378_v52 = vpack.c.bf16 %v1483_v53, %v1475_v24  ;;  %v1521_v38 = vld [vmem:[#allocation8 + $0x1ea0] sm:$0xff] }
 0x309   :  { %5351 = vmatpush1.bf16.msra.mxu1 %v5350_v49  ;;  %5097 = vmatprep.subr.bf16.mxu0 %v5096_v45  ;;  %v1450_v49 = vld [vmem:[#allocation8 + $0x1c68] sm:$0xff]  ;;  %v1444_v45 = vld [vmem:[#allocation8 + $0x1c38] sm:$0xff]  ;;  %v1537_v53 = vld [vmem:[#allocation8 + $0x1f20] sm:$0xff] }
 0x30a   :  { %5353 = vmatprep.subr.bf16.mxu1 %v5352_v21  ;;  %v5112_v21 = vpack.c.bf16 %v1450_v49, %v1442_v62  ;;  %v5368_v50 = vpack.c.bf16 %v1452_v46, %v1444_v45  ;;  %v1497_v62 = vld [vmem:[#allocation8 + $0x1de0] sm:$0xff]  ;;  %v1491_v49 = vld [vmem:[#allocation8 + $0x1db0] sm:$0xff] }
 0x30b   :  { %v6671_v0 = vpop.f32.mrb[8].mxu0  ;;  %v6673_v5 = vpop.f32.mrb[8].mxu1  ;;  %v1499_v46 = vld [vmem:[#allocation8 + $0x1df0] sm:$0xff]  ;;  %v5126_v39 = vpack.c.bf16 %v1497_v62, %v1489_v41  ;;  %v1564_v41 = vld [vmem:[#allocation8 + $0x1ff8] sm:$0xff] }
 0x30c   :  { %5099 = vmatpush1.bf16.msra.mxu0 %v5098_v60  ;;  %v6675_v7 = vpop.f32.mrb[9].mxu0  ;;  %v6677_v9 = vpop.f32.mrb[9].mxu1  ;;  %v1458_v60 = vld [vmem:[#allocation8 + $0x1ca8] sm:$0xff]  ;;  %v5382_v48 = vpack.c.bf16 %v1499_v46, %v1491_v49  ;;  %v1553_v46 = vld [vmem:[#allocation8 + $0x1fa0] sm:$0xff] }
 0x30d   :  { %5355 = vmatpush1.bf16.msra.mxu1 %v5354_v12  ;;  %5101 = vmatprep.subr.bf16.mxu0 %v5100_v55  ;;  %v1466_v12 = vld [vmem:[#allocation8 + $0x1ce8] sm:$0xff]  ;;  %v1460_v55 = vld [vmem:[#allocation8 + $0x1cb8] sm:$0xff] }
 0x30e   :  { %5357 = vmatprep.subr.bf16.mxu1 %v5356_v2  ;;  %v5116_v2 = vpack.c.bf16 %v1466_v12, %v1458_v60  ;;  %v5372_v6 = vpack.c.bf16 %v1468_v56, %v1460_v55  ;;  %v1513_v60 = vld [vmem:[#allocation8 + $0x1e60] sm:$0xff]  ;;  %v1507_v12 = vld [vmem:[#allocation8 + $0x1e30] sm:$0xff] }
 0x30f   :  { %v6679_v54 = vpop.f32.mrb[10].mxu0  ;;  %v6681_v51 = vpop.f32.mrb[10].mxu1  ;;  %v1515_v56 = vld [vmem:[#allocation8 + $0x1e70] sm:$0xff]  ;;  %v5130_v3 = vpack.c.bf16 %v1513_v60, %v1505_v43  ;;  %v2858_v43 = vld [vmem:[#allocation11 + $0x18] sm:$0xff] }
 0x310   :  { %5103 = vmatpush1.bf16.msra.mxu0 %v5102_v10  ;;  %v6683_v25 = vpop.f32.mrb[11].mxu0  ;;  %v6685_v26 = vpop.f32.mrb[11].mxu1  ;;  %v1474_v10 = vld [vmem:[#allocation8 + $0x1d28] sm:$0xff]  ;;  %v5386_v4 = vpack.c.bf16 %v1515_v56, %v1507_v12  ;;  %v2862_v60 = vld [vmem:[#allocation11 + $0x38] sm:$0xff] }
 0x311   :  { %5359 = vmatpush1.bf16.msra.mxu1 %v5358_v11  ;;  %5105 = vmatprep.subr.bf16.mxu0 %v5104_v17  ;;  %v1482_v11 = vld [vmem:[#allocation8 + $0x1d68] sm:$0xff]  ;;  %v1476_v17 = vld [vmem:[#allocation8 + $0x1d38] sm:$0xff] }
 0x312   :  { %5361 = vmatprep.subr.bf16.mxu1 %v5360_v22  ;;  %v5120_v22 = vpack.c.bf16 %v1482_v11, %v1474_v10  ;;  %v5376_v57 = vpack.c.bf16 %v1484_v19, %v1476_v17  ;;  %v1529_v10 = vld [vmem:[#allocation8 + $0x1ee0] sm:$0xff]  ;;  %v1523_v11 = vld [vmem:[#allocation8 + $0x1eb0] sm:$0xff] }
 0x313   :  { %v1531_v19 = vld [vmem:[#allocation8 + $0x1ef0] sm:$0xff]  ;;  %v5134_v40 = vpack.c.bf16 %v1529_v10, %v1521_v38  ;;  %v2866_v10 = vld [vmem:[#allocation11 + $0x58] sm:$0xff] }
 0x314   :  { %5107 = vmatpush1.bf16.msra.mxu0 %v5106_v27  ;;  %v1490_v27 = vld [vmem:[#allocation8 + $0x1da8] sm:$0xff]  ;;  %v5390_v24 = vpack.c.bf16 %v1531_v19, %v1523_v11  ;;  %v2868_v38 = vld [vmem:[#allocation11 + $0x68] sm:$0xff]  ;;  %v2870_v11 = vld [vmem:[#allocation11 + $0x78] sm:$0xff] }
 0x315   :  { %5363 = vmatpush1.bf16.msra.mxu1 %v5362_v28  ;;  %5109 = vmatprep.subr.bf16.mxu0 %v5108_v31  ;;  %v1498_v28 = vld [vmem:[#allocation8 + $0x1de8] sm:$0xff]  ;;  %v1492_v31 = vld [vmem:[#allocation8 + $0x1db8] sm:$0xff] }
 0x316   :  { %5365 = vmatprep.subr.bf16.mxu1 %v5364_v15  ;;  %v5124_v15 = vpack.c.bf16 %v1498_v28, %v1490_v27  ;;  %v5380_v45 = vpack.c.bf16 %v1500_v34, %v1492_v31  ;;  %v1545_v27 = vld [vmem:[#allocation8 + $0x1f60] sm:$0xff]  ;;  %v1539_v28 = vld [vmem:[#allocation8 + $0x1f30] sm:$0xff] }
 0x317   :  { %v1547_v34 = vld [vmem:[#allocation8 + $0x1f70] sm:$0xff]  ;;  %v5138_v62 = vpack.c.bf16 %v1545_v27, %v1537_v53 }
 0x318   :  { %5111 = vmatpush1.bf16.msra.mxu0 %v5110_v30  ;;  %v1506_v30 = vld [vmem:[#allocation8 + $0x1e28] sm:$0xff]  ;;  %v5394_v49 = vpack.c.bf16 %v1547_v34, %v1539_v28  ;;  %v2872_v53 = vld [vmem:[#allocation11 + $0x88] sm:$0xff]  ;;  %v2874_v28 = vld [vmem:[#allocation11 + $0x98] sm:$0xff] }
 0x319   :  { %5367 = vmatpush1.bf16.msra.mxu1 %v5366_v13  ;;  %5113 = vmatprep.subr.bf16.mxu0 %v5112_v21  ;;  %v1514_v13 = vld [vmem:[#allocation8 + $0x1e68] sm:$0xff]  ;;  %v1508_v21 = vld [vmem:[#allocation8 + $0x1e38] sm:$0xff]  ;;  %v2876_v27 = vld [vmem:[#allocation11 + $0xa8] sm:$0xff] }
 0x31a   :  { %5369 = vmatprep.subr.bf16.mxu1 %v5368_v50  ;;  %v5128_v50 = vpack.c.bf16 %v1514_v13, %v1506_v30  ;;  %v5384_v55 = vpack.c.bf16 %v1516_v16, %v1508_v21  ;;  %v1561_v30 = vld [vmem:[#allocation8 + $0x1fe0] sm:$0xff]  ;;  %v1555_v13 = vld [vmem:[#allocation8 + $0x1fb0] sm:$0xff] }
 0x31b   :  { %v1563_v16 = vld [vmem:[#allocation8 + $0x1ff0] sm:$0xff]  ;;  %v5142_v12 = vpack.c.bf16 %v1561_v30, %v1553_v46  ;;  %v2886_v30 = vld [vmem:[#allocation11 + $0xf8] sm:$0xff] }
 0x31c   :  { %5115 = vmatpush1.bf16.msra.mxu0 %v5114_v32  ;;  %v1522_v32 = vld [vmem:[#allocation8 + $0x1ea8] sm:$0xff]  ;;  %v2884_v46 = vld [vmem:[#allocation11 + $0xe8] sm:$0xff] }
 0x31d   :  { %5371 = vmatpush1.bf16.msra.mxu1 %v5370_v63  ;;  %5117 = vmatprep.subr.bf16.mxu0 %v5116_v2  ;;  %v1530_v63 = vld [vmem:[#allocation8 + $0x1ee8] sm:$0xff]  ;;  %v1524_v2 = vld [vmem:[#allocation8 + $0x1eb8] sm:$0xff] }
 0x31e   :  { %5373 = vmatprep.subr.bf16.mxu1 %v5372_v6  ;;  %v5132_v6 = vpack.c.bf16 %v1530_v63, %v1522_v32  ;;  %v5388_v17 = vpack.c.bf16 %v1532_v23, %v1524_v2  ;;  %v5656_v63 = vpack.c.bf16 %v2862_v60, %v2858_v43  ;;  %v2855_v2 = vld [vmem:[#allocation11] sm:$0xff]  ;;  %v2881_v43 = vld [vmem:[#allocation11 + $0xd0] sm:$0xff] }
 0x31f   :  { %v2859_v23 = vld [vmem:[#allocation11 + $0x20] sm:$0xff] }
 0x320   :  { %5119 = vmatpush1.bf16.msra.mxu0 %v5118_v20  ;;  %v1538_v20 = vld [vmem:[#allocation8 + $0x1f28] sm:$0xff] }
 0x321   :  { %5375 = vmatpush1.bf16.msra.mxu1 %v5374_v36  ;;  %5121 = vmatprep.subr.bf16.mxu0 %v5120_v22  ;;  %v1546_v36 = vld [vmem:[#allocation8 + $0x1f68] sm:$0xff]  ;;  %v1540_v22 = vld [vmem:[#allocation8 + $0x1f38] sm:$0xff] }
 0x322   :  { %5377 = vmatprep.subr.bf16.mxu1 %v5376_v57  ;;  %v5136_v57 = vpack.c.bf16 %v1546_v36, %v1538_v20  ;;  %v5392_v31 = vpack.c.bf16 %v1548_v33, %v1540_v22  ;;  %v2863_v22 = vld [vmem:[#allocation11 + $0x40] sm:$0xff] }
 0x323   :  { %v2867_v33 = vld [vmem:[#allocation11 + $0x60] sm:$0xff] }
 0x324   :  { %5123 = vmatpush1.bf16.msra.mxu0 %v5122_v35  ;;  %v1554_v35 = vld [vmem:[#allocation8 + $0x1fa8] sm:$0xff] }
 0x325   :  { %5379 = vmatpush1.bf16.msra.mxu1 %v5378_v52  ;;  %5125 = vmatprep.subr.bf16.mxu0 %v5124_v15  ;;  %v1562_v52 = vld [vmem:[#allocation8 + $0x1fe8] sm:$0xff]  ;;  %v1556_v15 = vld [vmem:[#allocation8 + $0x1fb8] sm:$0xff] }
 0x326   :  { %5381 = vmatprep.subr.bf16.mxu1 %v5380_v45  ;;  %v5140_v45 = vpack.c.bf16 %v1562_v52, %v1554_v35  ;;  %v5396_v21 = vpack.c.bf16 %v1564_v41, %v1556_v15  ;;  %v5408_v52 = vpack.c.bf16 %v2876_v27, %v2872_v53  ;;  %v2871_v15 = vld [vmem:[#allocation11 + $0x80] sm:$0xff]  ;;  %v2897_v53 = vld [vmem:[#allocation11 + $0x150] sm:$0xff] }
 0x327   :  { %v2875_v41 = vld [vmem:[#allocation11 + $0xa0] sm:$0xff] }
 0x328   :  { %5127 = vmatpush1.bf16.msra.mxu0 %v5126_v39  ;;  %v2856_v39 = vld [vmem:[#allocation11 + $0x8] sm:$0xff] }
 0x329   :  { %5383 = vmatpush1.bf16.msra.mxu1 %v5382_v48  ;;  %5129 = vmatprep.subr.bf16.mxu0 %v5128_v50  ;;  %v2860_v48 = vld [vmem:[#allocation11 + $0x28] sm:$0xff]  ;;  %v6687_v50 = vld [vmem:[#allocation10] sm:$0xff] }
 0x32a   :  { %5385 = vmatprep.subr.bf16.mxu1 %v5384_v55  ;;  %v5398_v55 = vpack.c.bf16 %v1563_v16, %v1555_v13  ;;  %v5400_v56 = vpack.c.bf16 %v2860_v48, %v2856_v39  ;;  %v6691_v32 = vrot.slane %v6687_v50, %v6502_v61  ;;  %v5410_v13 = vpack.c.bf16 %v2875_v41, %v2871_v15  ;;  %v2879_v39 = vld [vmem:[#allocation11 + $0xc0] sm:$0xff] }
 0x32b   :  { %v2883_v48 = vld [vmem:[#allocation11 + $0xe0] sm:$0xff] }
 0x32c   :  { %5131 = vmatpush1.bf16.msra.mxu0 %v5130_v3  ;;  %v2857_v3 = vld [vmem:[#allocation11 + $0x10] sm:$0xff]  ;;  %v5977_v19 = vadd.f32 %v6675_v7, %v6691_v32  ;;  %v5406_v7 = vpack.c.bf16 %v2867_v33, %v2863_v22 }
 0x32d   :  { %5387 = vmatpush1.bf16.msra.mxu1 %v5386_v4  ;;  %5133 = vmatprep.subr.bf16.mxu0 %v5132_v6  ;;  %v2861_v4 = vld [vmem:[#allocation11 + $0x30] sm:$0xff]  ;;  %v2864_v6 = vld [vmem:[#allocation11 + $0x48] sm:$0xff] }
 0x32e   :  { %5389 = vmatprep.subr.bf16.mxu1 %v5388_v17  ;;  %v5402_v17 = vpack.c.bf16 %v2859_v23, %v2855_v2  ;;  %v5658_v20 = vpack.c.bf16 %v2861_v4, %v2857_v3  ;;  %v5404_v36 = vpack.c.bf16 %v2868_v38, %v2864_v6  ;;  %v2840_v34 = vmax.f32 %v5977_v19, 0.0  ;;  %v2887_v4 = vld [vmem:[#allocation11 + $0x100] sm:$0xff]  ;;  %v2889_v38 = vld [vmem:[#allocation11 + $0x110] sm:$0xff]  ;;  %v2900_v19 = vld [vmem:[#allocation11 + $0x168] sm:$0xff] }
 0x32f   :  { %v5414_v2 = vpack.c.bf16 %v2883_v48, %v2879_v39  ;;  %v2891_v6 = vld [vmem:[#allocation11 + $0x120] sm:$0xff] }
 0x330   :  { %5135 = vmatpush1.bf16.msra.mxu0 %v5134_v40  ;;  %v2865_v40 = vld [vmem:[#allocation11 + $0x50] sm:$0xff]  ;;  %v5418_v22 = vpack.c.bf16 %v2891_v6, %v2887_v4 }
 0x331   :  { %5391 = vmatpush1.bf16.msra.mxu1 %v5390_v24  ;;  %5137 = vmatprep.subr.bf16.mxu0 %v5136_v57  ;;  %v5660_v24 = vpack.c.bf16 %v2870_v11, %v2866_v10  ;;  %v2869_v57 = vld [vmem:[#allocation11 + $0x70] sm:$0xff] }
 0x332   :  { %5393 = vmatprep.subr.bf16.mxu1 %v5392_v31  ;;  %v2878_v31 = vld [vmem:[#allocation11 + $0xb8] sm:$0xff]  ;;  %v5662_v35 = vpack.c.bf16 %v2869_v57, %v2865_v40  ;;  %v2893_v11 = vld [vmem:[#allocation11 + $0x130] sm:$0xff]  ;;  %v2899_v57 = vld [vmem:[#allocation11 + $0x160] sm:$0xff] }
 0x333   :  { %v5674_v33 = vpack.c.bf16 %v2893_v11, %v2889_v38  ;;  %v2919_v38 = vld [vmem:[#allocation11 + $0x200] sm:$0xff]  ;;  %v2921_v11 = vld [vmem:[#allocation11 + $0x210] sm:$0xff] }
 0x334   :  { %5139 = vmatpush1.bf16.msra.mxu0 %v5138_v62  ;;  %v2873_v62 = vld [vmem:[#allocation11 + $0x90] sm:$0xff] }
 0x335   :  { %5395 = vmatpush1.bf16.msra.mxu1 %v5394_v49  ;;  %5141 = vmatprep.subr.bf16.mxu0 %v5140_v45  ;;  %v2877_v49 = vld [vmem:[#allocation11 + $0xb0] sm:$0xff]  ;;  %v2880_v45 = vld [vmem:[#allocation11 + $0xc8] sm:$0xff] }
 0x336   :  { %5397 = vmatprep.subr.bf16.mxu1 %v5396_v21  ;;  %v5666_v21 = vpack.c.bf16 %v2877_v49, %v2873_v62  ;;  %v5412_v16 = vpack.c.bf16 %v2884_v46, %v2880_v45  ;;  %v2903_v62 = vld [vmem:[#allocation11 + $0x180] sm:$0xff]  ;;  %v2905_v49 = vld [vmem:[#allocation11 + $0x190] sm:$0xff] }
 0x337   :  { %v2909_v46 = vld [vmem:[#allocation11 + $0x1b0] sm:$0xff] }
 0x338   :  { %5143 = vmatpush1.bf16.msra.mxu0 %v5142_v12  ;;  %v2885_v12 = vld [vmem:[#allocation11 + $0xf0] sm:$0xff]  ;;  %v5682_v39 = vpack.c.bf16 %v2909_v46, %v2905_v49  ;;  %v2935_v49 = vld [vmem:[#allocation11 + $0x280] sm:$0xff] }
 0x339   :  { %5399 = vmatpush1.bf16.msra.mxu1 %v5398_v55  ;;  %5401 = vmatprep.subr.bf16.mxu0 %v5400_v56  ;;  %v2888_v55 = vld [vmem:[#allocation11 + $0x108] sm:$0xff]  ;;  %v5670_v23 = vpack.c.bf16 %v2885_v12, %v2881_v43  ;;  %v2911_v43 = vld [vmem:[#allocation11 + $0x1c0] sm:$0xff]  ;;  %v2913_v12 = vld [vmem:[#allocation11 + $0x1d0] sm:$0xff] }
 0x33a   :  { %5657 = vmatprep.subr.bf16.mxu1 %v5656_v63  ;;  %v2892_v56 = vld [vmem:[#allocation11 + $0x128] sm:$0xff]  ;;  %v2890_v63 = vld [vmem:[#allocation11 + $0x118] sm:$0xff]  ;;  %v2937_v46 = vld [vmem:[#allocation11 + $0x290] sm:$0xff] }
 0x33b   :  { %2519 = vmatmul.mubr.f32.vlgmr.msra.gmra.mrb[12].mxu0 %v6633_v14  ;;  %v5416_v3 = vpack.c.bf16 %v2892_v56, %v2888_v55  ;;  %v2917_v56 = vld [vmem:[#allocation11 + $0x1f0] sm:$0xff] }
 0x33c   :  { %2827 = vmatmul.mubr.f32.vlgmr.msra.gmra.mrb[12].mxu1 %v6633_v14  ;;  %2524 = vmatprep.mubr.f32.mxu0 %v6635_v42  ;;  %v5664_v14 = vpack.c.bf16 %v2878_v31, %v2874_v28  ;;  %v2901_v28 = vld [vmem:[#allocation11 + $0x170] sm:$0xff]  ;;  %v2904_v31 = vld [vmem:[#allocation11 + $0x188] sm:$0xff]  ;;  %v5686_v4 = vpack.c.bf16 %v2917_v56, %v2913_v12  ;;  %v2943_v12 = vld [vmem:[#allocation11 + $0x2c0] sm:$0xff] }
 0x33d   :  { %2832 = vmatprep.mubr.f32.mxu1 %v6635_v42  ;;  %5403 = vmatpush1.bf16.msra.mxu0 %v5402_v17  ;;  %v2882_v42 = vld [vmem:[#allocation11 + $0xd8] sm:$0xff]  ;;  %v2896_v17 = vld [vmem:[#allocation11 + $0x148] sm:$0xff]  ;;  %v5678_v15 = vpack.c.bf16 %v2901_v28, %v2897_v53  ;;  %v2927_v53 = vld [vmem:[#allocation11 + $0x240] sm:$0xff] }
 0x33e   :  { %5659 = vmatpush1.bf16.msra.mxu1 %v5658_v20  ;;  %5405 = vmatprep.subr.bf16.mxu0 %v5404_v36  ;;  %v5668_v60 = vpack.c.bf16 %v2886_v30, %v2882_v42  ;;  %v2898_v20 = vld [vmem:[#allocation11 + $0x158] sm:$0xff]  ;;  %v5420_v40 = vpack.c.bf16 %v2900_v19, %v2896_v17  ;;  %v2912_v42 = vld [vmem:[#allocation11 + $0x1c8] sm:$0xff]  ;;  %v2925_v19 = vld [vmem:[#allocation11 + $0x230] sm:$0xff] }
 0x33f   :  { %2525 = vmatmul.mubr.f32.gmra.mrb[14].mxu0 %v6637_v37  ;;  %5661 = vmatprep.subr.bf16.mxu1 %v5660_v24  ;;  %v2902_v36 = vld [vmem:[#allocation11 + $0x178] sm:$0xff]  ;;  %v2895_v24 = vld [vmem:[#allocation11 + $0x140] sm:$0xff]  ;;  %v2916_v30 = vld [vmem:[#allocation11 + $0x1e8] sm:$0xff] }
 0x340   :  { %2833 = vmatmul.mubr.f32.gmra.mrb[14].mxu1 %v6637_v37  ;;  %3453 = vmatprep.mubr.f32.mxu0 %v2840_v34  ;;  %v2894_v37 = vld [vmem:[#allocation11 + $0x138] sm:$0xff]  ;;  %v5676_v27 = vpack.c.bf16 %v2902_v36, %v2898_v20  ;;  %v5428_v48 = vpack.c.bf16 %v2916_v30, %v2912_v42  ;;  %v2928_v20 = vld [vmem:[#allocation11 + $0x248] sm:$0xff]  ;;  %v2929_v28 = vld [vmem:[#allocation11 + $0x250] sm:$0xff] }
 0x341   :  { %5407 = vmatpush1.bf16.msra.mxu0 %v5406_v7  ;;  %3761 = vmatprep.mubr.f32.mxu1 %v2840_v34  ;;  %v5672_v10 = vpack.c.bf16 %v2894_v37, %v2890_v63  ;;  %v2908_v7 = vld [vmem:[#allocation11 + $0x1a8] sm:$0xff]  ;;  %v2906_v34 = vld [vmem:[#allocation11 + $0x198] sm:$0xff]  ;;  %v2941_v30 = vld [vmem:[#allocation11 + $0x2b0] sm:$0xff] }
 0x342   :  { %5663 = vmatpush1.bf16.msra.mxu1 %v5662_v35  ;;  %5409 = vmatprep.subr.bf16.mxu0 %v5408_v52  ;;  %v2910_v35 = vld [vmem:[#allocation11 + $0x1b8] sm:$0xff]  ;;  %v5422_v52 = vpack.c.bf16 %v2899_v57, %v2895_v24  ;;  %v5424_v41 = vpack.c.bf16 %v2908_v7, %v2904_v31  ;;  %v2920_v63 = vld [vmem:[#allocation11 + $0x208] sm:$0xff]  ;;  %v5690_v24 = vpack.c.bf16 %v2925_v19, %v2921_v11  ;;  %v2933_v7 = vld [vmem:[#allocation11 + $0x270] sm:$0xff] }
 0x343   :  { %5665 = vmatprep.subr.bf16.mxu1 %v5664_v14  ;;  %v2907_v14 = vld [vmem:[#allocation11 + $0x1a0] sm:$0xff]  ;;  %v5680_v45 = vpack.c.bf16 %v2910_v35, %v2906_v34  ;;  %v2924_v37 = vld [vmem:[#allocation11 + $0x228] sm:$0xff]  ;;  %v2945_v56 = vld [vmem:[#allocation11 + $0x2d0] sm:$0xff] }
 0x344   :  { %v5432_v6 = vpack.c.bf16 %v2924_v37, %v2920_v63  ;;  %v2932_v36 = vld [vmem:[#allocation11 + $0x268] sm:$0xff]  ;;  %v2949_v37 = vld [vmem:[#allocation11 + $0x2f0] sm:$0xff]  ;;  %v2951_v11 = vld [vmem:[#allocation11 + $0x300] sm:$0xff] }
 0x345   :  { %5411 = vmatpush1.bf16.msra.mxu0 %v5410_v13  ;;  %v2914_v13 = vld [vmem:[#allocation11 + $0x1d8] sm:$0xff]  ;;  %v5436_v57 = vpack.c.bf16 %v2932_v36, %v2928_v20  ;;  %v2936_v34 = vld [vmem:[#allocation11 + $0x288] sm:$0xff]  ;;  %v2953_v19 = vld [vmem:[#allocation11 + $0x310] sm:$0xff] }
 0x346   :  { %5667 = vmatpush1.bf16.msra.mxu1 %v5666_v21  ;;  %5413 = vmatprep.subr.bf16.mxu0 %v5412_v16  ;;  %v2918_v21 = vld [vmem:[#allocation11 + $0x1f8] sm:$0xff]  ;;  %v5426_v16 = vpack.c.bf16 %v2907_v14, %v2903_v62  ;;  %v2940_v35 = vld [vmem:[#allocation11 + $0x2a8] sm:$0xff]  ;;  %v5694_v62 = vpack.c.bf16 %v2933_v7, %v2929_v28  ;;  %v2957_v36 = vld [vmem:[#allocation11 + $0x330] sm:$0xff] }
 0x347   :  { %5669 = vmatprep.subr.bf16.mxu1 %v5668_v60  ;;  %v2915_v60 = vld [vmem:[#allocation11 + $0x1e0] sm:$0xff]  ;;  %v5684_v55 = vpack.c.bf16 %v2918_v21, %v2914_v13  ;;  %v5440_v14 = vpack.c.bf16 %v2940_v35, %v2936_v34  ;;  %v2944_v13 = vld [vmem:[#allocation11 + $0x2c8] sm:$0xff]  ;;  %v2961_v7 = vld [vmem:[#allocation11 + $0x350] sm:$0xff] }
 0x348   :  { %v2948_v21 = vld [vmem:[#allocation11 + $0x2e8] sm:$0xff]  ;;  %v2959_v28 = vld [vmem:[#allocation11 + $0x340] sm:$0xff]  ;;  %v2965_v35 = vld [vmem:[#allocation11 + $0x370] sm:$0xff] }
 0x349   :  { %5415 = vmatpush1.bf16.msra.mxu0 %v5414_v2  ;;  %v2922_v2 = vld [vmem:[#allocation11 + $0x218] sm:$0xff] }
 0x34a   :  { %5671 = vmatpush1.bf16.msra.mxu1 %v5670_v23  ;;  %5417 = vmatprep.subr.bf16.mxu0 %v5416_v3  ;;  %v2926_v23 = vld [vmem:[#allocation11 + $0x238] sm:$0xff]  ;;  %v5430_v3 = vpack.c.bf16 %v2915_v60, %v2911_v43  ;;  %v5698_v43 = vpack.c.bf16 %v2941_v30, %v2937_v46  ;;  %v5444_v60 = vpack.c.bf16 %v2948_v21, %v2944_v13  ;;  %v2967_v46 = vld [vmem:[#allocation11 + $0x380] sm:$0xff]  ;;  %v2969_v30 = vld [vmem:[#allocation11 + $0x390] sm:$0xff] }
 0x34b   :  { %5673 = vmatprep.subr.bf16.mxu1 %v5672_v10  ;;  %v2923_v10 = vld [vmem:[#allocation11 + $0x220] sm:$0xff]  ;;  %v5688_v17 = vpack.c.bf16 %v2926_v23, %v2922_v2  ;;  %v2952_v2 = vld [vmem:[#allocation11 + $0x308] sm:$0xff]  ;;  %v2973_v21 = vld [vmem:[#allocation11 + $0x3b0] sm:$0xff] }
 0x34c   :  { %v2956_v23 = vld [vmem:[#allocation11 + $0x328] sm:$0xff] }
 0x34d   :  { %5419 = vmatpush1.bf16.msra.mxu0 %v5418_v22  ;;  %v2930_v22 = vld [vmem:[#allocation11 + $0x258] sm:$0xff] }
 0x34e   :  { %5675 = vmatpush1.bf16.msra.mxu1 %v5674_v33  ;;  %5421 = vmatprep.subr.bf16.mxu0 %v5420_v40  ;;  %v2934_v33 = vld [vmem:[#allocation11 + $0x278] sm:$0xff]  ;;  %v5434_v40 = vpack.c.bf16 %v2923_v10, %v2919_v38  ;;  %v5702_v38 = vpack.c.bf16 %v2949_v37, %v2945_v56  ;;  %v5448_v10 = vpack.c.bf16 %v2956_v23, %v2952_v2  ;;  %v2979_v37 = vld [vmem:[#allocation11 + $0x3e0] sm:$0xff]  ;;  %v2977_v2 = vld [vmem:[#allocation11 + $0x3d0] sm:$0xff] }
 0x34f   :  { %5677 = vmatprep.subr.bf16.mxu1 %v5676_v27  ;;  %v2931_v27 = vld [vmem:[#allocation11 + $0x260] sm:$0xff]  ;;  %v5692_v31 = vpack.c.bf16 %v2934_v33, %v2930_v22  ;;  %v2960_v22 = vld [vmem:[#allocation11 + $0x348] sm:$0xff] }
 0x350   :  { %v2964_v33 = vld [vmem:[#allocation11 + $0x368] sm:$0xff] }
 0x351   :  { %5423 = vmatpush1.bf16.msra.mxu0 %v5422_v52  ;;  %v2938_v52 = vld [vmem:[#allocation11 + $0x298] sm:$0xff] }
 0x352   :  { %5679 = vmatpush1.bf16.msra.mxu1 %v5678_v15  ;;  %5425 = vmatprep.subr.bf16.mxu0 %v5424_v41  ;;  %v2942_v15 = vld [vmem:[#allocation11 + $0x2b8] sm:$0xff]  ;;  %v5438_v41 = vpack.c.bf16 %v2931_v27, %v2927_v53  ;;  %v5706_v53 = vpack.c.bf16 %v2957_v36, %v2953_v19  ;;  %v5452_v27 = vpack.c.bf16 %v2964_v33, %v2960_v22 }
 0x353   :  { %5681 = vmatprep.subr.bf16.mxu1 %v5680_v45  ;;  %v2939_v45 = vld [vmem:[#allocation11 + $0x2a0] sm:$0xff]  ;;  %v5696_v42 = vpack.c.bf16 %v2942_v15, %v2938_v52  ;;  %v2968_v52 = vld [vmem:[#allocation11 + $0x388] sm:$0xff]  ;;  %v6706_v36 = vrot.slane %v6687_v50, %v6509_v1  ;;  %v5979_v22 = vadd.f32 %v6683_v25, %v6691_v32 }
 0x354   :  { %v2972_v15 = vld [vmem:[#allocation11 + $0x3a8] sm:$0xff] }
 0x355   :  { %5427 = vmatpush1.bf16.msra.mxu0 %v5426_v16  ;;  %v2946_v16 = vld [vmem:[#allocation11 + $0x2d8] sm:$0xff]  ;;  %v5981_v25 = vadd.f32 %v6677_v9, %v6706_v36  ;;  %v2848_v32 = vmax.f32 %v5979_v22, 0.0 }
 0x356   :  { %5683 = vmatpush1.bf16.msra.mxu1 %v5682_v39  ;;  %5429 = vmatprep.subr.bf16.mxu0 %v5428_v48  ;;  %v2950_v39 = vld [vmem:[#allocation11 + $0x2f8] sm:$0xff]  ;;  %v5442_v48 = vpack.c.bf16 %v2939_v45, %v2935_v49  ;;  %v5710_v49 = vpack.c.bf16 %v2965_v35, %v2961_v7  ;;  %v5456_v45 = vpack.c.bf16 %v2972_v15, %v2968_v52  ;;  %v2991_v15 = vld [vmem:[#allocation11 + $0x440] sm:$0xff] }
 0x357   :  { %5685 = vmatprep.subr.bf16.mxu1 %v5684_v55  ;;  %v2947_v55 = vld [vmem:[#allocation11 + $0x2e0] sm:$0xff]  ;;  %v5700_v63 = vpack.c.bf16 %v2950_v39, %v2946_v16  ;;  %v2976_v16 = vld [vmem:[#allocation11 + $0x3c8] sm:$0xff]  ;;  %v3022_v22 = vld [vmem:[#allocation11 + $0x538] sm:$0xff] }
 0x358   :  { %v2980_v39 = vld [vmem:[#allocation11 + $0x3e8] sm:$0xff] }
 0x359   :  { %5431 = vmatpush1.bf16.msra.mxu0 %v5430_v3  ;;  %v2954_v3 = vld [vmem:[#allocation11 + $0x318] sm:$0xff]  ;;  %v5460_v56 = vpack.c.bf16 %v2980_v39, %v2976_v16  ;;  %v2999_v39 = vld [vmem:[#allocation11 + $0x480] sm:$0xff] }
 0x35a   :  { %5687 = vmatpush1.bf16.msra.mxu1 %v5686_v4  ;;  %5433 = vmatprep.subr.bf16.mxu0 %v5432_v6  ;;  %v2958_v4 = vld [vmem:[#allocation11 + $0x338] sm:$0xff]  ;;  %v5446_v6 = vpack.c.bf16 %v2947_v55, %v2943_v12  ;;  %v1570_v12 = vrot.slane %v6687_v50, %v6497_v59  ;;  %v5714_v55 = vpack.c.bf16 %v2973_v21, %v2969_v30 }
 0x35b   :  { %5689 = vmatprep.subr.bf16.mxu1 %v5688_v17  ;;  %v2955_v17 = vld [vmem:[#allocation11 + $0x320] sm:$0xff]  ;;  %v5704_v20 = vpack.c.bf16 %v2958_v4, %v2954_v3  ;;  %v2981_v3 = vld [vmem:[#allocation11 + $0x3f0] sm:$0xff]  ;;  %v2984_v4 = vld [vmem:[#allocation11 + $0x408] sm:$0xff] }
 0x35c   :  { %v5718_v19 = vpack.c.bf16 %v2981_v3, %v2977_v2 }
 0x35d   :  { %5435 = vmatpush1.bf16.msra.mxu0 %v5434_v40  ;;  %v2962_v40 = vld [vmem:[#allocation11 + $0x358] sm:$0xff] }
 0x35e   :  { %5691 = vmatpush1.bf16.msra.mxu1 %v5690_v24  ;;  %5437 = vmatprep.subr.bf16.mxu0 %v5436_v57  ;;  %v2966_v24 = vld [vmem:[#allocation11 + $0x378] sm:$0xff]  ;;  %v5450_v57 = vpack.c.bf16 %v2955_v17, %v2951_v11  ;;  %v5976_v17 = vadd.f32 %v6671_v0, %v1570_v12 }
 0x35f   :  { %5693 = vmatprep.subr.bf16.mxu1 %v5692_v31  ;;  %v2963_v31 = vld [vmem:[#allocation11 + $0x360] sm:$0xff]  ;;  %v5708_v34 = vpack.c.bf16 %v2966_v24, %v2962_v40  ;;  %v2994_v0 = vld [vmem:[#allocation11 + $0x458] sm:$0xff] }
 0x360   :  { %v2983_v40 = vld [vmem:[#allocation11 + $0x400] sm:$0xff]  ;;  %v2839_v7 = vmax.f32 %v5976_v17, 0.0  ;;  %v3016_v17 = vld [vmem:[#allocation11 + $0x508] sm:$0xff] }
 0x361   :  { %5439 = vmatpush1.bf16.msra.mxu0 %v5438_v41  ;;  %v2970_v41 = vld [vmem:[#allocation11 + $0x398] sm:$0xff]  ;;  %v2987_v24 = vld [vmem:[#allocation11 + $0x420] sm:$0xff] }
 0x362   :  { %5695 = vmatpush1.bf16.msra.mxu1 %v5694_v62  ;;  %5441 = vmatprep.subr.bf16.mxu0 %v5440_v14  ;;  %v2974_v62 = vld [vmem:[#allocation11 + $0x3b8] sm:$0xff]  ;;  %v5454_v14 = vpack.c.bf16 %v2963_v31, %v2959_v28  ;;  %v2996_v28 = vld [vmem:[#allocation11 + $0x468] sm:$0xff]  ;;  %v5466_v50 = vpack.c.bf16 %v2987_v24, %v2983_v40 }
 0x363   :  { %5697 = vmatprep.subr.bf16.mxu1 %v5696_v42  ;;  %v2971_v42 = vld [vmem:[#allocation11 + $0x3a0] sm:$0xff]  ;;  %v5712_v13 = vpack.c.bf16 %v2974_v62, %v2970_v41  ;;  %v2998_v31 = vld [vmem:[#allocation11 + $0x478] sm:$0xff]  ;;  %v2993_v62 = vld [vmem:[#allocation11 + $0x450] sm:$0xff] }
 0x364   :  { %v2995_v41 = vld [vmem:[#allocation11 + $0x460] sm:$0xff] }
 0x365   :  { %5443 = vmatpush1.bf16.msra.mxu0 %v5442_v48  ;;  %v2978_v48 = vld [vmem:[#allocation11 + $0x3d8] sm:$0xff]  ;;  %v5470_v9 = vpack.c.bf16 %v2995_v41, %v2991_v15  ;;  %v3027_v15 = vld [vmem:[#allocation11 + $0x560] sm:$0xff]  ;;  %v3025_v41 = vld [vmem:[#allocation11 + $0x550] sm:$0xff] }
 0x366   :  { %5699 = vmatpush1.bf16.msra.mxu1 %v5698_v43  ;;  %5445 = vmatprep.subr.bf16.mxu0 %v5444_v60  ;;  %v2982_v43 = vld [vmem:[#allocation11 + $0x3f8] sm:$0xff]  ;;  %v5458_v60 = vpack.c.bf16 %v2971_v42, %v2967_v46  ;;  %v3004_v46 = vld [vmem:[#allocation11 + $0x4a8] sm:$0xff] }
 0x367   :  { %5701 = vmatprep.subr.bf16.mxu1 %v5700_v63  ;;  %v2975_v63 = vld [vmem:[#allocation11 + $0x3c0] sm:$0xff]  ;;  %v5716_v23 = vpack.c.bf16 %v2982_v43, %v2978_v48  ;;  %v3006_v42 = vld [vmem:[#allocation11 + $0x4b8] sm:$0xff]  ;;  %v3001_v43 = vld [vmem:[#allocation11 + $0x490] sm:$0xff] }
 0x368   :  { %v5462_v11 = vpack.c.bf16 %v2979_v37, %v2975_v63  ;;  %v3003_v48 = vld [vmem:[#allocation11 + $0x4a0] sm:$0xff]  ;;  %v3010_v63 = vld [vmem:[#allocation11 + $0x4d8] sm:$0xff] }
 0x369   :  { %5447 = vmatpush1.bf16.msra.mxu0 %v5446_v6  ;;  %v2988_v6 = vld [vmem:[#allocation11 + $0x428] sm:$0xff]  ;;  %v3014_v37 = vld [vmem:[#allocation11 + $0x4f8] sm:$0xff]  ;;  %v5474_v2 = vpack.c.bf16 %v3003_v48, %v2999_v39  ;;  %v3037_v48 = vld [vmem:[#allocation11 + $0x5b0] sm:$0xff] }
 0x36a   :  { %5703 = vmatpush1.bf16.msra.mxu1 %v5702_v38  ;;  %5449 = vmatprep.subr.bf16.mxu0 %v5448_v10  ;;  %v2986_v38 = vld [vmem:[#allocation11 + $0x418] sm:$0xff] }
 0x36b   :  { %5705 = vmatprep.subr.bf16.mxu1 %v5704_v20  ;;  %v2990_v10 = vld [vmem:[#allocation11 + $0x438] sm:$0xff]  ;;  %v5464_v20 = vpack.c.bf16 %v2988_v6, %v2984_v4  ;;  %v3007_v4 = vld [vmem:[#allocation11 + $0x4c0] sm:$0xff] }
 0x36c   :  { %v5720_v33 = vpack.c.bf16 %v2990_v10, %v2986_v38  ;;  %v3011_v6 = vld [vmem:[#allocation11 + $0x4e0] sm:$0xff]  ;;  %v3009_v38 = vld [vmem:[#allocation11 + $0x4d0] sm:$0xff]  ;;  %v5732_v10 = vpack.c.bf16 %v3014_v37, %v3010_v63 }
 0x36d   :  { %5451 = vmatpush1.bf16.msra.mxu0 %v5450_v57  ;;  %v2985_v57 = vld [vmem:[#allocation11 + $0x410] sm:$0xff] }
 0x36e   :  { %5707 = vmatpush1.bf16.msra.mxu1 %v5706_v53  ;;  %5453 = vmatprep.subr.bf16.mxu0 %v5452_v27  ;;  %v2989_v53 = vld [vmem:[#allocation11 + $0x430] sm:$0xff]  ;;  %v2992_v27 = vld [vmem:[#allocation11 + $0x448] sm:$0xff] }
 0x36f   :  { %5709 = vmatprep.subr.bf16.mxu1 %v5708_v34  ;;  %v5978_v34 = vadd.f32 %v6679_v54, %v1570_v12  ;;  %v5722_v35 = vpack.c.bf16 %v2989_v53, %v2985_v57  ;;  %v5468_v52 = vpack.c.bf16 %v2996_v28, %v2992_v27  ;;  %v3002_v54 = vld [vmem:[#allocation11 + $0x498] sm:$0xff]  ;;  %v3005_v12 = vld [vmem:[#allocation11 + $0x4b0] sm:$0xff]  ;;  %v3015_v57 = vld [vmem:[#allocation11 + $0x500] sm:$0xff] }
 0x370   :  { %v3019_v53 = vld [vmem:[#allocation11 + $0x520] sm:$0xff]  ;;  %v3017_v27 = vld [vmem:[#allocation11 + $0x510] sm:$0xff] }
 0x371   :  { %5455 = vmatpush1.bf16.msra.mxu0 %v5454_v14  ;;  %v5724_v14 = vpack.c.bf16 %v2998_v31, %v2994_v0  ;;  %v2847_v30 = vmax.f32 %v5978_v34, 0.0  ;;  %v3021_v0 = vld [vmem:[#allocation11 + $0x530] sm:$0xff]  ;;  %v3024_v31 = vld [vmem:[#allocation11 + $0x548] sm:$0xff]  ;;  %v3026_v34 = vld [vmem:[#allocation11 + $0x558] sm:$0xff] }
 0x372   :  { %5711 = vmatpush1.bf16.msra.mxu1 %v5710_v49  ;;  %5457 = vmatprep.subr.bf16.mxu0 %v5456_v45  ;;  %v2997_v49 = vld [vmem:[#allocation11 + $0x470] sm:$0xff]  ;;  %v3000_v45 = vld [vmem:[#allocation11 + $0x488] sm:$0xff] }
 0x373   :  { %5713 = vmatprep.subr.bf16.mxu1 %v5712_v13  ;;  %v2842_v13 = vmax.f32 %v5981_v25, 0.0  ;;  %v5726_v21 = vpack.c.bf16 %v2997_v49, %v2993_v62  ;;  %v5472_v16 = vpack.c.bf16 %v3004_v46, %v3000_v45  ;;  %v5482_v25 = vpack.c.bf16 %v3019_v53, %v3015_v57  ;;  %v3032_v49 = vld [vmem:[#allocation11 + $0x588] sm:$0xff]  ;;  %v3034_v46 = vld [vmem:[#allocation11 + $0x598] sm:$0xff]  ;;  %v3053_v53 = vld [vmem:[#allocation11 + $0x630] sm:$0xff] }
 0x374   :  { %v3036_v45 = vld [vmem:[#allocation11 + $0x5a8] sm:$0xff] }
 0x375   :  { %5459 = vmatpush1.bf16.msra.mxu0 %v5458_v60  ;;  %v5728_v60 = vpack.c.bf16 %v3006_v42, %v3002_v54  ;;  %v3038_v54 = vld [vmem:[#allocation11 + $0x5b8] sm:$0xff] }
 0x376   :  { %5715 = vmatpush1.bf16.msra.mxu1 %v5714_v55  ;;  %5461 = vmatprep.subr.bf16.mxu0 %v5460_v56  ;;  %v3008_v55 = vld [vmem:[#allocation11 + $0x4c8] sm:$0xff]  ;;  %v5744_v39 = vpack.c.bf16 %v3038_v54, %v3034_v46 }
 0x377   :  { %5717 = vmatprep.subr.bf16.mxu1 %v5716_v23  ;;  %v3012_v56 = vld [vmem:[#allocation11 + $0x4e8] sm:$0xff]  ;;  %v5730_v23 = vpack.c.bf16 %v3005_v12, %v3001_v43  ;;  %v3042_v12 = vld [vmem:[#allocation11 + $0x5d8] sm:$0xff] }
 0x378   :  { %v5476_v3 = vpack.c.bf16 %v3012_v56, %v3008_v55  ;;  %v3040_v43 = vld [vmem:[#allocation11 + $0x5c8] sm:$0xff]  ;;  %v3046_v55 = vld [vmem:[#allocation11 + $0x5f8] sm:$0xff] }
 0x379   :  { %5463 = vmatpush1.bf16.msra.mxu0 %v5462_v11  ;;  %v3013_v11 = vld [vmem:[#allocation11 + $0x4f0] sm:$0xff] }
 0x37a   :  { %5719 = vmatpush1.bf16.msra.mxu1 %v5718_v19  ;;  %5465 = vmatprep.subr.bf16.mxu0 %v5464_v20  ;;  %v3020_v19 = vld [vmem:[#allocation11 + $0x528] sm:$0xff]  ;;  %v3018_v20 = vld [vmem:[#allocation11 + $0x518] sm:$0xff]  ;;  %v5734_v40 = vpack.c.bf16 %v3013_v11, %v3009_v38 }
 0x37b   :  { %5721 = vmatprep.subr.bf16.mxu1 %v5720_v33  ;;  %v5478_v33 = vpack.c.bf16 %v3011_v6, %v3007_v4  ;;  %v5480_v24 = vpack.c.bf16 %v3020_v19, %v3016_v17  ;;  %v5736_v28 = vpack.c.bf16 %v3022_v22, %v3018_v20  ;;  %v5748_v4 = vpack.c.bf16 %v3046_v55, %v3042_v12  ;;  %v3045_v6 = vld [vmem:[#allocation11 + $0x5f0] sm:$0xff]  ;;  %v3048_v38 = vld [vmem:[#allocation11 + $0x608] sm:$0xff]  ;;  %v3050_v11 = vld [vmem:[#allocation11 + $0x618] sm:$0xff] }
 0x37c   :  { %3454 = vmatmul.mubr.f32.vlgmr.msra.gmra.mrb[16].mxu0 %v2839_v7  ;;  %v3054_v17 = vld [vmem:[#allocation11 + $0x638] sm:$0xff] }
 0x37d   :  { %3762 = vmatmul.mubr.f32.vlgmr.msra.gmra.mrb[16].mxu1 %v2839_v7  ;;  %3459 = vmatprep.mubr.f32.mxu0 %v2848_v32  ;;  %v3028_v7 = vld [vmem:[#allocation11 + $0x568] sm:$0xff]  ;;  %v5752_v57 = vpack.c.bf16 %v3054_v17, %v3050_v11 }
 0x37e   :  { %5467 = vmatpush1.bf16.msra.mxu0 %v5466_v50  ;;  %3767 = vmatprep.mubr.f32.mxu1 %v2848_v32  ;;  %v3030_v50 = vld [vmem:[#allocation11 + $0x578] sm:$0xff]  ;;  %v5738_v32 = vpack.c.bf16 %v3021_v0, %v3017_v27  ;;  %v3056_v27 = vld [vmem:[#allocation11 + $0x648] sm:$0xff] }
 0x37f   :  { %5723 = vmatpush1.bf16.msra.mxu1 %v5722_v35  ;;  %5469 = vmatprep.subr.bf16.mxu0 %v5468_v52  ;;  %v5484_v35 = vpack.c.bf16 %v3028_v7, %v3024_v31  ;;  %v3023_v52 = vld [vmem:[#allocation11 + $0x540] sm:$0xff]  ;;  %v5740_v62 = vpack.c.bf16 %v3030_v50, %v3026_v34  ;;  %v3058_v0 = vld [vmem:[#allocation11 + $0x658] sm:$0xff] }
 0x380   :  { %3460 = vmatmul.mubr.f32.gmra.mrb[18].mxu0 %v2847_v30  ;;  %5725 = vmatprep.subr.bf16.mxu1 %v5724_v14  ;;  %v3029_v14 = vld [vmem:[#allocation11 + $0x570] sm:$0xff]  ;;  %v5486_v42 = vpack.c.bf16 %v3027_v15, %v3023_v52  ;;  %v3062_v31 = vld [vmem:[#allocation11 + $0x678] sm:$0xff] }
 0x381   :  { %3768 = vmatmul.mubr.f32.gmra.mrb[18].mxu1 %v2847_v30  ;;  %3530 = vmatprep.mubr.f32.mxu0 %v2842_v13  ;;  %v5742_v30 = vpack.c.bf16 %v3029_v14, %v3025_v41  ;;  %v5756_v52 = vpack.c.bf16 %v3062_v31, %v3058_v0  ;;  %v3061_v15 = vld [vmem:[#allocation11 + $0x670] sm:$0xff]  ;;  %v3064_v41 = vld [vmem:[#allocation11 + $0x688] sm:$0xff]  ;;  %v3066_v14 = vld [vmem:[#allocation11 + $0x698] sm:$0xff] }
 0x382   :  { %5471 = vmatpush1.bf16.msra.mxu0 %v5470_v9  ;;  %3838 = vmatprep.mubr.f32.mxu1 %v2842_v13  ;;  %v5488_v9 = vpack.c.bf16 %v3036_v45, %v3032_v49  ;;  %v3031_v13 = vld [vmem:[#allocation11 + $0x580] sm:$0xff]  ;;  %v3070_v49 = vld [vmem:[#allocation11 + $0x6b8] sm:$0xff] }
 0x383   :  { %5727 = vmatpush1.bf16.msra.mxu1 %v5726_v21  ;;  %5473 = vmatprep.subr.bf16.mxu0 %v5472_v16  ;;  %v3035_v21 = vld [vmem:[#allocation11 + $0x5a0] sm:$0xff]  ;;  %v3033_v16 = vld [vmem:[#allocation11 + $0x590] sm:$0xff] }
 0x384   :  { %5729 = vmatprep.subr.bf16.mxu1 %v5728_v60  ;;  %v3044_v60 = vld [vmem:[#allocation11 + $0x5e8] sm:$0xff]  ;;  %v5490_v56 = vpack.c.bf16 %v3035_v21, %v3031_v13  ;;  %v5746_v63 = vpack.c.bf16 %v3037_v48, %v3033_v16  ;;  %v5760_v13 = vpack.c.bf16 %v3070_v49, %v3066_v14  ;;  %v3069_v21 = vld [vmem:[#allocation11 + $0x6b0] sm:$0xff]  ;;  %v3074_v48 = vld [vmem:[#allocation11 + $0x6d8] sm:$0xff] }
 0x385   :  { %v5492_v37 = vpack.c.bf16 %v3044_v60, %v3040_v43  ;;  %v3072_v16 = vld [vmem:[#allocation11 + $0x6c8] sm:$0xff]  ;;  %v3078_v43 = vld [vmem:[#allocation11 + $0x6f8] sm:$0xff] }
 0x386   :  { %5475 = vmatpush1.bf16.msra.mxu0 %v5474_v2  ;;  %v3039_v2 = vld [vmem:[#allocation11 + $0x5c0] sm:$0xff] }
 0x387   :  { %5731 = vmatpush1.bf16.msra.mxu1 %v5730_v23  ;;  %5477 = vmatprep.subr.bf16.mxu0 %v5476_v3  ;;  %v3043_v23 = vld [vmem:[#allocation11 + $0x5e0] sm:$0xff]  ;;  %v3041_v3 = vld [vmem:[#allocation11 + $0x5d0] sm:$0xff] }
 0x388   :  { %5733 = vmatprep.subr.bf16.mxu1 %v5732_v10  ;;  %v3052_v10 = vld [vmem:[#allocation11 + $0x628] sm:$0xff]  ;;  %v5494_v19 = vpack.c.bf16 %v3043_v23, %v3039_v2  ;;  %v5750_v20 = vpack.c.bf16 %v3045_v6, %v3041_v3  ;;  %v5764_v2 = vpack.c.bf16 %v3078_v43, %v3074_v48  ;;  %v3077_v23 = vld [vmem:[#allocation11 + $0x6f0] sm:$0xff]  ;;  %v3082_v6 = vld [vmem:[#allocation11 + $0x718] sm:$0xff] }
 0x389   :  { %v5496_v22 = vpack.c.bf16 %v3052_v10, %v3048_v38  ;;  %v3080_v3 = vld [vmem:[#allocation11 + $0x708] sm:$0xff]  ;;  %v3086_v38 = vld [vmem:[#allocation11 + $0x738] sm:$0xff] }
 0x38a   :  { %5479 = vmatpush1.bf16.msra.mxu0 %v5478_v33  ;;  %v3047_v33 = vld [vmem:[#allocation11 + $0x600] sm:$0xff]  ;;  %v6713_v48 = vld [vmem:[#allocation10] sm:$0xff] }
 0x38b   :  { %5735 = vmatpush1.bf16.msra.mxu1 %v5734_v40  ;;  %5481 = vmatprep.subr.bf16.mxu0 %v5480_v24  ;;  %v3051_v40 = vld [vmem:[#allocation11 + $0x620] sm:$0xff]  ;;  %v3049_v24 = vld [vmem:[#allocation11 + $0x610] sm:$0xff]  ;;  %v1578_v43 = vrot.slane %v6713_v48, %v6555_v44 }
 0x38c   :  { %5737 = vmatprep.subr.bf16.mxu1 %v5736_v28  ;;  %v3060_v28 = vld [vmem:[#allocation11 + $0x668] sm:$0xff]  ;;  %v5498_v7 = vpack.c.bf16 %v3051_v40, %v3047_v33  ;;  %v5754_v34 = vpack.c.bf16 %v3053_v53, %v3049_v24  ;;  %v5768_v33 = vpack.c.bf16 %v3086_v38, %v3082_v6  ;;  %v3085_v40 = vld [vmem:[#allocation11 + $0x730] sm:$0xff]  ;;  %v3090_v53 = vld [vmem:[#allocation11 + $0x758] sm:$0xff] }
 0x38d   :  { %v5500_v50 = vpack.c.bf16 %v3060_v28, %v3056_v27  ;;  %v3088_v24 = vld [vmem:[#allocation11 + $0x748] sm:$0xff]  ;;  %v3094_v27 = vld [vmem:[#allocation11 + $0x778] sm:$0xff] }
 0x38e   :  { %5483 = vmatpush1.bf16.msra.mxu0 %v5482_v25  ;;  %v3055_v25 = vld [vmem:[#allocation11 + $0x640] sm:$0xff]  ;;  %v3118_v6 = vld [vmem:[#allocation11 + $0x838] sm:$0xff] }
 0x38f   :  { %5739 = vmatpush1.bf16.msra.mxu1 %v5738_v32  ;;  %5485 = vmatprep.subr.bf16.mxu0 %v5484_v35  ;;  %v3059_v32 = vld [vmem:[#allocation11 + $0x660] sm:$0xff]  ;;  %v3057_v35 = vld [vmem:[#allocation11 + $0x650] sm:$0xff] }
 0x390   :  { %5741 = vmatprep.subr.bf16.mxu1 %v5740_v62  ;;  %v3068_v62 = vld [vmem:[#allocation11 + $0x6a8] sm:$0xff]  ;;  %v5502_v45 = vpack.c.bf16 %v3059_v32, %v3055_v25  ;;  %v5758_v46 = vpack.c.bf16 %v3061_v15, %v3057_v35  ;;  %v5772_v25 = vpack.c.bf16 %v3094_v27, %v3090_v53  ;;  %v3093_v32 = vld [vmem:[#allocation11 + $0x770] sm:$0xff]  ;;  %v3098_v15 = vld [vmem:[#allocation11 + $0x798] sm:$0xff] }
 0x391   :  { %v5504_v54 = vpack.c.bf16 %v3068_v62, %v3064_v41  ;;  %v3096_v35 = vld [vmem:[#allocation11 + $0x788] sm:$0xff]  ;;  %v3102_v41 = vld [vmem:[#allocation11 + $0x7b8] sm:$0xff] }
 0x392   :  { %5487 = vmatpush1.bf16.msra.mxu0 %v5486_v42  ;;  %v3063_v42 = vld [vmem:[#allocation11 + $0x680] sm:$0xff]  ;;  %v3124_v53 = vld [vmem:[#allocation11 + $0x868] sm:$0xff]  ;;  %v3122_v27 = vld [vmem:[#allocation11 + $0x858] sm:$0xff] }
 0x393   :  { %5743 = vmatpush1.bf16.msra.mxu1 %v5742_v30  ;;  %5489 = vmatprep.subr.bf16.mxu0 %v5488_v9  ;;  %v3067_v30 = vld [vmem:[#allocation11 + $0x6a0] sm:$0xff]  ;;  %v3065_v9 = vld [vmem:[#allocation11 + $0x690] sm:$0xff] }
 0x394   :  { %5745 = vmatprep.subr.bf16.mxu1 %v5744_v39  ;;  %v3076_v39 = vld [vmem:[#allocation11 + $0x6e8] sm:$0xff]  ;;  %v5506_v60 = vpack.c.bf16 %v3067_v30, %v3063_v42  ;;  %v5762_v12 = vpack.c.bf16 %v3069_v21, %v3065_v9  ;;  %v5776_v42 = vpack.c.bf16 %v3102_v41, %v3098_v15  ;;  %v3101_v30 = vld [vmem:[#allocation11 + $0x7b0] sm:$0xff]  ;;  %v3106_v21 = vld [vmem:[#allocation11 + $0x7d8] sm:$0xff] }
 0x395   :  { %v5508_v55 = vpack.c.bf16 %v3076_v39, %v3072_v16  ;;  %v3104_v9 = vld [vmem:[#allocation11 + $0x7c8] sm:$0xff]  ;;  %v3110_v16 = vld [vmem:[#allocation11 + $0x7f8] sm:$0xff] }
 0x396   :  { %5491 = vmatpush1.bf16.msra.mxu0 %v5490_v56  ;;  %v3071_v56 = vld [vmem:[#allocation11 + $0x6c0] sm:$0xff]  ;;  %v3132_v15 = vld [vmem:[#allocation11 + $0x8a8] sm:$0xff]  ;;  %v3130_v41 = vld [vmem:[#allocation11 + $0x898] sm:$0xff] }
 0x397   :  { %5747 = vmatpush1.bf16.msra.mxu1 %v5746_v63  ;;  %5493 = vmatprep.subr.bf16.mxu0 %v5492_v37  ;;  %v3075_v63 = vld [vmem:[#allocation11 + $0x6e0] sm:$0xff]  ;;  %v3073_v37 = vld [vmem:[#allocation11 + $0x6d0] sm:$0xff] }
 0x398   :  { %5749 = vmatprep.subr.bf16.mxu1 %v5748_v4  ;;  %v3084_v4 = vld [vmem:[#allocation11 + $0x728] sm:$0xff]  ;;  %v5510_v10 = vpack.c.bf16 %v3075_v63, %v3071_v56  ;;  %v5766_v11 = vpack.c.bf16 %v3077_v23, %v3073_v37  ;;  %v3107_v56 = vld [vmem:[#allocation11 + $0x7e0] sm:$0xff]  ;;  %v3105_v63 = vld [vmem:[#allocation11 + $0x7d0] sm:$0xff]  ;;  %v5780_v37 = vpack.c.bf16 %v3110_v16, %v3106_v21 }
 0x399   :  { %v5512_v17 = vpack.c.bf16 %v3084_v4, %v3080_v3  ;;  %v3112_v23 = vld [vmem:[#allocation11 + $0x808] sm:$0xff]  ;;  %v3114_v4 = vld [vmem:[#allocation11 + $0x818] sm:$0xff] }
 0x39a   :  { %5495 = vmatpush1.bf16.msra.mxu0 %v5494_v19  ;;  %v3079_v19 = vld [vmem:[#allocation11 + $0x700] sm:$0xff]  ;;  %v3116_v3 = vld [vmem:[#allocation11 + $0x828] sm:$0xff]  ;;  %v3138_v16 = vld [vmem:[#allocation11 + $0x8d8] sm:$0xff] }
 0x39b   :  { %5751 = vmatpush1.bf16.msra.mxu1 %v5750_v20  ;;  %5497 = vmatprep.subr.bf16.mxu0 %v5496_v22  ;;  %v3083_v20 = vld [vmem:[#allocation11 + $0x720] sm:$0xff]  ;;  %v3081_v22 = vld [vmem:[#allocation11 + $0x710] sm:$0xff]  ;;  %v3140_v21 = vld [vmem:[#allocation11 + $0x8e8] sm:$0xff] }
 0x39c   :  { %5753 = vmatprep.subr.bf16.mxu1 %v5752_v57  ;;  %v3092_v57 = vld [vmem:[#allocation11 + $0x768] sm:$0xff]  ;;  %v5514_v28 = vpack.c.bf16 %v3083_v20, %v3079_v19  ;;  %v5770_v0 = vpack.c.bf16 %v3085_v40, %v3081_v22  ;;  %v5983_v19 = vadd.f32 %v6685_v26, %v6706_v36  ;;  %v5784_v20 = vpack.c.bf16 %v3118_v6, %v3114_v4  ;;  %v3111_v22 = vld [vmem:[#allocation11 + $0x800] sm:$0xff]  ;;  %v3113_v40 = vld [vmem:[#allocation11 + $0x810] sm:$0xff] }
 0x39d   :  { %v5516_v31 = vpack.c.bf16 %v3092_v57, %v3088_v24  ;;  %v3117_v24 = vld [vmem:[#allocation11 + $0x830] sm:$0xff]  ;;  %v3120_v57 = vld [vmem:[#allocation11 + $0x848] sm:$0xff]  ;;  %v3146_v4 = vld [vmem:[#allocation11 + $0x918] sm:$0xff] }
 0x39e   :  { %5499 = vmatpush1.bf16.msra.mxu0 %v5498_v7  ;;  %v3087_v7 = vld [vmem:[#allocation11 + $0x740] sm:$0xff]  ;;  %v5786_v26 = vpack.c.bf16 %v3117_v24, %v3113_v40  ;;  %v5532_v36 = vpack.c.bf16 %v3124_v53, %v3120_v57  ;;  %v3150_v6 = vld [vmem:[#allocation11 + $0x938] sm:$0xff]  ;;  %v3152_v40 = vld [vmem:[#allocation11 + $0x948] sm:$0xff] }
 0x39f   :  { %5755 = vmatpush1.bf16.msra.mxu1 %v5754_v34  ;;  %5501 = vmatprep.subr.bf16.mxu0 %v5500_v50  ;;  %v3091_v34 = vld [vmem:[#allocation11 + $0x760] sm:$0xff]  ;;  %v3089_v50 = vld [vmem:[#allocation11 + $0x750] sm:$0xff]  ;;  %v3156_v24 = vld [vmem:[#allocation11 + $0x968] sm:$0xff] }
 0x3a0   :  { %5757 = vmatprep.subr.bf16.mxu1 %v5756_v52  ;;  %v3100_v52 = vld [vmem:[#allocation11 + $0x7a8] sm:$0xff]  ;;  %v5518_v62 = vpack.c.bf16 %v3091_v34, %v3087_v7  ;;  %v5774_v14 = vpack.c.bf16 %v3093_v32, %v3089_v50  ;;  %v2850_v7 = vmax.f32 %v5983_v19, 0.0  ;;  %v3119_v34 = vld [vmem:[#allocation11 + $0x840] sm:$0xff]  ;;  %v3154_v57 = vld [vmem:[#allocation11 + $0x958] sm:$0xff] }
 0x3a1   :  { %v5520_v49 = vpack.c.bf16 %v3100_v52, %v3096_v35  ;;  %v3123_v50 = vld [vmem:[#allocation11 + $0x860] sm:$0xff]  ;;  %v3125_v35 = vld [vmem:[#allocation11 + $0x870] sm:$0xff]  ;;  %v3128_v52 = vld [vmem:[#allocation11 + $0x888] sm:$0xff] }
 0x3a2   :  { %5503 = vmatpush1.bf16.msra.mxu0 %v5502_v45  ;;  %v3095_v45 = vld [vmem:[#allocation11 + $0x780] sm:$0xff]  ;;  %v3158_v53 = vld [vmem:[#allocation11 + $0x978] sm:$0xff] }
 0x3a3   :  { %5759 = vmatpush1.bf16.msra.mxu1 %v5758_v46  ;;  %5505 = vmatprep.subr.bf16.mxu0 %v5504_v54  ;;  %v3099_v46 = vld [vmem:[#allocation11 + $0x7a0] sm:$0xff]  ;;  %v3097_v54 = vld [vmem:[#allocation11 + $0x790] sm:$0xff] }
 0x3a4   :  { %5761 = vmatprep.subr.bf16.mxu1 %v5760_v13  ;;  %v3108_v13 = vld [vmem:[#allocation11 + $0x7e8] sm:$0xff]  ;;  %v5522_v39 = vpack.c.bf16 %v3099_v46, %v3095_v45  ;;  %v5536_v45 = vpack.c.bf16 %v3132_v15, %v3128_v52  ;;  %v3127_v46 = vld [vmem:[#allocation11 + $0x880] sm:$0xff] }
 0x3a5   :  { %v3147_v19 = vld [vmem:[#allocation11 + $0x920] sm:$0xff] }
 0x3a6   :  { %5507 = vmatpush1.bf16.msra.mxu0 %v5506_v60  ;;  %v5778_v60 = vpack.c.bf16 %v3101_v30, %v3097_v54  ;;  %v3131_v54 = vld [vmem:[#allocation11 + $0x8a0] sm:$0xff] }
 0x3a7   :  { %5763 = vmatpush1.bf16.msra.mxu1 %v5762_v12  ;;  %5509 = vmatprep.subr.bf16.mxu0 %v5508_v55  ;;  %v5524_v12 = vpack.c.bf16 %v3108_v13, %v3104_v9  ;;  %v3103_v55 = vld [vmem:[#allocation11 + $0x7c0] sm:$0xff]  ;;  %v3133_v9 = vld [vmem:[#allocation11 + $0x8b0] sm:$0xff]  ;;  %v3136_v13 = vld [vmem:[#allocation11 + $0x8c8] sm:$0xff] }
 0x3a8   :  { %5765 = vmatprep.subr.bf16.mxu1 %v5764_v2  ;;  %v3109_v2 = vld [vmem:[#allocation11 + $0x7f0] sm:$0xff]  ;;  %v5526_v38 = vpack.c.bf16 %v3107_v56, %v3103_v55  ;;  %v3135_v55 = vld [vmem:[#allocation11 + $0x8c0] sm:$0xff] }
 0x3a9   :  { %v3139_v56 = vld [vmem:[#allocation11 + $0x8e0] sm:$0xff] }
 0x3aa   :  { %5511 = vmatpush1.bf16.msra.mxu0 %v5510_v10  ;;  %v5980_v10 = vadd.f32 %v6673_v5, %v1578_v43  ;;  %v5982_v5 = vadd.f32 %v6681_v51, %v1578_v43  ;;  %v5538_v43 = vpack.c.bf16 %v3131_v54, %v3127_v46  ;;  %v3172_v46 = vld [vmem:[#allocation11 + $0x9e8] sm:$0xff]  ;;  %v3170_v54 = vld [vmem:[#allocation11 + $0x9d8] sm:$0xff] }
 0x3ab   :  { %5767 = vmatpush1.bf16.msra.mxu1 %v5766_v11  ;;  %5513 = vmatprep.subr.bf16.mxu0 %v5512_v17  ;;  %v5782_v11 = vpack.c.bf16 %v3109_v2, %v3105_v63  ;;  %v5528_v17 = vpack.c.bf16 %v3116_v3, %v3112_v23  ;;  %v3137_v63 = vld [vmem:[#allocation11 + $0x8d0] sm:$0xff]  ;;  %v3144_v23 = vld [vmem:[#allocation11 + $0x908] sm:$0xff] }
 0x3ac   :  { %5769 = vmatprep.subr.bf16.mxu1 %v5768_v33  ;;  %v3115_v33 = vld [vmem:[#allocation11 + $0x820] sm:$0xff]  ;;  %v2849_v51 = vmax.f32 %v5982_v5, 0.0  ;;  %v3141_v2 = vld [vmem:[#allocation11 + $0x8f0] sm:$0xff]  ;;  %v3148_v3 = vld [vmem:[#allocation11 + $0x928] sm:$0xff] }
 0x3ad   :  { %v3151_v5 = vld [vmem:[#allocation11 + $0x940] sm:$0xff] }
 0x3ae   :  { %5515 = vmatpush1.bf16.msra.mxu0 %v5514_v28  ;;  %v3126_v28 = vld [vmem:[#allocation11 + $0x878] sm:$0xff] }
 0x3af   :  { %5771 = vmatpush1.bf16.msra.mxu1 %v5770_v0  ;;  %5517 = vmatprep.subr.bf16.mxu0 %v5516_v31  ;;  %v2841_v0 = vmax.f32 %v5980_v10, 0.0  ;;  %v5530_v31 = vpack.c.bf16 %v3115_v33, %v3111_v22  ;;  %v5788_v32 = vpack.c.bf16 %v3126_v28, %v3122_v27  ;;  %v5798_v10 = vpack.c.bf16 %v3141_v2, %v3137_v63  ;;  %v3149_v33 = vld [vmem:[#allocation11 + $0x930] sm:$0xff]  ;;  %v3182_v63 = vld [vmem:[#allocation11 + $0xa38] sm:$0xff] }
 0x3b0   :  { %5773 = vmatprep.subr.bf16.mxu1 %v5772_v25  ;;  %v3121_v25 = vld [vmem:[#allocation11 + $0x850] sm:$0xff]  ;;  %v5800_v22 = vpack.c.bf16 %v3150_v6, %v3146_v4  ;;  %v3179_v4 = vld [vmem:[#allocation11 + $0xa20] sm:$0xff] }
 0x3b1   :  { %v3177_v6 = vld [vmem:[#allocation11 + $0xa10] sm:$0xff] }
 0x3b2   :  { %5519 = vmatpush1.bf16.msra.mxu0 %v5518_v62  ;;  %v3134_v62 = vld [vmem:[#allocation11 + $0x8b8] sm:$0xff] }
 0x3b3   :  { %5775 = vmatpush1.bf16.msra.mxu1 %v5774_v14  ;;  %5521 = vmatprep.subr.bf16.mxu0 %v5520_v49  ;;  %v5534_v14 = vpack.c.bf16 %v3123_v50, %v3119_v34  ;;  %v5790_v49 = vpack.c.bf16 %v3125_v35, %v3121_v25  ;;  %v5792_v30 = vpack.c.bf16 %v3134_v62, %v3130_v41  ;;  %v3160_v34 = vld [vmem:[#allocation11 + $0x988] sm:$0xff]  ;;  %v3162_v25 = vld [vmem:[#allocation11 + $0x998] sm:$0xff]  ;;  %v3159_v41 = vld [vmem:[#allocation11 + $0x980] sm:$0xff] }
 0x3b4   :  { %5777 = vmatprep.subr.bf16.mxu1 %v5776_v42  ;;  %v3129_v42 = vld [vmem:[#allocation11 + $0x890] sm:$0xff]  ;;  %v3164_v50 = vld [vmem:[#allocation11 + $0x9a8] sm:$0xff]  ;;  %v3163_v62 = vld [vmem:[#allocation11 + $0x9a0] sm:$0xff] }
 0x3b5   :  { %v5552_v15 = vpack.c.bf16 %v3164_v50, %v3160_v34  ;;  %v3191_v50 = vld [vmem:[#allocation11 + $0xa80] sm:$0xff] }
 0x3b6   :  { %5523 = vmatpush1.bf16.msra.mxu0 %v5522_v39  ;;  %v3142_v39 = vld [vmem:[#allocation11 + $0x8f8] sm:$0xff] }
 0x3b7   :  { %5779 = vmatpush1.bf16.msra.mxu1 %v5778_v60  ;;  %5525 = vmatprep.subr.bf16.mxu0 %v5524_v12  ;;  %v5794_v60 = vpack.c.bf16 %v3133_v9, %v3129_v42  ;;  %v5540_v12 = vpack.c.bf16 %v3140_v21, %v3136_v13  ;;  %v3174_v42 = vld [vmem:[#allocation11 + $0x9f8] sm:$0xff]  ;;  %v3167_v21 = vld [vmem:[#allocation11 + $0x9c0] sm:$0xff] }
 0x3b8   :  { %5781 = vmatprep.subr.bf16.mxu1 %v5780_v37  ;;  %v5796_v37 = vpack.c.bf16 %v3142_v39, %v3138_v16  ;;  %v3171_v16 = vld [vmem:[#allocation11 + $0x9e0] sm:$0xff]  ;;  %v3169_v39 = vld [vmem:[#allocation11 + $0x9d0] sm:$0xff] }
 0x3ba   :  { %5527 = vmatpush1.bf16.msra.mxu0 %v5526_v38  ;;  %v5542_v38 = vpack.c.bf16 %v3139_v56, %v3135_v55  ;;  %v3180_v55 = vld [vmem:[#allocation11 + $0xa28] sm:$0xff]  ;;  %v3178_v56 = vld [vmem:[#allocation11 + $0xa18] sm:$0xff] }
 0x3bb   :  { %5783 = vmatpush1.bf16.msra.mxu1 %v5782_v11  ;;  %5529 = vmatprep.subr.bf16.mxu0 %v5528_v17  ;;  %v5544_v11 = vpack.c.bf16 %v3148_v3, %v3144_v23  ;;  %v3143_v17 = vld [vmem:[#allocation11 + $0x900] sm:$0xff] }
 0x3bc   :  { %5785 = vmatprep.subr.bf16.mxu1 %v5784_v20  ;;  %v3145_v20 = vld [vmem:[#allocation11 + $0x910] sm:$0xff]  ;;  %v5546_v27 = vpack.c.bf16 %v3147_v19, %v3143_v17  ;;  %v3175_v3 = vld [vmem:[#allocation11 + $0xa00] sm:$0xff]  ;;  %v3188_v17 = vld [vmem:[#allocation11 + $0xa68] sm:$0xff] }
 0x3bd   :  { %3531 = vmatmul.mubr.f32.vlgmr.msra.gmra.mrb[16].mxu0 %v2841_v0  ;;  %v5802_v28 = vpack.c.bf16 %v3149_v33, %v3145_v20  ;;  %v3186_v19 = vld [vmem:[#allocation11 + $0xa58] sm:$0xff] }
 0x3be   :  { %3839 = vmatmul.mubr.f32.vlgmr.msra.gmra.mrb[16].mxu1 %v2841_v0  ;;  %3536 = vmatprep.mubr.f32.mxu0 %v2850_v7  ;;  %v5548_v0 = vpack.c.bf16 %v3156_v24, %v3152_v40  ;;  %v3190_v20 = vld [vmem:[#allocation11 + $0xa78] sm:$0xff]  ;;  %v3183_v24 = vld [vmem:[#allocation11 + $0xa40] sm:$0xff] }
 0x3bf   :  { %3844 = vmatprep.mubr.f32.mxu1 %v2850_v7  ;;  %5531 = vmatpush1.bf16.msra.mxu0 %v5530_v31  ;;  %v3155_v31 = vld [vmem:[#allocation11 + $0x960] sm:$0xff]  ;;  %v3153_v7 = vld [vmem:[#allocation11 + $0x950] sm:$0xff] }
 0x3c0   :  { %5787 = vmatpush1.bf16.msra.mxu1 %v5786_v26  ;;  %5533 = vmatprep.subr.bf16.mxu0 %v5532_v36  ;;  %v5804_v26 = vpack.c.bf16 %v3158_v53, %v3154_v57  ;;  %v3157_v36 = vld [vmem:[#allocation11 + $0x970] sm:$0xff]  ;;  %v5550_v35 = vpack.c.bf16 %v3155_v31, %v3151_v5  ;;  %v3187_v57 = vld [vmem:[#allocation11 + $0xa60] sm:$0xff]  ;;  %v3196_v5 = vld [vmem:[#allocation11 + $0xaa8] sm:$0xff] }
 0x3c1   :  { %3537 = vmatmul.mubr.f32.gmra.mrb[18].mxu0 %v2849_v51  ;;  %5789 = vmatprep.subr.bf16.mxu1 %v5788_v32  ;;  %v3166_v32 = vld [vmem:[#allocation11 + $0x9b8] sm:$0xff]  ;;  %v5806_v52 = vpack.c.bf16 %v3157_v36, %v3153_v7  ;;  %v3185_v53 = vld [vmem:[#allocation11 + $0xa50] sm:$0xff] }
 0x3c2   :  { %3845 = vmatmul.mubr.f32.gmra.mrb[18].mxu1 %v2849_v51  ;;  %v3161_v51 = vld [vmem:[#allocation11 + $0x990] sm:$0xff]  ;;  %v3194_v31 = vld [vmem:[#allocation11 + $0xa98] sm:$0xff] }
 0x3c3   :  { %5535 = vmatpush1.bf16.msra.mxu0 %v5534_v14  ;;  %v5808_v14 = vpack.c.bf16 %v3166_v32, %v3162_v25  ;;  %v3198_v7 = vld [vmem:[#allocation11 + $0xab8] sm:$0xff]  ;;  %v3195_v25 = vld [vmem:[#allocation11 + $0xaa0] sm:$0xff]  ;;  %v3193_v32 = vld [vmem:[#allocation11 + $0xa90] sm:$0xff] }
 0x3c4   :  { %5791 = vmatpush1.bf16.msra.mxu1 %v5790_v49  ;;  %5537 = vmatprep.subr.bf16.mxu0 %v5536_v45  ;;  %v3165_v49 = vld [vmem:[#allocation11 + $0x9b0] sm:$0xff]  ;;  %v3168_v45 = vld [vmem:[#allocation11 + $0x9c8] sm:$0xff] }
 0x3c5   :  { %5793 = vmatprep.subr.bf16.mxu1 %v5792_v30  ;;  %v5554_v30 = vpack.c.bf16 %v3163_v62, %v3159_v41  ;;  %v5810_v9 = vpack.c.bf16 %v3165_v49, %v3161_v51  ;;  %v5556_v13 = vpack.c.bf16 %v3172_v46, %v3168_v45  ;;  %v3204_v41 = vld [vmem:[#allocation11 + $0xae8] sm:$0xff]  ;;  %v3202_v62 = vld [vmem:[#allocation11 + $0xad8] sm:$0xff]  ;;  %v3199_v46 = vld [vmem:[#allocation11 + $0xac0] sm:$0xff] }
 0x3c6   :  { %v3206_v51 = vld [vmem:[#allocation11 + $0xaf8] sm:$0xff] }
 0x3c7   :  { %5539 = vmatpush1.bf16.msra.mxu0 %v5538_v43  ;;  %v5812_v43 = vpack.c.bf16 %v3174_v42, %v3170_v54  ;;  %v3203_v54 = vld [vmem:[#allocation11 + $0xae0] sm:$0xff]  ;;  %v3201_v42 = vld [vmem:[#allocation11 + $0xad0] sm:$0xff] }
 0x3c8   :  { %5795 = vmatpush1.bf16.msra.mxu1 %v5794_v60  ;;  %5541 = vmatprep.subr.bf16.mxu0 %v5540_v12  ;;  %v3173_v60 = vld [vmem:[#allocation11 + $0x9f0] sm:$0xff]  ;;  %v3176_v12 = vld [vmem:[#allocation11 + $0xa08] sm:$0xff] }
 0x3c9   :  { %5797 = vmatprep.subr.bf16.mxu1 %v5796_v37  ;;  %v5558_v37 = vpack.c.bf16 %v3171_v16, %v3167_v21  ;;  %v5814_v2 = vpack.c.bf16 %v3173_v60, %v3169_v39  ;;  %v5560_v23 = vpack.c.bf16 %v3180_v55, %v3176_v12  ;;  %v3212_v21 = vld [vmem:[#allocation11 + $0xb28] sm:$0xff]  ;;  %v3210_v16 = vld [vmem:[#allocation11 + $0xb18] sm:$0xff]  ;;  %v3207_v55 = vld [vmem:[#allocation11 + $0xb00] sm:$0xff] }
 0x3ca   :  { %v3214_v39 = vld [vmem:[#allocation11 + $0xb38] sm:$0xff] }
 0x3cb   :  { %5543 = vmatpush1.bf16.msra.mxu0 %v5542_v38  ;;  %v5816_v38 = vpack.c.bf16 %v3182_v63, %v3178_v56  ;;  %v3211_v56 = vld [vmem:[#allocation11 + $0xb20] sm:$0xff]  ;;  %v3209_v63 = vld [vmem:[#allocation11 + $0xb10] sm:$0xff] }
 0x3cc   :  { %5799 = vmatpush1.bf16.msra.mxu1 %v5798_v10  ;;  %5545 = vmatprep.subr.bf16.mxu0 %v5544_v11  ;;  %v3181_v10 = vld [vmem:[#allocation11 + $0xa30] sm:$0xff]  ;;  %v3184_v11 = vld [vmem:[#allocation11 + $0xa48] sm:$0xff] }
 0x3cd   :  { %5801 = vmatprep.subr.bf16.mxu1 %v5800_v22  ;;  %v5562_v22 = vpack.c.bf16 %v3179_v4, %v3175_v3  ;;  %v5818_v33 = vpack.c.bf16 %v3181_v10, %v3177_v6  ;;  %v5564_v40 = vpack.c.bf16 %v3188_v17, %v3184_v11  ;;  %v3220_v3 = vld [vmem:[#allocation11 + $0xb68] sm:$0xff]  ;;  %v3218_v4 = vld [vmem:[#allocation11 + $0xb58] sm:$0xff]  ;;  %v3215_v17 = vld [vmem:[#allocation11 + $0xb40] sm:$0xff] }
 0x3ce   :  { %v3222_v6 = vld [vmem:[#allocation11 + $0xb78] sm:$0xff] }
 0x3cf   :  { %5547 = vmatpush1.bf16.msra.mxu0 %v5546_v27  ;;  %v5820_v27 = vpack.c.bf16 %v3190_v20, %v3186_v19  ;;  %v3219_v19 = vld [vmem:[#allocation11 + $0xb60] sm:$0xff]  ;;  %v3217_v20 = vld [vmem:[#allocation11 + $0xb50] sm:$0xff] }
 0x3d0   :  { %5803 = vmatpush1.bf16.msra.mxu1 %v5802_v28  ;;  %5549 = vmatprep.subr.bf16.mxu0 %v5548_v0  ;;  %v3189_v28 = vld [vmem:[#allocation11 + $0xa70] sm:$0xff]  ;;  %v3192_v0 = vld [vmem:[#allocation11 + $0xa88] sm:$0xff] }
 0x3d1   :  { %5805 = vmatprep.subr.bf16.mxu1 %v5804_v26  ;;  %v5566_v26 = vpack.c.bf16 %v3187_v57, %v3183_v24  ;;  %v5822_v36 = vpack.c.bf16 %v3189_v28, %v3185_v53  ;;  %v5568_v34 = vpack.c.bf16 %v3196_v5, %v3192_v0  ;;  %v3228_v24 = vld [vmem:[#allocation11 + $0xba8] sm:$0xff]  ;;  %v3226_v57 = vld [vmem:[#allocation11 + $0xb98] sm:$0xff]  ;;  %v3223_v5 = vld [vmem:[#allocation11 + $0xb80] sm:$0xff] }
 0x3d2   :  { %v3230_v53 = vld [vmem:[#allocation11 + $0xbb8] sm:$0xff] }
 0x3d3   :  { %5551 = vmatpush1.bf16.msra.mxu0 %v5550_v35  ;;  %v5824_v35 = vpack.c.bf16 %v3198_v7, %v3194_v31  ;;  %v3227_v31 = vld [vmem:[#allocation11 + $0xba0] sm:$0xff]  ;;  %v3225_v7 = vld [vmem:[#allocation11 + $0xb90] sm:$0xff] }
 0x3d4   :  { %5807 = vmatpush1.bf16.msra.mxu1 %v5806_v52  ;;  %5553 = vmatprep.subr.bf16.mxu0 %v5552_v15  ;;  %v3197_v52 = vld [vmem:[#allocation11 + $0xab0] sm:$0xff]  ;;  %v3200_v15 = vld [vmem:[#allocation11 + $0xac8] sm:$0xff] }
 0x3d5   :  { %5809 = vmatprep.subr.bf16.mxu1 %v5808_v14  ;;  %v5570_v14 = vpack.c.bf16 %v3195_v25, %v3191_v50  ;;  %v5826_v49 = vpack.c.bf16 %v3197_v52, %v3193_v32  ;;  %v5572_v45 = vpack.c.bf16 %v3204_v41, %v3200_v15  ;;  %v3236_v50 = vld [vmem:[#allocation11 + $0xbe8] sm:$0xff]  ;;  %v3234_v25 = vld [vmem:[#allocation11 + $0xbd8] sm:$0xff]  ;;  %v3231_v41 = vld [vmem:[#allocation11 + $0xbc0] sm:$0xff] }
 0x3d6   :  { %v3238_v32 = vld [vmem:[#allocation11 + $0xbf8] sm:$0xff] }
 0x3d7   :  { %5555 = vmatpush1.bf16.msra.mxu0 %v5554_v30  ;;  %v5828_v30 = vpack.c.bf16 %v3206_v51, %v3202_v62  ;;  %v3235_v62 = vld [vmem:[#allocation11 + $0xbe0] sm:$0xff]  ;;  %v3233_v51 = vld [vmem:[#allocation11 + $0xbd0] sm:$0xff] }
 0x3d8   :  { %5811 = vmatpush1.bf16.msra.mxu1 %v5810_v9  ;;  %5557 = vmatprep.subr.bf16.mxu0 %v5556_v13  ;;  %v3205_v9 = vld [vmem:[#allocation11 + $0xaf0] sm:$0xff]  ;;  %v3208_v13 = vld [vmem:[#allocation11 + $0xb08] sm:$0xff] }
 0x3d9   :  { %5813 = vmatprep.subr.bf16.mxu1 %v5812_v43  ;;  %v5574_v43 = vpack.c.bf16 %v3203_v54, %v3199_v46  ;;  %v5830_v60 = vpack.c.bf16 %v3205_v9, %v3201_v42  ;;  %v5576_v12 = vpack.c.bf16 %v3212_v21, %v3208_v13  ;;  %v3244_v46 = vld [vmem:[#allocation11 + $0xc28] sm:$0xff]  ;;  %v3242_v54 = vld [vmem:[#allocation11 + $0xc18] sm:$0xff] }
 0x3da   :  { %v3246_v42 = vld [vmem:[#allocation11 + $0xc38] sm:$0xff] }
 0x3db   :  { %5559 = vmatpush1.bf16.msra.mxu0 %v5558_v37  ;;  %v5832_v37 = vpack.c.bf16 %v3214_v39, %v3210_v16  ;;  %v5848_v21 = vpack.c.bf16 %v3246_v42, %v3242_v54  ;;  %v1586_v16 = vrot.slane %v6713_v48, %v188_v29  ;;  %v1590_v39 = vrot.slane %v6713_v48, %v192_v18 }
 0x3dc   :  { %5815 = vmatpush1.bf16.msra.mxu1 %v5814_v2  ;;  %5561 = vmatprep.subr.bf16.mxu0 %v5560_v23  ;;  %v3213_v2 = vld [vmem:[#allocation11 + $0xb30] sm:$0xff]  ;;  %v3216_v23 = vld [vmem:[#allocation11 + $0xb48] sm:$0xff]  ;;  %v6732_v29 = vrot.slane %v6713_v48, %v200_v8 }
 0x3dd   :  { %5817 = vmatprep.subr.bf16.mxu1 %v5816_v38  ;;  %v5578_v38 = vpack.c.bf16 %v3211_v56, %v3207_v55  ;;  %v5834_v10 = vpack.c.bf16 %v3213_v2, %v3209_v63  ;;  %v5580_v11 = vpack.c.bf16 %v3220_v3, %v3216_v23  ;;  %v3245_v2 = vld [vmem:[#allocation11 + $0xc30] sm:$0xff]  ;;  %v3248_v23 = vld [vmem:[#allocation11 + $0xc48] sm:$0xff] }
 0x3de   :  { %v3256_v8 = vld [vmem:[#allocation11 + $0xc88] sm:$0xff] }
 0x3df   :  { %5563 = vmatpush1.bf16.msra.mxu0 %v5562_v22  ;;  %v5836_v22 = vpack.c.bf16 %v3222_v6, %v3218_v4  ;;  %v3252_v6 = vld [vmem:[#allocation11 + $0xc68] sm:$0xff] }
 0x3e0   :  { %5819 = vmatpush1.bf16.msra.mxu1 %v5818_v33  ;;  %5565 = vmatprep.subr.bf16.mxu0 %v5564_v40  ;;  %v3221_v33 = vld [vmem:[#allocation11 + $0xb70] sm:$0xff]  ;;  %v3224_v40 = vld [vmem:[#allocation11 + $0xb88] sm:$0xff] }
 0x3e1   :  { %5821 = vmatprep.subr.bf16.mxu1 %v5820_v27  ;;  %v5582_v27 = vpack.c.bf16 %v3219_v19, %v3215_v17  ;;  %v5838_v28 = vpack.c.bf16 %v3221_v33, %v3217_v20  ;;  %v5584_v0 = vpack.c.bf16 %v3228_v24, %v3224_v40  ;;  %v3247_v20 = vld [vmem:[#allocation11 + $0xc40] sm:$0xff] }
 0x3e3   :  { %5567 = vmatpush1.bf16.msra.mxu0 %v5566_v26  ;;  %v5840_v26 = vpack.c.bf16 %v3230_v53, %v3226_v57  ;;  %v5596_v57 = vpack.c.bf16 %v3252_v6, %v3248_v23  ;;  %v3271_v23 = vld [vmem:[#allocation11 + $0xd00] sm:$0xff] }
 0x3e4   :  { %5823 = vmatpush1.bf16.msra.mxu1 %v5822_v36  ;;  %5569 = vmatprep.subr.bf16.mxu0 %v5568_v34  ;;  %v3229_v36 = vld [vmem:[#allocation11 + $0xbb0] sm:$0xff]  ;;  %v3232_v34 = vld [vmem:[#allocation11 + $0xbc8] sm:$0xff] }
 0x3e5   :  { %5825 = vmatprep.subr.bf16.mxu1 %v5824_v35  ;;  %v5586_v35 = vpack.c.bf16 %v3227_v31, %v3223_v5  ;;  %v5842_v52 = vpack.c.bf16 %v3229_v36, %v3225_v7  ;;  %v5588_v15 = vpack.c.bf16 %v3236_v50, %v3232_v34  ;;  %v3260_v7 = vld [vmem:[#allocation11 + $0xca8] sm:$0xff]  ;;  %v3262_v36 = vld [vmem:[#allocation11 + $0xcb8] sm:$0xff] }
 0x3e7   :  { %5571 = vmatpush1.bf16.msra.mxu0 %v5570_v14  ;;  %v5844_v14 = vpack.c.bf16 %v3238_v32, %v3234_v25  ;;  %v3255_v32 = vld [vmem:[#allocation11 + $0xc80] sm:$0xff] }
 0x3e8   :  { %5827 = vmatpush1.bf16.msra.mxu1 %v5826_v49  ;;  %5573 = vmatprep.subr.bf16.mxu0 %v5572_v45  ;;  %v3237_v49 = vld [vmem:[#allocation11 + $0xbf0] sm:$0xff]  ;;  %v3240_v45 = vld [vmem:[#allocation11 + $0xc08] sm:$0xff] }
 0x3e9   :  { %5829 = vmatprep.subr.bf16.mxu1 %v5828_v30  ;;  %v5590_v30 = vpack.c.bf16 %v3235_v62, %v3231_v41  ;;  %v5846_v9 = vpack.c.bf16 %v3237_v49, %v3233_v51  ;;  %v5592_v13 = vpack.c.bf16 %v3244_v46, %v3240_v45  ;;  %v3261_v41 = vld [vmem:[#allocation11 + $0xcb0] sm:$0xff]  ;;  %v3264_v62 = vld [vmem:[#allocation11 + $0xcc8] sm:$0xff]  ;;  %v5600_v51 = vpack.c.bf16 %v3260_v7, %v3256_v8  ;;  %v3266_v45 = vld [vmem:[#allocation11 + $0xcd8] sm:$0xff] }
 0x3ea   :  { %v3268_v49 = vld [vmem:[#allocation11 + $0xce8] sm:$0xff]  ;;  %v3270_v46 = vld [vmem:[#allocation11 + $0xcf8] sm:$0xff] }
 0x3eb   :  { %5575 = vmatpush1.bf16.msra.mxu0 %v5574_v43  ;;  %v3290_v8 = vld [vmem:[#allocation11 + $0xd98] sm:$0xff] }
 0x3ec   :  { %5831 = vmatpush1.bf16.msra.mxu1 %v5830_v60  ;;  %5577 = vmatprep.subr.bf16.mxu0 %v5576_v12  ;;  %v3239_v60 = vld [vmem:[#allocation11 + $0xc00] sm:$0xff] }
 0x3ed   :  { %5833 = vmatprep.subr.bf16.mxu1 %v5832_v37  ;;  %v3243_v12 = vld [vmem:[#allocation11 + $0xc20] sm:$0xff]  ;;  %v3241_v37 = vld [vmem:[#allocation11 + $0xc10] sm:$0xff] }
 0x3ee   :  { %v5594_v17 = vpack.c.bf16 %v3243_v12, %v3239_v60  ;;  %v5850_v19 = vpack.c.bf16 %v3245_v2, %v3241_v37  ;;  %v3272_v60 = vld [vmem:[#allocation11 + $0xd08] sm:$0xff] }
 0x3ef   :  { %5579 = vmatpush1.bf16.msra.mxu0 %v5578_v38  ;;  %v3250_v38 = vld [vmem:[#allocation11 + $0xc58] sm:$0xff]  ;;  %v3276_v12 = vld [vmem:[#allocation11 + $0xd28] sm:$0xff] }
 0x3f0   :  { %5835 = vmatpush1.bf16.msra.mxu1 %v5834_v10  ;;  %5581 = vmatprep.subr.bf16.mxu0 %v5580_v11  ;;  %v3254_v10 = vld [vmem:[#allocation11 + $0xc78] sm:$0xff] }
 0x3f1   :  { %5837 = vmatprep.subr.bf16.mxu1 %v5836_v22  ;;  %v5852_v53 = vpack.c.bf16 %v3254_v10, %v3250_v38  ;;  %v3273_v38 = vld [vmem:[#allocation11 + $0xd10] sm:$0xff] }
 0x3f2   :  { %v3277_v10 = vld [vmem:[#allocation11 + $0xd30] sm:$0xff] }
 0x3f3   :  { %5583 = vmatpush1.bf16.msra.mxu0 %v5582_v27  ;;  %v3251_v27 = vld [vmem:[#allocation11 + $0xc60] sm:$0xff] }
 0x3f4   :  { %5839 = vmatpush1.bf16.msra.mxu1 %v5838_v28  ;;  %5585 = vmatprep.subr.bf16.mxu0 %v5584_v0  ;;  %v3249_v28 = vld [vmem:[#allocation11 + $0xc50] sm:$0xff]  ;;  %v5598_v50 = vpack.c.bf16 %v3251_v27, %v3247_v20 }
 0x3f5   :  { %5841 = vmatprep.subr.bf16.mxu1 %v5840_v26  ;;  %v3253_v0 = vld [vmem:[#allocation11 + $0xc70] sm:$0xff]  ;;  %v3258_v26 = vld [vmem:[#allocation11 + $0xc98] sm:$0xff] }
 0x3f6   :  { %v5854_v25 = vpack.c.bf16 %v3253_v0, %v3249_v28  ;;  %v3281_v27 = vld [vmem:[#allocation11 + $0xd50] sm:$0xff]  ;;  %v3288_v0 = vld [vmem:[#allocation11 + $0xd88] sm:$0xff] }
 0x3f7   :  { %5587 = vmatpush1.bf16.msra.mxu0 %v5586_v35  ;;  %v3259_v35 = vld [vmem:[#allocation11 + $0xca0] sm:$0xff]  ;;  %v3285_v28 = vld [vmem:[#allocation11 + $0xd70] sm:$0xff] }
 0x3f8   :  { %5843 = vmatpush1.bf16.msra.mxu1 %v5842_v52  ;;  %5589 = vmatprep.subr.bf16.mxu0 %v5588_v15  ;;  %v3257_v15 = vld [vmem:[#allocation11 + $0xc90] sm:$0xff]  ;;  %v5602_v42 = vpack.c.bf16 %v3259_v35, %v3255_v32 }
 0x3f9   :  { %5845 = vmatprep.subr.bf16.mxu1 %v5844_v14  ;;  %v5856_v14 = vpack.c.bf16 %v3262_v36, %v3258_v26  ;;  %v5870_v26 = vpack.c.bf16 %v3285_v28, %v3281_v27  ;;  %v3287_v36 = vld [vmem:[#allocation11 + $0xd80] sm:$0xff]  ;;  %v3289_v32 = vld [vmem:[#allocation11 + $0xd90] sm:$0xff] }
 0x3fa   :  { %v3293_v35 = vld [vmem:[#allocation11 + $0xdb0] sm:$0xff] }
 0x3fb   :  { %5591 = vmatpush1.bf16.msra.mxu0 %v5590_v30  ;;  %v5858_v30 = vpack.c.bf16 %v3261_v41, %v3257_v15  ;;  %v3300_v15 = vld [vmem:[#allocation11 + $0xde8] sm:$0xff]  ;;  %v3298_v41 = vld [vmem:[#allocation11 + $0xdd8] sm:$0xff] }
 0x3fc   :  { %5847 = vmatpush1.bf16.msra.mxu1 %v5846_v9  ;;  %5593 = vmatprep.subr.bf16.mxu0 %v5592_v13  ;;  %v3263_v9 = vld [vmem:[#allocation11 + $0xcc0] sm:$0xff] }
 0x3fd   :  { %5849 = vmatprep.subr.bf16.mxu1 %v5848_v21  ;;  %v3267_v13 = vld [vmem:[#allocation11 + $0xce0] sm:$0xff]  ;;  %v5604_v21 = vpack.c.bf16 %v3268_v49, %v3264_v62  ;;  %v3302_v62 = vld [vmem:[#allocation11 + $0xdf8] sm:$0xff] }
 0x3fe   :  { %v5606_v37 = vpack.c.bf16 %v3267_v13, %v3263_v9  ;;  %v3295_v49 = vld [vmem:[#allocation11 + $0xdc0] sm:$0xff]  ;;  %v3304_v9 = vld [vmem:[#allocation11 + $0xe08] sm:$0xff] }
 0x3ff   :  { %v3308_v13 = vld [vmem:[#allocation11 + $0xe28] sm:$0xff] }
 0x40e   :  { %v2520_v43 = vpop.f32.mrb[12].mxu0 }
 0x40f   :  { %v5984_v55 = vadd.f32 %v2520_v43, %v1586_v16  ;;  %v6727_v56 = vpop.f32.mrb[12].mxu1  ;;  %v2522_v63 = vpop.f32.mrb[13].mxu0  ;;  %v3269_v43 = vld [vmem:[#allocation11 + $0xcf0] sm:$0xff] }
 0x410   :  { %v5985_v3 = vadd.f32 %v2522_v63, %v1590_v39  ;;  %v2830_v4 = vpop.f32.mrb[13].mxu1  ;;  %v3278_v63 = vld [vmem:[#allocation11 + $0xd38] sm:$0xff] }
 0x411   :  { %v2843_v22 = vmax.f32 %v5984_v55, 0.0  ;;  %v5989_v48 = vadd.f32 %v2830_v4, %v6732_v29  ;;  %v3274_v55 = vld [vmem:[#allocation11 + $0xd18] sm:$0xff]  ;;  %v5608_v4 = vpack.c.bf16 %v3276_v12, %v3272_v60  ;;  %v3303_v60 = vld [vmem:[#allocation11 + $0xe00] sm:$0xff] }
 0x412   :  { %v2844_v18 = vmax.f32 %v5985_v3, 0.0  ;;  %v2526_v11 = vpop.f32.mrb[14].mxu0  ;;  %v3275_v3 = vld [vmem:[#allocation11 + $0xd20] sm:$0xff]  ;;  %v5864_v6 = vpack.c.bf16 %v3278_v63, %v3274_v55  ;;  %v5624_v55 = vpack.c.bf16 %v3308_v13, %v3304_v9 }
 0x413   :  { %v5986_v33 = vadd.f32 %v2526_v11, %v1586_v16  ;;  %v6734_v40 = vpop.f32.mrb[14].mxu1  ;;  %v2528_v24 = vpop.f32.mrb[15].mxu0  ;;  %v2846_v54 = vmax.f32 %v5989_v48, 0.0  ;;  %v5860_v16 = vpack.c.bf16 %v3270_v46, %v3266_v45  ;;  %v3284_v11 = vld [vmem:[#allocation11 + $0xd68] sm:$0xff]  ;;  %v5610_v20 = vpack.c.bf16 %v3275_v3, %v3271_v23  ;;  %v3294_v48 = vld [vmem:[#allocation11 + $0xdb8] sm:$0xff]  ;;  %v3299_v45 = vld [vmem:[#allocation11 + $0xde0] sm:$0xff] }
 0x414   :  { %v5987_v5 = vadd.f32 %v2528_v24, %v1590_v39  ;;  %v6736_v31 = vpop.f32.mrb[15].mxu1  ;;  %3607 = vmatprep.mubr.f32.mxu0 %v2844_v18  ;;  %3915 = vmatprep.mubr.f32.mxu1 %v2844_v18  ;;  %v3265_v39 = vld [vmem:[#allocation11 + $0xcd0] sm:$0xff]  ;;  %v3280_v18 = vld [vmem:[#allocation11 + $0xd48] sm:$0xff]  ;;  %v3283_v24 = vld [vmem:[#allocation11 + $0xd60] sm:$0xff] }
 0x415   :  { %3608 = vmatmul.mubr.f32.vlgmr.msra.gmra.mrb[16].mxu0 %v2843_v22  ;;  %3916 = vmatmul.mubr.f32.vlgmr.msra.gmra.mrb[16].mxu1 %v2843_v22  ;;  %v2851_v52 = vmax.f32 %v5986_v33, 0.0  ;;  %v5862_v2 = vpack.c.bf16 %v3269_v43, %v3265_v39  ;;  %v5866_v22 = vpack.c.bf16 %v3277_v10, %v3273_v38  ;;  %v3279_v33 = vld [vmem:[#allocation11 + $0xd40] sm:$0xff]  ;;  %v5622_v39 = vpack.c.bf16 %v3299_v45, %v3295_v49  ;;  %v3312_v23 = vld [vmem:[#allocation11 + $0xe48] sm:$0xff] }
 0x416   :  { %v2852_v34 = vmax.f32 %v5987_v5, 0.0  ;;  %5595 = vmatpush1.bf16.msra.mxu0 %v5594_v17  ;;  %5851 = vmatpush1.bf16.msra.mxu1 %v5850_v19  ;;  %v3282_v17 = vld [vmem:[#allocation11 + $0xd58] sm:$0xff]  ;;  %v3292_v5 = vld [vmem:[#allocation11 + $0xda8] sm:$0xff]  ;;  %v5614_v7 = vpack.c.bf16 %v3283_v24, %v3279_v33  ;;  %v3307_v12 = vld [vmem:[#allocation11 + $0xe20] sm:$0xff] }
 0x417   :  { %5597 = vmatprep.subr.bf16.mxu0 %v5596_v57  ;;  %5853 = vmatprep.subr.bf16.mxu1 %v5852_v53  ;;  %v3286_v19 = vld [vmem:[#allocation11 + $0xd78] sm:$0xff]  ;;  %v5612_v57 = vpack.c.bf16 %v3284_v11, %v3280_v18  ;;  %v3316_v3 = vld [vmem:[#allocation11 + $0xe68] sm:$0xff]  ;;  %v5626_v38 = vpack.c.bf16 %v3307_v12, %v3303_v60  ;;  %v3311_v18 = vld [vmem:[#allocation11 + $0xe40] sm:$0xff] }
 0x418   :  { %3613 = vmatprep.mubr.f32.mxu0 %v2852_v34  ;;  %3921 = vmatprep.mubr.f32.mxu1 %v2852_v34  ;;  %v5868_v53 = vpack.c.bf16 %v3286_v19, %v3282_v17  ;;  %v3291_v34 = vld [vmem:[#allocation11 + $0xda0] sm:$0xff]  ;;  %v5628_v17 = vpack.c.bf16 %v3316_v3, %v3312_v23  ;;  %v3320_v33 = vld [vmem:[#allocation11 + $0xe88] sm:$0xff] }
 0x419   :  { %3614 = vmatmul.mubr.f32.gmra.mrb[18].mxu0 %v2851_v52  ;;  %3922 = vmatmul.mubr.f32.gmra.mrb[18].mxu1 %v2851_v52  ;;  %v3296_v52 = vld [vmem:[#allocation11 + $0xdc8] sm:$0xff]  ;;  %v3315_v11 = vld [vmem:[#allocation11 + $0xe60] sm:$0xff] }
 0x41a   :  { %5599 = vmatpush1.bf16.msra.mxu0 %v5598_v50  ;;  %5855 = vmatpush1.bf16.msra.mxu1 %v5854_v25  ;;  %v5616_v50 = vpack.c.bf16 %v3292_v5, %v3288_v0  ;;  %v5872_v25 = vpack.c.bf16 %v3294_v48, %v3290_v8  ;;  %v5620_v46 = vpack.c.bf16 %v3300_v15, %v3296_v52  ;;  %v3324_v24 = vld [vmem:[#allocation11 + $0xea8] sm:$0xff]  ;;  %v3319_v0 = vld [vmem:[#allocation11 + $0xe80] sm:$0xff] }
 0x41b   :  { %3684 = vmatprep.mubr.f32.mxu0 %v2846_v54  ;;  %3992 = vmatprep.mubr.f32.mxu1 %v2846_v54  ;;  %v5876_v54 = vpack.c.bf16 %v3302_v62, %v3298_v41  ;;  %v5630_v27 = vpack.c.bf16 %v3315_v11, %v3311_v18  ;;  %v3323_v5 = vld [vmem:[#allocation11 + $0xea0] sm:$0xff]  ;;  %v5632_v8 = vpack.c.bf16 %v3324_v24, %v3320_v33  ;;  %v3336_v49 = vld [vmem:[#allocation11 + $0xf08] sm:$0xff] }
 0x41c   :  { %5601 = vmatprep.subr.bf16.mxu0 %v5600_v51  ;;  %5857 = vmatprep.subr.bf16.mxu1 %v5856_v14  ;;  %v5618_v51 = vpack.c.bf16 %v3291_v34, %v3287_v36  ;;  %v5874_v14 = vpack.c.bf16 %v3293_v35, %v3289_v32  ;;  %v3328_v36 = vld [vmem:[#allocation11 + $0xec8] sm:$0xff]  ;;  %v5634_v32 = vpack.c.bf16 %v3323_v5, %v3319_v0  ;;  %v3327_v52 = vld [vmem:[#allocation11 + $0xec0] sm:$0xff] }
 0x41d   :  { %v3332_v34 = vld [vmem:[#allocation11 + $0xee8] sm:$0xff]  ;;  %v3331_v15 = vld [vmem:[#allocation11 + $0xee0] sm:$0xff] }
 0x41e   :  { %5603 = vmatpush1.bf16.msra.mxu0 %v5602_v42  ;;  %5859 = vmatpush1.bf16.msra.mxu1 %v5858_v30  ;;  %v3297_v42 = vld [vmem:[#allocation11 + $0xdd0] sm:$0xff]  ;;  %v5636_v41 = vpack.c.bf16 %v3332_v34, %v3328_v36  ;;  %v3340_v45 = vld [vmem:[#allocation11 + $0xf28] sm:$0xff]  ;;  %v3335_v9 = vld [vmem:[#allocation11 + $0xf00] sm:$0xff] }
 0x41f   :  { %5605 = vmatprep.subr.bf16.mxu0 %v5604_v21  ;;  %5861 = vmatprep.subr.bf16.mxu1 %v5860_v16  ;;  %v3301_v30 = vld [vmem:[#allocation11 + $0xdf0] sm:$0xff]  ;;  %v3306_v21 = vld [vmem:[#allocation11 + $0xe18] sm:$0xff]  ;;  %v3339_v13 = vld [vmem:[#allocation11 + $0xf20] sm:$0xff] }
 0x420   :  { %v3310_v16 = vld [vmem:[#allocation11 + $0xe38] sm:$0xff]  ;;  %v5878_v43 = vpack.c.bf16 %v3301_v30, %v3297_v42  ;;  %v5638_v42 = vpack.c.bf16 %v3331_v15, %v3327_v52  ;;  %v3344_v60 = vld [vmem:[#allocation11 + $0xf48] sm:$0xff]  ;;  %v3343_v23 = vld [vmem:[#allocation11 + $0xf40] sm:$0xff] }
 0x421   :  { %v5880_v63 = vpack.c.bf16 %v3310_v16, %v3306_v21  ;;  %v5640_v21 = vpack.c.bf16 %v3340_v45, %v3336_v49  ;;  %v3348_v12 = vld [vmem:[#allocation11 + $0xf68] sm:$0xff]  ;;  %v3347_v3 = vld [vmem:[#allocation11 + $0xf60] sm:$0xff]  ;;  %v3361_v52 = vld [vmem:[#allocation11 + $0xfd0] sm:$0xff] }
 0x422   :  { %5607 = vmatpush1.bf16.msra.mxu0 %v5606_v37  ;;  %5863 = vmatpush1.bf16.msra.mxu1 %v5862_v2  ;;  %v3305_v37 = vld [vmem:[#allocation11 + $0xe10] sm:$0xff]  ;;  %v3352_v18 = vld [vmem:[#allocation11 + $0xf88] sm:$0xff]  ;;  %v3351_v33 = vld [vmem:[#allocation11 + $0xf80] sm:$0xff] }
 0x423   :  { %5609 = vmatprep.subr.bf16.mxu0 %v5608_v4  ;;  %5865 = vmatprep.subr.bf16.mxu1 %v5864_v6  ;;  %v3309_v2 = vld [vmem:[#allocation11 + $0xe30] sm:$0xff]  ;;  %v3314_v4 = vld [vmem:[#allocation11 + $0xe58] sm:$0xff]  ;;  %v3356_v11 = vld [vmem:[#allocation11 + $0xfa8] sm:$0xff] }
 0x424   :  { %v3318_v6 = vld [vmem:[#allocation11 + $0xe78] sm:$0xff]  ;;  %v5882_v10 = vpack.c.bf16 %v3309_v2, %v3305_v37  ;;  %v5642_v37 = vpack.c.bf16 %v3339_v13, %v3335_v9  ;;  %v3355_v24 = vld [vmem:[#allocation11 + $0xfa0] sm:$0xff]  ;;  %v3360_v0 = vld [vmem:[#allocation11 + $0xfc8] sm:$0xff] }
 0x425   :  { %v5884_v19 = vpack.c.bf16 %v3318_v6, %v3314_v4  ;;  %v5644_v4 = vpack.c.bf16 %v3348_v12, %v3344_v60  ;;  %v3364_v5 = vld [vmem:[#allocation11 + $0xfe8] sm:$0xff]  ;;  %v3359_v36 = vld [vmem:[#allocation11 + $0xfc0] sm:$0xff]  ;;  %v3365_v15 = vld [vmem:[#allocation11 + $0xff0] sm:$0xff] }
 0x426   :  { %5611 = vmatpush1.bf16.msra.mxu0 %v5610_v20  ;;  %5867 = vmatpush1.bf16.msra.mxu1 %v5866_v22  ;;  %v3313_v20 = vld [vmem:[#allocation11 + $0xe50] sm:$0xff]  ;;  %v3363_v34 = vld [vmem:[#allocation11 + $0xfe0] sm:$0xff] }
 0x427   :  { %5613 = vmatprep.subr.bf16.mxu0 %v5612_v57  ;;  %5869 = vmatprep.subr.bf16.mxu1 %v5868_v53  ;;  %v3317_v22 = vld [vmem:[#allocation11 + $0xe70] sm:$0xff]  ;;  %v3322_v57 = vld [vmem:[#allocation11 + $0xe98] sm:$0xff]  ;;  %v4045_v9 = vld [vmem:[%s6965_s7 + $0x100] sm:$0xff] }
 0x428   :  { %v3326_v53 = vld [vmem:[#allocation11 + $0xeb8] sm:$0xff]  ;;  %v5886_v28 = vpack.c.bf16 %v3317_v22, %v3313_v20  ;;  %v5646_v20 = vpack.c.bf16 %v3347_v3, %v3343_v23  ;;  %v4031_v13 = vld [vmem:[%s6965_s7 + $0x90] sm:$0xff]  ;;  %v4033_v3 = vld [vmem:[%s6965_s7 + $0xa0] sm:$0xff] }
 0x429   :  { %v5888_v48 = vpack.c.bf16 %v3326_v53, %v3322_v57  ;;  %v5648_v57 = vpack.c.bf16 %v3356_v11, %v3352_v18  ;;  %v4015_v12 = vld [vmem:[%s6965_s7 + $0x10] sm:$0xff] }
 0x42a   :  { %5615 = vmatpush1.bf16.msra.mxu0 %v5614_v7  ;;  %5871 = vmatpush1.bf16.msra.mxu1 %v5870_v26  ;;  %v3321_v7 = vld [vmem:[#allocation11 + $0xe90] sm:$0xff] }
 0x42b   :  { %5617 = vmatprep.subr.bf16.mxu0 %v5616_v50  ;;  %5873 = vmatprep.subr.bf16.mxu1 %v5872_v25  ;;  %v3325_v26 = vld [vmem:[#allocation11 + $0xeb0] sm:$0xff]  ;;  %v3330_v50 = vld [vmem:[#allocation11 + $0xed8] sm:$0xff] }
 0x42c   :  { %v3334_v25 = vld [vmem:[#allocation11 + $0xef8] sm:$0xff]  ;;  %v5890_v35 = vpack.c.bf16 %v3325_v26, %v3321_v7  ;;  %v5650_v7 = vpack.c.bf16 %v3355_v24, %v3351_v33  ;;  %v4047_v23 = vld [vmem:[%s6965_s7 + $0x110] sm:$0xff]  ;;  %v4049_v33 = vld [vmem:[%s6965_s7 + $0x120] sm:$0xff] }
 0x42d   :  { %v5892_v62 = vpack.c.bf16 %v3334_v25, %v3330_v50  ;;  %v6090_v50 = vld [vmem:[#allocation10] sm:$0xff]  ;;  %v4050_v24 = vld [vmem:[%s6965_s7 + $0x128] sm:$0xff] }
 0x42e   :  { %5619 = vmatpush1.bf16.msra.mxu0 %v5618_v51  ;;  %5875 = vmatpush1.bf16.msra.mxu1 %v5874_v14  ;;  %v3329_v51 = vld [vmem:[#allocation11 + $0xed0] sm:$0xff]  ;;  %v1594_v25 = vrot.slane %v6090_v50, %v196_v47  ;;  %v5654_v47 = vpack.c.bf16 %v3363_v34, %v3359_v36  ;;  %v4052_v34 = vld [vmem:[%s6965_s7 + $0x138] sm:$0xff]  ;;  %v4037_v50 = vld [vmem:[%s6965_s7 + $0xc0] sm:$0xff] }
 0x42f   :  { %5621 = vmatprep.subr.bf16.mxu0 %v5620_v46  ;;  %5877 = vmatprep.subr.bf16.mxu1 %v5876_v54  ;;  %v3333_v14 = vld [vmem:[#allocation11 + $0xef0] sm:$0xff]  ;;  %v3338_v46 = vld [vmem:[#allocation11 + $0xf18] sm:$0xff] }
 0x430   :  { %v3342_v54 = vld [vmem:[#allocation11 + $0xf38] sm:$0xff]  ;;  %v5894_v30 = vpack.c.bf16 %v3333_v14, %v3329_v51  ;;  %v4061_v51 = vld [vmem:[%s6965_s7 + $0x180] sm:$0xff]  ;;  %v5910_v14 = vpack.c.bf16 %v3365_v15, %v3361_v52  ;;  %v5988_v49 = vadd.f32 %v6727_v56, %v1594_v25  ;;  %v4046_v56 = vld [vmem:[%s6965_s7 + $0x108] sm:$0xff] }
 0x431   :  { %v5896_v16 = vpack.c.bf16 %v3342_v54, %v3338_v46  ;;  %v5944_v46 = vpack.c.bf16 %v4062_v58, %v4061_v51  ;;  %v4013_v54 = vld [vmem:[%s6965_s7] sm:$0xff]  ;;  %v5946_v60 = vpack.c.bf16 %v4046_v56, %v4045_v9  ;;  %v4051_v36 = vld [vmem:[%s6965_s7 + $0x130] sm:$0xff]  ;;  %v4024_v56 = vld [vmem:[%s6965_s7 + $0x58] sm:$0xff] }
 0x432   :  { %5623 = vmatpush1.bf16.msra.mxu0 %v5622_v39  ;;  %5879 = vmatpush1.bf16.msra.mxu1 %v5878_v43  ;;  %v3337_v39 = vld [vmem:[#allocation11 + $0xf10] sm:$0xff]  ;;  %v5958_v15 = vpack.c.bf16 %v4052_v34, %v4051_v36 }
 0x433   :  { %5625 = vmatprep.subr.bf16.mxu0 %v5624_v55  ;;  %5881 = vmatprep.subr.bf16.mxu1 %v5880_v63  ;;  %v3341_v43 = vld [vmem:[#allocation11 + $0xf30] sm:$0xff]  ;;  %v3346_v55 = vld [vmem:[#allocation11 + $0xf58] sm:$0xff] }
 0x434   :  { %v3350_v63 = vld [vmem:[#allocation11 + $0xf78] sm:$0xff]  ;;  %v5898_v2 = vpack.c.bf16 %v3341_v43, %v3337_v39  ;;  %v5990_v39 = vadd.f32 %v6734_v40, %v1594_v25  ;;  %v4038_v25 = vld [vmem:[%s6965_s7 + $0xc8] sm:$0xff]  ;;  %v4023_v9 = vld [vmem:[%s6965_s7 + $0x50] sm:$0xff] }
 0x435   :  { %v5900_v6 = vpack.c.bf16 %v3350_v63, %v3346_v55  ;;  %v4016_v55 = vld [vmem:[%s6965_s7 + $0x18] sm:$0xff]  ;;  %v5928_v51 = vpack.c.bf16 %v4038_v25, %v4037_v50 }
 0x436   :  { %5627 = vmatpush1.bf16.msra.mxu0 %v5626_v38  ;;  %5883 = vmatpush1.bf16.msra.mxu1 %v5882_v10  ;;  %v3345_v38 = vld [vmem:[#allocation11 + $0xf50] sm:$0xff]  ;;  %v4048_v40 = vld [vmem:[%s6965_s7 + $0x118] sm:$0xff]  ;;  %v5918_v18 = vpack.c.bf16 %v4016_v55, %v4015_v12  ;;  %v5934_v12 = vpack.c.bf16 %v4024_v56, %v4023_v9 }
 0x437   :  { %5629 = vmatprep.subr.bf16.mxu0 %v5628_v17  ;;  %5885 = vmatprep.subr.bf16.mxu1 %v5884_v19  ;;  %v3349_v10 = vld [vmem:[#allocation11 + $0xf70] sm:$0xff]  ;;  %v3354_v17 = vld [vmem:[#allocation11 + $0xf98] sm:$0xff]  ;;  %v5950_v11 = vpack.c.bf16 %v4048_v40, %v4047_v23  ;;  %v4026_v23 = vld [vmem:[%s6965_s7 + $0x68] sm:$0xff] }
 0x438   :  { %v3358_v19 = vld [vmem:[#allocation11 + $0xfb8] sm:$0xff]  ;;  %v5902_v22 = vpack.c.bf16 %v3349_v10, %v3345_v38  ;;  %v4066_v38 = vld [vmem:[%s6965_s7 + $0x1a8] sm:$0xff]  ;;  %v2853_v10 = vmax.f32 %v5990_v39, 0.0  ;;  %v4057_v40 = vld [vmem:[%s6965_s7 + $0x160] sm:$0xff] }
 0x439   :  { %v5904_v53 = vpack.c.bf16 %v3358_v19, %v3354_v17  ;;  %v4017_v17 = vld [vmem:[%s6965_s7 + $0x20] sm:$0xff]  ;;  %v4018_v19 = vld [vmem:[%s6965_s7 + $0x28] sm:$0xff] }
 0x43a   :  { %5631 = vmatpush1.bf16.msra.mxu0 %v5630_v27  ;;  %5887 = vmatpush1.bf16.msra.mxu1 %v5886_v28  ;;  %v3353_v27 = vld [vmem:[#allocation11 + $0xf90] sm:$0xff]  ;;  %v4042_v39 = vld [vmem:[%s6965_s7 + $0xe8] sm:$0xff] }
 0x43b   :  { %5633 = vmatprep.subr.bf16.mxu0 %v5632_v8  ;;  %5889 = vmatprep.subr.bf16.mxu1 %v5888_v48  ;;  %v3357_v28 = vld [vmem:[#allocation11 + $0xfb0] sm:$0xff]  ;;  %v3362_v8 = vld [vmem:[#allocation11 + $0xfd8] sm:$0xff] }
 0x43c   :  { %v3366_v48 = vld [vmem:[#allocation11 + $0xff8] sm:$0xff]  ;;  %v5906_v26 = vpack.c.bf16 %v3357_v28, %v3353_v27  ;;  %v4067_v27 = vld [vmem:[%s6965_s7 + $0x1b0] sm:$0xff] }
 0x43d   :  { %v4068_v28 = vld [vmem:[%s6965_s7 + $0x1b8] sm:$0xff] }
 0x43e   :  { %5635 = vmatpush1.bf16.msra.mxu0 %v5634_v32  ;;  %5891 = vmatpush1.bf16.msra.mxu1 %v5890_v35  ;;  %v5652_v32 = vpack.c.bf16 %v3364_v5, %v3360_v0  ;;  %v5908_v35 = vpack.c.bf16 %v3366_v48, %v3362_v8  ;;  %v5922_v0 = vpack.c.bf16 %v4018_v19, %v4017_v17  ;;  %v4019_v8 = vld [vmem:[%s6965_s7 + $0x30] sm:$0xff]  ;;  %v4020_v48 = vld [vmem:[%s6965_s7 + $0x38] sm:$0xff] }
 0x43f   :  { %5637 = vmatprep.subr.bf16.mxu0 %v5636_v41  ;;  %5893 = vmatprep.subr.bf16.mxu1 %v5892_v62  ;;  %v4029_v41 = vld [vmem:[%s6965_s7 + $0x80] sm:$0xff]  ;;  %v4030_v62 = vld [vmem:[%s6965_s7 + $0x88] sm:$0xff]  ;;  %v5954_v5 = vpack.c.bf16 %v4050_v24, %v4049_v33  ;;  %v5926_v52 = vpack.c.bf16 %v4020_v48, %v4019_v8  ;;  %v4076_v17 = vld [vmem:[%s6965_s7 + $0x1f8] sm:$0xff] }
 0x440   :  { %v5912_v45 = vpack.c.bf16 %v4030_v62, %v4029_v41  ;;  %v4021_v41 = vld [vmem:[%s6965_s7 + $0x40] sm:$0xff]  ;;  %v4022_v62 = vld [vmem:[%s6965_s7 + $0x48] sm:$0xff]  ;;  %v4027_v19 = vld [vmem:[%s6965_s7 + $0x70] sm:$0xff] }
 0x441   :  { %v4059_v24 = vld [vmem:[%s6965_s7 + $0x170] sm:$0xff] }
 0x442   :  { %5639 = vmatpush1.bf16.msra.mxu0 %v5638_v42  ;;  %5895 = vmatpush1.bf16.msra.mxu1 %v5894_v30  ;;  %v4014_v42 = vld [vmem:[%s6965_s7 + $0x8] sm:$0xff]  ;;  %v5991_v30 = vadd.f32 %v6736_v31, %v6732_v29  ;;  %v4063_v29 = vld [vmem:[%s6965_s7 + $0x190] sm:$0xff]  ;;  %v4064_v31 = vld [vmem:[%s6965_s7 + $0x198] sm:$0xff] }
 0x443   :  { %5641 = vmatprep.subr.bf16.mxu0 %v5640_v21  ;;  %5897 = vmatprep.subr.bf16.mxu1 %v5896_v16  ;;  %v4032_v21 = vld [vmem:[%s6965_s7 + $0x98] sm:$0xff]  ;;  %v2845_v16 = vmax.f32 %v5988_v49, 0.0  ;;  %v5914_v43 = vpack.c.bf16 %v4014_v42, %v4013_v54  ;;  %v4039_v49 = vld [vmem:[%s6965_s7 + $0xd0] sm:$0xff]  ;;  %v5930_v42 = vpack.c.bf16 %v4022_v62, %v4021_v41 }
 0x444   :  { %v2854_v63 = vmax.f32 %v5991_v30, 0.0  ;;  %v4072_v54 = vld [vmem:[%s6965_s7 + $0x1d8] sm:$0xff] }
 0x446   :  { %5643 = vmatpush1.bf16.msra.mxu0 %v5642_v37  ;;  %5899 = vmatpush1.bf16.msra.mxu1 %v5898_v2  ;;  %v5916_v37 = vpack.c.bf16 %v4032_v21, %v4031_v13  ;;  %v5948_v2 = vpack.c.bf16 %v4064_v31, %v4063_v29  ;;  %v4055_v29 = vld [vmem:[%s6965_s7 + $0x150] sm:$0xff]  ;;  %v4056_v31 = vld [vmem:[%s6965_s7 + $0x158] sm:$0xff] }
 0x447   :  { %5645 = vmatprep.subr.bf16.mxu0 %v5644_v4  ;;  %5901 = vmatprep.subr.bf16.mxu1 %v5900_v6  ;;  %v4034_v4 = vld [vmem:[%s6965_s7 + $0xa8] sm:$0xff]  ;;  %v4065_v6 = vld [vmem:[%s6965_s7 + $0x1a0] sm:$0xff]  ;;  %v5966_v55 = vpack.c.bf16 %v4056_v31, %v4055_v29 }
 0x44a   :  { %5647 = vmatpush1.bf16.msra.mxu0 %v5646_v20  ;;  %5903 = vmatpush1.bf16.msra.mxu1 %v5902_v22  ;;  %v5920_v20 = vpack.c.bf16 %v4034_v4, %v4033_v3  ;;  %v5952_v22 = vpack.c.bf16 %v4066_v38, %v4065_v6  ;;  %v4058_v4 = vld [vmem:[%s6965_s7 + $0x168] sm:$0xff]  ;;  %v4043_v38 = vld [vmem:[%s6965_s7 + $0xf0] sm:$0xff] }
 0x44b   :  { %5649 = vmatprep.subr.bf16.mxu0 %v5648_v57  ;;  %5905 = vmatprep.subr.bf16.mxu1 %v5904_v53  ;;  %v4035_v57 = vld [vmem:[%s6965_s7 + $0xb0] sm:$0xff]  ;;  %v4036_v53 = vld [vmem:[%s6965_s7 + $0xb8] sm:$0xff]  ;;  %v5970_v6 = vpack.c.bf16 %v4058_v4, %v4057_v40 }
 0x44e   :  { %5651 = vmatpush1.bf16.msra.mxu0 %v5650_v7  ;;  %5907 = vmatpush1.bf16.msra.mxu1 %v5906_v26  ;;  %v5924_v7 = vpack.c.bf16 %v4036_v53, %v4035_v57  ;;  %v5956_v26 = vpack.c.bf16 %v4068_v28, %v4067_v27  ;;  %v4060_v57 = vld [vmem:[%s6965_s7 + $0x178] sm:$0xff]  ;;  %v3367_v27 = vld [vmem:[#allocation13] sm:$0xf] }
 0x44f   :  { %5653 = vmatprep.subr.bf16.mxu0 %v5652_v32  ;;  %5909 = vmatprep.subr.bf16.mxu1 %v5908_v35  ;;  %v4069_v32 = vld [vmem:[%s6965_s7 + $0x1c0] sm:$0xff]  ;;  %v4070_v35 = vld [vmem:[%s6965_s7 + $0x1c8] sm:$0xff]  ;;  %v5974_v53 = vpack.c.bf16 %v4060_v57, %v4059_v24  ;;  %v3372_v28 = vrot.slane %v3367_v27, %v6497_v59  ;;  %v3384_v8 = vrot.slane %v3367_v27, %v6509_v1 }
 0x450   :  { %v5960_v58 = vpack.c.bf16 %v4070_v35, %v4069_v32 }
 0x452   :  { %5655 = vmatpush1.bf16.msra.mxu0 %v5654_v47  ;;  %5911 = vmatpush1.bf16.msra.mxu1 %v5910_v14  ;;  %v4053_v47 = vld [vmem:[%s6965_s7 + $0x140] sm:$0xff]  ;;  %v4054_v14 = vld [vmem:[%s6965_s7 + $0x148] sm:$0xff] }
 0x453   :  { %5913 = vmatprep.subr.bf16.mxu0 %v5912_v45  ;;  %5945 = vmatprep.subr.bf16.mxu1 %v5944_v46  ;;  %v4040_v45 = vld [vmem:[%s6965_s7 + $0xd8] sm:$0xff]  ;;  %v4071_v46 = vld [vmem:[%s6965_s7 + $0x1d0] sm:$0xff]  ;;  %v5962_v30 = vpack.c.bf16 %v4054_v14, %v4053_v47 }
 0x454   :  { %v5932_v13 = vpack.c.bf16 %v4040_v45, %v4039_v49  ;;  %v5964_v21 = vpack.c.bf16 %v4072_v54, %v4071_v46 }
 0x455   :  { %3685 = vmatmul.mubr.f32.vlgmr.msra.gmra.mrb[16].mxu0 %v2845_v16  ;;  %3993 = vmatmul.mubr.f32.vlgmr.msra.gmra.mrb[16].mxu1 %v2845_v16  ;;  %v4041_v16 = vld [vmem:[%s6965_s7 + $0xe0] sm:$0xff] }
 0x456   :  { %3690 = vmatprep.mubr.f32.mxu0 %v2854_v63  ;;  %3998 = vmatprep.mubr.f32.mxu1 %v2854_v63  ;;  %v5936_v63 = vpack.c.bf16 %v4042_v39, %v4041_v16 }
 0x457   :  { %5915 = vmatpush3.bf16.msra.mxu0 %v5914_v43  ;;  %5947 = vmatpush3.bf16.msra.mxu1 %v5946_v60  ;;  %v4073_v43 = vld [vmem:[%s6965_s7 + $0x1e0] sm:$0xff]  ;;  %v4074_v60 = vld [vmem:[%s6965_s7 + $0x1e8] sm:$0xff] }
 0x458   :  { %5917 = vmatprep.subr.bf16.mxu0 %v5916_v37  ;;  %5949 = vmatprep.subr.bf16.mxu1 %v5948_v2  ;;  %v5968_v37 = vpack.c.bf16 %v4074_v60, %v4073_v43  ;;  %v4025_v2 = vld [vmem:[%s6965_s7 + $0x60] sm:$0xff] }
 0x459   :  { %3691 = vmatmul.mubr.f32.gmra.mrb[18].mxu0 %v2853_v10  ;;  %3999 = vmatmul.mubr.f32.gmra.mrb[18].mxu1 %v2853_v10  ;;  %v5938_v3 = vpack.c.bf16 %v4026_v23, %v4025_v2  ;;  %v4044_v10 = vld [vmem:[%s6965_s7 + $0xf8] sm:$0xff] }
 0x45b   :  { %5919 = vmatpush3.bf16.msra.mxu0 %v5918_v18  ;;  %5951 = vmatpush3.bf16.msra.mxu1 %v5950_v11  ;;  %v4075_v18 = vld [vmem:[%s6965_s7 + $0x1f0] sm:$0xff]  ;;  %v5940_v11 = vpack.c.bf16 %v4044_v10, %v4043_v38 }
 0x45c   :  { %5921 = vmatprep.subr.bf16.mxu0 %v5920_v20  ;;  %5953 = vmatprep.subr.bf16.mxu1 %v5952_v22  ;;  %v4028_v20 = vld [vmem:[%s6965_s7 + $0x78] sm:$0xff]  ;;  %v5972_v22 = vpack.c.bf16 %v4076_v17, %v4075_v18  ;;  %s6316_s7 = smov [#allocation16]  }
 0x45d   :  { %v5942_v33 = vpack.c.bf16 %v4028_v20, %v4027_v19  ;;  %s4243_s13 = sshll.u32 %s6316_s7, 4  ;;  %s4244_s13 = int_to_ptr.vmem [resolvable:$true] %s4243_s13 }
 0x45e   :  { %s6267_s1 = scalar_lea.vmem %s4244_s13, 256  ;;  %p6272_p9 = scmp.lt.s32.totalorder %s4244_s13, %s4244_s13 }
 0x45f   :  { %5923 = vmatpush3.bf16.msra.mxu0 %v5922_v0  ;;  %5955 = vmatpush3.bf16.msra.mxu1 %v5954_v5  ;;  %v3380_v0 = vrot.slane %v3367_v27, %v6555_v44  ;;  %v3376_v5 = vrot.slane %v3367_v27, %v6502_v61  ;;  %p6268_p8 = scmp.ne.s32.totalorder %s4244_s13, %s6267_s1  ;;  %p6273_p10 = scmp.lt.s32.totalorder %s6267_s1, %s6267_s1 }
 0x460   :  { %5925 = vmatprep.subr.bf16.mxu0 %v5924_v7  ;;  %5957 = vmatprep.subr.bf16.mxu1 %v5956_v26 }
 0x461   :  { %p6274_p11 = por %p6273_p10, %p6272_p9 }
 0x463   :  { %5927 = vmatpush3.bf16.msra.mxu0 %v5926_v52  ;;  %5959 = vmatpush3.bf16.msra.mxu1 %v5958_v15  ;;  %p6275_p12 = pnand %p6274_p11, %p6268_p8 }
 0x464   :  { %5929 = vmatprep.subr.bf16.mxu0 %v5928_v51  ;;  %5961 = vmatprep.subr.bf16.mxu1 %v5960_v58 }
 0x467   :  { %5931 = vmatpush3.bf16.msra.mxu0 %v5930_v42  ;;  %5963 = vmatpush3.bf16.msra.mxu1 %v5962_v30  ;;  %v4267_v30 = vld [vmem:[#allocation14] ss:$0 sm:$0xff] }
 0x468   :  { %5933 = vmatprep.subr.bf16.mxu0 %v5932_v13  ;;  %5965 = vmatprep.subr.bf16.mxu1 %v5964_v21 }
 0x46b   :  { %5935 = vmatpush3.bf16.msra.mxu0 %v5934_v12  ;;  %5967 = vmatpush3.bf16.msra.mxu1 %v5966_v55 }
 0x46c   :  { %5937 = vmatprep.subr.bf16.mxu0 %v5936_v63  ;;  %5969 = vmatprep.subr.bf16.mxu1 %v5968_v37 }
 0x46f   :  { %5939 = vmatpush3.bf16.msra.mxu0 %v5938_v3  ;;  %5971 = vmatpush3.bf16.msra.mxu1 %v5970_v6 }
 0x470   :  { %5941 = vmatprep.subr.bf16.mxu0 %v5940_v11  ;;  %5973 = vmatprep.subr.bf16.mxu1 %v5972_v22 }
 0x473   :  { %5943 = vmatpush3.bf16.msra.mxu0 %v5942_v33  ;;  %5975 = vmatpush3.bf16.msra.mxu1 %v5974_v53 }
 0x528   :  { %v3686_v48 = vpop.f32.mrb[16].mxu0  ;;  %v3994_v7 = vpop.f32.mrb[16].mxu1 }
 0x529   :  { %v5992_v26 = vadd.f32 %v3686_v48, %v3372_v28  ;;  %v5996_v36 = vadd.f32 %v3994_v7, %v3380_v0  ;;  %v3688_v34 = vpop.f32.mrb[17].mxu0  ;;  %v3996_v50 = vpop.f32.mrb[17].mxu1 }
 0x52a   :  { %v5993_v25 = vadd.f32 %v3688_v34, %v3376_v5  ;;  %v5997_v32 = vadd.f32 %v3996_v50, %v3384_v8 }
 0x52b   :  { %v4005_v62 = vmax.f32 %v5992_v26, 0.0  ;;  %v4007_v59 = vmax.f32 %v5996_v36, 0.0 }
 0x52c   :  { %v4006_v35 = vmax.f32 %v5993_v25, 0.0  ;;  %v4008_v52 = vmax.f32 %v5997_v32, 0.0  ;;  %v3692_v15 = vpop.f32.mrb[18].mxu0  ;;  %v4000_v41 = vpop.f32.mrb[18].mxu1 }
 0x52d   :  { %v5994_v51 = vadd.f32 %v3692_v15, %v3372_v28  ;;  %v5998_v44 = vadd.f32 %v4000_v41, %v3380_v0  ;;  %v3694_v58 = vpop.f32.mrb[19].mxu0  ;;  %v4002_v61 = vpop.f32.mrb[19].mxu1 }
 0x52e   :  { %v5995_v47 = vadd.f32 %v3694_v58, %v3376_v5  ;;  %v5999_v1 = vadd.f32 %v4002_v61, %v3384_v8  ;;  %4148 = vmatprep.mubr.f32.mxu0 %v4006_v35  ;;  %4223 = vmatprep.mubr.f32.mxu1 %v4008_v52 }
 0x52f   :  { %4149 = vmatmul.mubr.f32.vlgmr.msra.gmra.mrb[20].mxu0 %v4005_v62  ;;  %4224 = vmatmul.mubr.f32.vlgmr.msra.gmra.mrb[20].mxu1 %v4007_v59  ;;  %v4009_v45 = vmax.f32 %v5994_v51, 0.0  ;;  %v4011_v46 = vmax.f32 %v5998_v44, 0.0 }
 0x530   :  { %v4010_v14 = vmax.f32 %v5995_v47, 0.0  ;;  %v4012_v49 = vmax.f32 %v5999_v1, 0.0 }
 0x532   :  { %4153 = vmatprep.mubr.f32.mxu0 %v4010_v14  ;;  %4228 = vmatprep.mubr.f32.mxu1 %v4012_v49 }
 0x533   :  { %4154 = vmatmul.mubr.f32.gmra.mrb[22].mxu0 %v4009_v45  ;;  %4229 = vmatmul.mubr.f32.gmra.mrb[22].mxu1 %v4011_v46 }
 0x602   :  { %v4300_v54 = vpop.f32.mrb[20].mxu0  ;;  %v4338_v42 = vpop.f32.mrb[20].mxu1 }
 0x603   :  { %v4301_v9 = vpop.f32.mrb[21].mxu0  ;;  %v4339_v56 = vpop.f32.mrb[21].mxu1 }
 0x604   :  { %v4302_v13 = vadd.f32 %v4301_v9, %v4300_v54  ;;  %v4340_v21 = vadd.f32 %v4339_v56, %v4338_v42 }
 0x606   :  { %v4151_v29 = vadd.f32 %v4302_v13, %v4267_v30  ;;  %v4303_v31 = vpop.f32.mrb[22].mxu0  ;;  %v4341_v16 = vpop.f32.mrb[22].mxu1 }
 0x607   :  { %v4304_v39 = vpop.f32.mrb[23].mxu0  ;;  %v4342_v43 = vpop.f32.mrb[23].mxu1 }
 0x608   :  { %v4226_v60 = vadd.f32 %v4340_v21, %v4151_v29  ;;  %v4305_v12 = vadd.f32 %v4304_v39, %v4303_v31  ;;  %v4343_v55 = vadd.f32 %v4342_v43, %v4341_v16 }
 0x60a   :  { %v4234_v63 = vmax.f32 %v4226_v60, 0.0  ;;  %v4156_v37 = vadd.f32 %v4305_v12, %v4267_v30 }
 0x60c   :  { %4236 = vst.msk [vmem:[#allocation16] sm:$0xff] %vm210_vm0, %v4234_v63  ;;  %v4231_v2 = vadd.f32 %v4343_v55, %v4156_v37 }
 0x60e   :  { %v4235_v23 = vmax.f32 %v4231_v2, 0.0 }
 0x610   :  { %4237 = vst.msk [vmem:[#allocation16 + $0x8] sm:$0xff] %vm210_vm0, %v4235_v23 }
 0x611   :  { %6278 = shalt.err (!%p6275_p12)
}
 0x612   :  { %s6279_s15 = scalar_lea.hbm %s6967_s9, 256 }
 0x613   :  { %p6280_p13 = scmp.ne.s32.totalorder %s6967_s9, %s6279_s15  ;;  %p6283_p0 = scmp.lt.u32.totalorder %s6279_s15, %s6967_s9 }
 0x615   :  { %p6285_p1 = pnand %p6283_p0, %p6280_p13 }
 0x617   :  { %6288 = shalt.err (!%p6285_p1)
}
 0x618   :  { %4249 = dma.vmem_to_hbm [thread:$0]  %s4244_s13, 256, %s6967_s9, [#allocation4], %s6309_s5, %s6309_s5, %s6310_s26  }
 0x619   :  { %6299 = dma.done.wait [#allocation4], 256  }
 0x61a   :  { %6300 = vsyncadd [#allocation4], 4294967040 }
 0x61b   :  { %4253 = vsyncpa [#allocation3], 1 }
 0x61c   :  { %4254 = vsyncpa [#allocation6], 1 }
 0x61d   :  { %4255 = vsyncpa [#allocation9], 1 }
 0x61e   :  { %4256 = vsyncpa [#allocation12], 1 }
 0x61f   :  { %4257 = vsyncpa [#allocation15], 1 }
 0x620   :  { %4258 = vsyncpa [#allocation4], 1 }

</bundles_post_ra>
